<compile_context>
chip_gen: v6e
topology: v6e:2x2x1
jax: 0.10.0
libtpu: 0.0.40
codegen_flags: <defaults>
</compile_context>

<pallas_src>
import functools

import jax
import jax.numpy as jnp
from jax.experimental import pallas as pl
from jax.experimental.pallas import tpu as pltpu


# ----------------------------------------------------------------------------
# helpers
# ----------------------------------------------------------------------------

def _pick_rows(total, row_bytes, target_bytes=2 * 1024 * 1024):
    """Rows per block: divides `total`, sublane-aligned (multiple of 8 or the
    full dim), ~target_bytes per block, preferring >=2 grid steps (v7x: 2 TCs)."""
    cands = [d for d in range(1, total + 1)
             if total % d == 0 and (d % 8 == 0 or d == total)]
    byte_cap = max(1, target_bytes // max(int(row_bytes), 1))
    fitting = [d for d in cands if d <= byte_cap] or [min(cands)]
    multi = [d for d in fitting if d < total]
    return max(multi) if multi else max(fitting)


def _band_conv3x3_weight(w, W):
    """(3,3,Cin,Cout) conv weight -> (3*(W+2)*Cin, W*Cout) banded matrix M so
    that out_row[h] = concat_dy(padded_in_row[h+dy]) @ M is the 3x3/pad=1 conv
    of one image row, with a lane-dense (W*Cout) output (no in-kernel relayout)."""
    kH, kW, Cin, Cout = w.shape
    Wp = W + 2
    wi = jnp.arange(Wp)[:, None]                # padded input column
    wo = jnp.arange(W)[None, :]                 # output column
    dx = wi - wo                                # tap index, valid in [0, kW-1]
    valid = (dx >= 0) & (dx <= kW - 1)
    wg = w[:, jnp.clip(dx, 0, kW - 1), :, :]    # (3, Wp, W, Cin, Cout)
    wg = jnp.where(valid[None, :, :, None, None], wg, 0.0)
    # row order (dy, wi, ci), col order (wo, co)
    return jnp.transpose(wg, (0, 1, 3, 2, 4)).reshape(kH * Wp * Cin, W * Cout)


def _band_upconv_weight(wt, W):
    """(Cin,2,2,Cout) ConvTranspose(k=2,s=2) weight -> (W*Cin, 2*2W*Cout) matrix:
    a flat input row (W*Cin lanes) maps straight to both output rows in
    (dy, 2w+dx, cout) lane order -> lane-dense GEMM output, free final reshape."""
    Cin, kH, kW, Cout = wt.shape
    w_in = jnp.arange(W)[:, None]
    wo2 = jnp.arange(2 * W)[None, :]
    dx = wo2 - 2 * w_in                          # valid in [0, kW-1]
    valid = (dx >= 0) & (dx <= kW - 1)
    wg = wt[:, :, jnp.clip(dx, 0, kW - 1), :]    # (Cin, 2, W, 2W, Cout)
    wg = jnp.where(valid[None, None, :, :, None], wg, 0.0)
    # row order (w, ci), col order (dy, wo2, co)
    return jnp.transpose(wg, (2, 0, 1, 3, 4)).reshape(W * Cin, kH * 2 * W * Cout)


# ----------------------------------------------------------------------------
# kernels
# ----------------------------------------------------------------------------

def _upconv_kernel(x_ref, w_ref, b_ref, o_ref):
    # One GEMM: flat input rows (strip, W*Cin) -> both output rows of the
    # transposed conv in (dy, 2w+dx, cout) lane order (unmasked wide stores).
    y = jnp.dot(x_ref[...], w_ref[...], preferred_element_type=jnp.float32)
    o_ref[...] = (y + b_ref[...]).astype(o_ref.dtype)


def _conv3x3_kernel(*refs, n_in, H, W):
    # One image per grid step.  The +1 halo is built in VMEM with zero-row /
    # zero-lane concats (no XLA pad round trip).  All taps of all inputs are
    # folded into one K-stacked GEMM against the banded weight; the output is
    # directly (H, W*Cout) lane-dense.
    # TODO(synk): tile H into halo row-strips (per-strip stats partials) for
    # large images so blocks stay under v7x's 64 MiB VMEM and N=1 still gives
    # >=2 grid steps.
    x_refs = refs[:n_in]
    w_ref, b_ref, g_ref = refs[n_in], refs[n_in + 1], refs[n_in + 2]
    raw_ref, stats_ref = refs[n_in + 3], refs[n_in + 4]

    pieces = []
    for x_ref in x_refs:
        x = x_ref[0]                                       # (H, W*Cin) bf16
        cin = x.shape[-1] // W
        zl = jnp.zeros((H, cin), x.dtype)
        xw = jnp.concatenate([zl, x, zl], axis=-1)         # (H, (W+2)*Cin)
        zr = jnp.zeros((1, xw.shape[-1]), x.dtype)
        xp = jnp.concatenate([zr, xw, zr], axis=0)         # (H+2, (W+2)*Cin)
        pieces += [xp[0:H, :], xp[1:H + 1, :], xp[2:H + 2, :]]   # dy = 0,1,2
    patches = jnp.concatenate(pieces, axis=-1)             # (H, 3*(W+2)*sumCin)

    acc = jnp.dot(patches, w_ref[...], preferred_element_type=jnp.float32)
    acc = acc + b_ref[...]                                 # (H, W*Cout) f32
    raw_ref[0] = acc.astype(raw_ref.dtype)

    # Per-image BatchNorm partials [sum, sumsq]; the per-channel reduction over
    # the W-folded lane axis goes through a small gather matmul (no reshape).
    m1 = jnp.sum(acc, axis=0, keepdims=True)
    m2 = jnp.sum(acc * acc, axis=0, keepdims=True)
    stats_ref[0] = jnp.dot(jnp.concatenate([m1, m2], axis=0), g_ref[...],
                           preferred_element_type=jnp.float32)     # (2, Cout)


def _bn_scale_shift(stats, gamma, beta, e_mat, count, eps):
    # Training-mode BatchNorm: batch statistics, biased variance.
    # NOTE: E[x^2]-E[x]^2 in f32 (clamped >= 0); fine at these sizes.
    s = jnp.sum(stats, axis=0)                     # (2, C): [sum, sumsq]
    inv_n = 1.0 / count
    mean = s[0:1, :] * inv_n
    var = jnp.maximum(s[1:2, :] * inv_n - mean * mean, 0.0)
    scale = jax.lax.rsqrt(var + eps) * gamma
    shift = beta - mean * scale
    ss = jnp.concatenate([scale, shift], axis=0)   # (2, C)
    # Broadcast per-channel scale/shift across the W-folded lane axis via the
    # tiny scatter matrix (C, W*C) -- avoids an in-kernel tile/reshape relayout.
    return jnp.dot(ss, e_mat, preferred_element_type=jnp.float32)  # (2, W*C)


def _bn_act_kernel(x_ref, stats_ref, gb_ref, e_ref, o_ref, *, count, eps, relu):
    ssw = _bn_scale_shift(stats_ref[...], gb_ref[0:1, :], gb_ref[1:2, :],
                          e_ref[...], count, eps)
    y = x_ref[...].astype(jnp.float32) * ssw[0:1, :] + ssw[1:2, :]
    if relu:
        y = jnp.maximum(y, 0.0)
    o_ref[...] = y.astype(o_ref.dtype)


def _bn_res_act_kernel(x_ref, res_ref, stats_ref, gb_ref, e_ref, o_ref, *,
                       count, eps, relu):
    ssw = _bn_scale_shift(stats_ref[...], gb_ref[0:1, :], gb_ref[1:2, :],
                          e_ref[...], count, eps)
    y = (x_ref[...].astype(jnp.float32) * ssw[0:1, :] + ssw[1:2, :]
         + res_ref[...].astype(jnp.float32))
    if relu:
        y = jnp.maximum(y, 0.0)
    o_ref[...] = y.astype(o_ref.dtype)


# ----------------------------------------------------------------------------
# pallas_call wrappers (row-flat layout: channels folded into lanes)
# ----------------------------------------------------------------------------

def conv_transpose2x2(x, w, b):
    """x: (N,H,W,Cin) bf16; w: (Cin,2,2,Cout); b: (Cout,).
    Returns (N, 2H, 2W*Cout) bf16 (row-major identical to (N,2H,2W,Cout))."""
    N, H, W, Cin = x.shape
    Cout = w.shape[-1]
    ncol = 2 * 2 * W * Cout
    wb = _band_upconv_weight(w, W).astype(jnp.bfloat16)       # (W*Cin, ncol)
    bt = jnp.tile(b, 2 * 2 * W).reshape(1, ncol).astype(jnp.float32)

    rows = N * H
    sb = _pick_rows(rows, row_bytes=(W * Cin + ncol) * 2)
    out = pl.pallas_call(
        _upconv_kernel,
        out_shape=jax.ShapeDtypeStruct((rows, ncol), jnp.bfloat16),
        grid=(rows // sb,),
        in_specs=[
            pl.BlockSpec((sb, W * Cin), lambda i: (i, 0)),
            pl.BlockSpec((W * Cin, ncol), lambda i: (0, 0)),
            pl.BlockSpec((1, ncol), lambda i: (0, 0)),
        ],
        out_specs=pl.BlockSpec((sb, ncol), lambda i: (i, 0)),
        compiler_params=pltpu.CompilerParams(dimension_semantics=("parallel",)),
    )(x.reshape(rows, W * Cin), wb, bt)
    # (N*H, 2*2W*Cout) -> (N, 2H, 2W*Cout): free row-major merge, no relayout.
    return out.reshape(N, 2 * H, 2 * W * Cout)


def conv3x3_stats(xs_flat, ws, b, *, H, W):
    """3x3/pad=1 conv over the channel-concat of the inputs (the concat is folded
    into per-input banded weight slices).  xs_flat[i]: (N, H, W*Cin_i) bf16.
    Returns raw (N, H, W*Cout) bf16 (pre-BN, +bias) and stats (N, 2, Cout) f32."""
    N = xs_flat[0].shape[0]
    Cout = ws[0].shape[-1]
    n_in = len(xs_flat)

    wband = jnp.concatenate([_band_conv3x3_weight(w, W) for w in ws],
                            axis=0).astype(jnp.bfloat16)          # (K, W*Cout)
    bt = jnp.tile(b, W).reshape(1, W * Cout).astype(jnp.float32)
    gather = jnp.tile(jnp.eye(Cout, dtype=jnp.float32), (W, 1))   # (W*Cout, Cout)

    in_specs = [pl.BlockSpec((1, H, x.shape[-1]), lambda n: (n, 0, 0))
                for x in xs_flat]
    in_specs += [pl.BlockSpec(wband.shape, lambda n: (0, 0)),
                 pl.BlockSpec((1, W * Cout), lambda n: (0, 0)),
                 pl.BlockSpec(gather.shape, lambda n: (0, 0))]

    raw, stats = pl.pallas_call(
        functools.partial(_conv3x3_kernel, n_in=n_in, H=H, W=W),
        out_shape=(jax.ShapeDtypeStruct((N, H, W * Cout), jnp.bfloat16),
                   jax.ShapeDtypeStruct((N, 2, Cout), jnp.float32)),
        grid=(N,),
        in_specs=in_specs,
        out_specs=(pl.BlockSpec((1, H, W * Cout), lambda n: (n, 0, 0)),
                   pl.BlockSpec((1, 2, Cout), lambda n: (n, 0, 0))),
        compiler_params=pltpu.CompilerParams(
            dimension_semantics=("parallel",),
            vmem_limit_bytes=32 * 1024 * 1024),
    )(*xs_flat, wband, bt, gather)
    return raw, stats


def bn_act(raw_flat, stats, gamma, beta, *, count, relu=True, residual=None,
           eps=1e-5, out_dtype=jnp.bfloat16):
    """Fused training-mode BatchNorm [+ residual] [+ ReLU] on the lane-folded
    (rows, W*C) layout.  `count` = elements per channel (N*H*W)."""
    M, L = raw_flat.shape
    C = gamma.shape[0]
    W = L // C
    gb = jnp.stack([gamma, beta]).astype(jnp.float32)             # (2, C)
    scatter = jnp.tile(jnp.eye(C, dtype=jnp.float32), (1, W))     # (C, W*C)

    row_bytes = L * (2 + (2 if residual is not None else 0)
                     + jnp.dtype(out_dtype).itemsize)
    tm = _pick_rows(M, row_bytes=row_bytes)

    row_spec = pl.BlockSpec((tm, L), lambda i: (i, 0))
    stat_spec = pl.BlockSpec(stats.shape, lambda i: (0, 0, 0))
    gb_spec = pl.BlockSpec((2, C), lambda i: (0, 0))
    e_spec = pl.BlockSpec((C, L), lambda i: (0, 0))

    if residual is None:
        kern = functools.partial(_bn_act_kernel, count=float(count), eps=eps,
                                 relu=relu)
        in_specs = [row_spec, stat_spec, gb_spec, e_spec]
        args = (raw_flat, stats, gb, scatter)
    else:
        kern = functools.partial(_bn_res_act_kernel, count=float(count), eps=eps,
                                 relu=relu)
        in_specs = [row_spec, row_spec, stat_spec, gb_spec, e_spec]
        args = (raw_flat, residual, stats, gb, scatter)

    return pl.pallas_call(
        kern,
        out_shape=jax.ShapeDtypeStruct((M, L), out_dtype),
        grid=(M // tm,),
        in_specs=in_specs,
        out_specs=row_spec,
        compiler_params=pltpu.CompilerParams(dimension_semantics=("parallel",)),
    )(*args)


# ----------------------------------------------------------------------------
# Up.forward  (attention=None, is_res=True — the module defaults)
# ----------------------------------------------------------------------------

def up_forward(params, x_nchw, bridge_nchw):
    # Boundary glue: NCHW -> NHWC (channels -> lanes); MXU operands in bf16.
    x = jnp.transpose(x_nchw, (0, 2, 3, 1)).astype(jnp.bfloat16)
    bridge = jnp.transpose(bridge_nchw, (0, 2, 3, 1)).astype(jnp.bfloat16)
    N, Hb, Wb, Cb = bridge.shape
    Cout = params["up_w"].shape[-1]

    # self.up: ConvTranspose2d(k=2, s=2); phase interleave fused into the GEMM.
    up_flat = conv_transpose2x2(x, params["up_w"], params["up_b"])  # (N,2H,2W*C)

    # pad_tensor(up, bridge): only touches HBM when the spatial sizes differ.
    Hu, Wu = up_flat.shape[1], up_flat.shape[2] // Cout
    if (Hu, Wu) != (Hb, Wb):
        dy, dx = Hb - Hu, Wb - Wu
        up4 = jnp.pad(up_flat.reshape(N, Hu, Wu, Cout),
                      ((0, 0), (dy // 2, dy - dy // 2),
                       (dx // 2, dx - dx // 2), (0, 0)))
        up_flat = up4.reshape(N, Hb, Wb * Cout)
    # self.attention is None in this configuration -> bridge used as-is.
    bridge_flat = bridge.reshape(N, Hb, Wb * Cb)

    # torch.cat([up, bridge], dim=1) + conv1: concat folded into the weight split.
    w1 = params["conv1"]["w"]                                  # (3,3,2*Cout,Cout)
    raw1, stats1 = conv3x3_stats([up_flat, bridge_flat],
                                 [w1[:, :, :Cout, :], w1[:, :, Cout:, :]],
                                 params["conv1"]["b"], H=Hb, W=Wb)
    count = N * Hb * Wb
    # BatchNorm (batch statistics) + ReLU  -> this is `identity` (bf16 in HBM).
    y1 = bn_act(raw1.reshape(N * Hb, Wb * Cout), stats1,
                params["conv1"]["gamma"], params["conv1"]["beta"],
                count=count, relu=True, out_dtype=jnp.bfloat16)

    # conv2 3x3 + BatchNorm + residual add + final ReLU (is_res=True).
    raw2, stats2 = conv3x3_stats([y1.reshape(N, Hb, Wb * Cout)],
                                 [params["conv2"]["w"]], params["conv2"]["b"],
                                 H=Hb, W=Wb)
    out = bn_act(raw2.reshape(N * Hb, Wb * Cout), stats2,
                 params["conv2"]["gamma"], params["conv2"]["beta"],
                 count=count, relu=True, residual=y1, out_dtype=jnp.float32)

    out = out.reshape(N, Hb, Wb, Cout)
    return jnp.transpose(out, (0, 3, 1, 2))                    # NHWC -> NCHW


# ----------------------------------------------------------------------------
# Deterministic parameter init (PyTorch-style fan-in uniform)
# ----------------------------------------------------------------------------

def _init_conv(key, kh, kw, cin, cout):
    wkey, bkey = jax.random.split(key)
    bound = 1.0 / float(cin * kh * kw) ** 0.5
    w = jax.random.uniform(wkey, (kh, kw, cin, cout), jnp.float32, -bound, bound)
    b = jax.random.uniform(bkey, (cout,), jnp.float32, -bound, bound)
    return w, b


def init_up_params(key, in_ch, out_ch):
    k1, k2, k3 = jax.random.split(key, 3)
    # ConvTranspose2d weight stored as (Cin, kH, kW, Cout); PyTorch layout is
    # (Cin, Cout, kH, kW) -> permute (0, 2, 3, 1) when porting real weights.
    # Conv2d weights stored as (kH, kW, Cin, Cout); PyTorch is (Cout, Cin, kH, kW).
    wk, bk = jax.random.split(k1)
    bound = 1.0 / float(in_ch * 4) ** 0.5
    up_w = jax.random.uniform(wk, (in_ch, 2, 2, out_ch), jnp.float32, -bound, bound)
    up_b = jax.random.uniform(bk, (out_ch,), jnp.float32, -bound, bound)
    w1, b1 = _init_conv(k2, 3, 3, in_ch, out_ch)   # conv over cat(up, bridge)
    w2, b2 = _init_conv(k3, 3, 3, out_ch, out_ch)
    ones = jnp.ones((out_ch,), jnp.float32)
    zeros = jnp.zeros((out_ch,), jnp.float32)
    return {
        "up_w": up_w, "up_b": up_b,
        "conv1": {"w": w1, "b": b1, "gamma": ones, "beta": zeros},
        "conv2": {"w": w2, "b": b2, "gamma": ones, "beta": zeros},
    }


# ----------------------------------------------------------------------------
# Main
# ----------------------------------------------------------------------------

if __name__ == "__main__":
    key = jax.random.PRNGKey(0)
    pkey, xkey, bkey = jax.random.split(key, 3)

    in_ch, out_ch = 32, 16                      # Up(in_ch=32, out_ch=16)
    params = init_up_params(pkey, in_ch, out_ch)

    # x comes from the deeper level (half resolution), bridge from the encoder.
    x = jax.random.normal(xkey, (2, in_ch, 8, 8), jnp.float32)        # NCHW
    bridge = jax.random.normal(bkey, (2, out_ch, 16, 16), jnp.float32)

    fwd = jax.jit(functools.partial(up_forward, params))
    y = jax.block_until_ready(fwd(x, bridge))

    assert y.shape == (2, out_ch, 16, 16), y.shape
    assert bool(jnp.all(jnp.isfinite(y)))
    assert bool(jnp.all(y >= 0.0))              # final ReLU
    print("KERNEL_OK")
</pallas_src>

<mosaic_0001>
module attributes {stable_mosaic.version = 11 : i64} {
  func.func @_upconv_kernel(%arg0: i32, %arg1: memref<8x256xbf16, #tpu.memory_space<vmem>>, %arg2: memref<256x512xbf16, #tpu.memory_space<vmem>>, %arg3: memref<1x512xf32, #tpu.memory_space<vmem>>, %arg4: memref<8x512xbf16, #tpu.memory_space<vmem>>) attributes {dimension_semantics = [#tpu.dimension_semantics<parallel>], iteration_bounds = array<i64: 2>, scalar_prefetch = 0 : i64, scratch_operands = 0 : i64, tpu.core_type = #tpu.core_type<tc>, window_params = [{transform_indices = @transform_0, window_bounds = array<i64: 8, 256>}, {pipeline_mode = #tpu.pipeline_mode<synchronous>, transform_indices = @transform_1, window_bounds = array<i64: 256, 512>}, {pipeline_mode = #tpu.pipeline_mode<synchronous>, transform_indices = @transform_2, window_bounds = array<i64: 1, 512>}, {transform_indices = @transform_3, window_bounds = array<i64: 8, 512>}]} {
    %c0 = arith.constant 0 : index
    %c0_0 = arith.constant 0 : index
    %0 = vector.load %arg1[%c0, %c0_0] : memref<8x256xbf16, #tpu.memory_space<vmem>>, vector<8x256xbf16>
    %c0_1 = arith.constant 0 : index
    %c0_2 = arith.constant 0 : index
    %1 = vector.load %arg2[%c0_1, %c0_2] : memref<256x512xbf16, #tpu.memory_space<vmem>>, vector<256x512xbf16>
    %cst = arith.constant dense<0.000000e+00> : vector<8x512xf32>
    %2 = tpu.matmul %0, %1, %cst {dimension_numbers = #tpu.dot_dimension_numbers<[1], [0], [0], [1], [0, 0, 1, 1], [], []>} : vector<8x256xbf16>, vector<256x512xbf16>, vector<8x512xf32> -> vector<8x512xf32>
    %c0_3 = arith.constant 0 : index
    %c0_4 = arith.constant 0 : index
    %3 = vector.load %arg3[%c0_3, %c0_4] : memref<1x512xf32, #tpu.memory_space<vmem>>, vector<1x512xf32>
    %4 = vector.broadcast %3 : vector<1x512xf32> to vector<8x512xf32>
    %5 = arith.addf %2, %4 : vector<8x512xf32>
    %6 = arith.truncf %5 : vector<8x512xf32> to vector<8x512xbf16>
    %c0_5 = arith.constant 0 : index
    %c0_6 = arith.constant 0 : index
    %7 = vector.load %arg4[%c0_5, %c0_6] : memref<8x512xbf16, #tpu.memory_space<vmem>>, vector<8x512xbf16>
    tpu.vector_store %arg4[%c0_5, %c0_6], %6 {strides = array<i32>} : memref<8x512xbf16, #tpu.memory_space<vmem>>, vector<8x512xbf16>,
    return
  }
  func.func @transform_0(%arg0: i32) -> (i32, i32) {
    %c0_i32 = arith.constant 0 : i32
    %c0_i32_0 = arith.constant 0 : i32
    return %arg0, %c0_i32 : i32, i32
  }
  func.func @transform_1(%arg0: i32) -> (i32, i32) {
    %c0_i32 = arith.constant 0 : i32
    %c0_i32_0 = arith.constant 0 : i32
    %c0_i32_1 = arith.constant 0 : i32
    return %c0_i32, %c0_i32_0 : i32, i32
  }
  func.func @transform_2(%arg0: i32) -> (i32, i32) {
    %c0_i32 = arith.constant 0 : i32
    %c0_i32_0 = arith.constant 0 : i32
    %c0_i32_1 = arith.constant 0 : i32
    return %c0_i32, %c0_i32_0 : i32, i32
  }
  func.func @transform_3(%arg0: i32) -> (i32, i32) {
    %c0_i32 = arith.constant 0 : i32
    %c0_i32_0 = arith.constant 0 : i32
    return %arg0, %c0_i32 : i32, i32
  }
}

module attributes {stable_mosaic.version = 11 : i64} {
  func.func @_conv3x3_kernel(%arg0: i32, %arg1: memref<1x16x256xbf16, #tpu.memory_space<vmem>>, %arg2: memref<1x16x256xbf16, #tpu.memory_space<vmem>>, %arg3: memref<1728x256xbf16, #tpu.memory_space<vmem>>, %arg4: memref<1x256xf32, #tpu.memory_space<vmem>>, %arg5: memref<256x16xf32, #tpu.memory_space<vmem>>, %arg6: memref<1x16x256xbf16, #tpu.memory_space<vmem>>, %arg7: memref<1x2x16xf32, #tpu.memory_space<vmem>>) attributes {dimension_semantics = [#tpu.dimension_semantics<parallel>], iteration_bounds = array<i64: 2>, scalar_prefetch = 0 : i64, scratch_operands = 0 : i64, tpu.core_type = #tpu.core_type<tc>, window_params = [{transform_indices = @transform_0, window_bounds = array<i64: 1, 16, 256>}, {transform_indices = @transform_1, window_bounds = array<i64: 1, 16, 256>}, {pipeline_mode = #tpu.pipeline_mode<synchronous>, transform_indices = @transform_2, window_bounds = array<i64: 1728, 256>}, {pipeline_mode = #tpu.pipeline_mode<synchronous>, transform_indices = @transform_3, window_bounds = array<i64: 1, 256>}, {pipeline_mode = #tpu.pipeline_mode<synchronous>, transform_indices = @transform_4, window_bounds = array<i64: 256, 16>}, {transform_indices = @transform_5, window_bounds = array<i64: 1, 16, 256>}, {transform_indices = @transform_6, window_bounds = array<i64: 1, 2, 16>}]} {
    %c0 = arith.constant 0 : index
    %c0_0 = arith.constant 0 : index
    %c0_1 = arith.constant 0 : index
    %0 = vector.load %arg1[%c0, %c0_0, %c0_1] : memref<1x16x256xbf16, #tpu.memory_space<vmem>>, vector<1x16x256xbf16>
    %1 = vector.shape_cast %0 : vector<1x16x256xbf16> to vector<16x256xbf16>
    %cst = arith.constant 0.000000e+00 : bf16
    %2 = vector.broadcast %cst : bf16 to vector<16x16xbf16>
    %3 = tpu.concatenate %2, %1, %2 in 1 : vector<16x16xbf16>, vector<16x256xbf16>, vector<16x16xbf16> -> vector<16x288xbf16>
    %cst_2 = arith.constant 0.000000e+00 : bf16
    %4 = vector.broadcast %cst_2 : bf16 to vector<1x288xbf16>
    %5 = tpu.concatenate %4, %3, %4 in 0 : vector<1x288xbf16>, vector<16x288xbf16>, vector<1x288xbf16> -> vector<18x288xbf16>
    %6 = vector.extract_strided_slice %5 {offsets = [0, 0], sizes = [16, 288], strides = [1, 1]} : vector<18x288xbf16> to vector<16x288xbf16>
    %7 = vector.extract_strided_slice %5 {offsets = [1, 0], sizes = [16, 288], strides = [1, 1]} : vector<18x288xbf16> to vector<16x288xbf16>
    %8 = vector.extract_strided_slice %5 {offsets = [2, 0], sizes = [16, 288], strides = [1, 1]} : vector<18x288xbf16> to vector<16x288xbf16>
    %c0_3 = arith.constant 0 : index
    %c0_4 = arith.constant 0 : index
    %c0_5 = arith.constant 0 : index
    %9 = vector.load %arg2[%c0_3, %c0_4, %c0_5] : memref<1x16x256xbf16, #tpu.memory_space<vmem>>, vector<1x16x256xbf16>
    %10 = vector.shape_cast %9 : vector<1x16x256xbf16> to vector<16x256xbf16>
    %cst_6 = arith.constant 0.000000e+00 : bf16
    %11 = vector.broadcast %cst_6 : bf16 to vector<16x16xbf16>
    %12 = tpu.concatenate %11, %10, %11 in 1 : vector<16x16xbf16>, vector<16x256xbf16>, vector<16x16xbf16> -> vector<16x288xbf16>
    %cst_7 = arith.constant 0.000000e+00 : bf16
    %13 = vector.broadcast %cst_7 : bf16 to vector<1x288xbf16>
    %14 = tpu.concatenate %13, %12, %13 in 0 : vector<1x288xbf16>, vector<16x288xbf16>, vector<1x288xbf16> -> vector<18x288xbf16>
    %15 = vector.extract_strided_slice %14 {offsets = [0, 0], sizes = [16, 288], strides = [1, 1]} : vector<18x288xbf16> to vector<16x288xbf16>
    %16 = vector.extract_strided_slice %14 {offsets = [1, 0], sizes = [16, 288], strides = [1, 1]} : vector<18x288xbf16> to vector<16x288xbf16>
    %17 = vector.extract_strided_slice %14 {offsets = [2, 0], sizes = [16, 288], strides = [1, 1]} : vector<18x288xbf16> to vector<16x288xbf16>
    %18 = tpu.concatenate %6, %7, %8, %15, %16, %17 in 1 : vector<16x288xbf16>, vector<16x288xbf16>, vector<16x288xbf16>, vector<16x288xbf16>, vector<16x288xbf16>, vector<16x288xbf16> -> vector<16x1728xbf16>
    %c0_8 = arith.constant 0 : index
    %c0_9 = arith.constant 0 : index
    %19 = vector.load %arg3[%c0_8, %c0_9] : memref<1728x256xbf16, #tpu.memory_space<vmem>>, vector<1728x256xbf16>
    %cst_10 = arith.constant dense<0.000000e+00> : vector<16x256xf32>
    %20 = tpu.matmul %18, %19, %cst_10 {dimension_numbers = #tpu.dot_dimension_numbers<[1], [0], [0], [1], [0, 0, 1, 1], [], []>} : vector<16x1728xbf16>, vector<1728x256xbf16>, vector<16x256xf32> -> vector<16x256xf32>
    %c0_11 = arith.constant 0 : index
    %c0_12 = arith.constant 0 : index
    %21 = vector.load %arg4[%c0_11, %c0_12] : memref<1x256xf32, #tpu.memory_space<vmem>>, vector<1x256xf32>
    %22 = vector.broadcast %21 : vector<1x256xf32> to vector<16x256xf32>
    %23 = arith.addf %20, %22 : vector<16x256xf32>
    %24 = arith.truncf %23 : vector<16x256xf32> to vector<16x256xbf16>
    %c0_13 = arith.constant 0 : index
    %c0_14 = arith.constant 0 : index
    %c0_15 = arith.constant 0 : index
    %25 = vector.load %arg6[%c0_13, %c0_14, %c0_15] : memref<1x16x256xbf16, #tpu.memory_space<vmem>>, vector<1x16x256xbf16>
    %26 = vector.shape_cast %25 : vector<1x16x256xbf16> to vector<16x256xbf16>
    %27 = vector.shape_cast %24 : vector<16x256xbf16> to vector<1x16x256xbf16>
    tpu.vector_store %arg6[%c0_13, %c0_14, %c0_15], %27 {strides = array<i32>} : memref<1x16x256xbf16, #tpu.memory_space<vmem>>, vector<1x16x256xbf16>,
    %cst_16 = arith.constant dense<0.000000e+00> : vector<256xf32>
    %28 = vector.multi_reduction <add>, %23, %cst_16 [0] : vector<16x256xf32> to vector<256xf32>
    %29 = vector.shape_cast %28 : vector<256xf32> to vector<1x256xf32>
    %30 = arith.mulf %23, %23 : vector<16x256xf32>
    %cst_17 = arith.constant dense<0.000000e+00> : vector<256xf32>
    %31 = vector.multi_reduction <add>, %30, %cst_17 [0] : vector<16x256xf32> to vector<256xf32>
    %32 = vector.shape_cast %31 : vector<256xf32> to vector<1x256xf32>
    %33 = tpu.concatenate %29, %32 in 0 : vector<1x256xf32>, vector<1x256xf32> -> vector<2x256xf32>
    %c0_18 = arith.constant 0 : index
    %c0_19 = arith.constant 0 : index
    %34 = vector.load %arg5[%c0_18, %c0_19] : memref<256x16xf32, #tpu.memory_space<vmem>>, vector<256x16xf32>
    %cst_20 = arith.constant dense<0.000000e+00> : vector<2x16xf32>
    %35 = tpu.matmul %33, %34, %cst_20 {dimension_numbers = #tpu.dot_dimension_numbers<[1], [0], [0], [1], [0, 0, 1, 1], [], []>} : vector<2x256xf32>, vector<256x16xf32>, vector<2x16xf32> -> vector<2x16xf32>
    %c0_21 = arith.constant 0 : index
    %c0_22 = arith.constant 0 : index
    %c0_23 = arith.constant 0 : index
    %36 = vector.load %arg7[%c0_21, %c0_22, %c0_23] : memref<1x2x16xf32, #tpu.memory_space<vmem>>, vector<1x2x16xf32>
    %37 = vector.shape_cast %36 : vector<1x2x16xf32> to vector<2x16xf32>
    %38 = vector.shape_cast %35 : vector<2x16xf32> to vector<1x2x16xf32>
    tpu.vector_store %arg7[%c0_21, %c0_22, %c0_23], %38 {strides = array<i32>} : memref<1x2x16xf32, #tpu.memory_space<vmem>>, vector<1x2x16xf32>,
    return
  }
  func.func @transform_0(%arg0: i32) -> (i32, i32, i32) {
    %c0_i32 = arith.constant 0 : i32
    %c0_i32_0 = arith.constant 0 : i32
    %c0_i32_1 = arith.constant 0 : i32
    return %arg0, %c0_i32, %c0_i32_0 : i32, i32, i32
  }
  func.func @transform_1(%arg0: i32) -> (i32, i32, i32) {
    %c0_i32 = arith.constant 0 : i32
    %c0_i32_0 = arith.constant 0 : i32
    %c0_i32_1 = arith.constant 0 : i32
    return %arg0, %c0_i32, %c0_i32_0 : i32, i32, i32
  }
  func.func @transform_2(%arg0: i32) -> (i32, i32) {
    %c0_i32 = arith.constant 0 : i32
    %c0_i32_0 = arith.constant 0 : i32
    %c0_i32_1 = arith.constant 0 : i32
    return %c0_i32, %c0_i32_0 : i32, i32
  }
  func.func @transform_3(%arg0: i32) -> (i32, i32) {
    %c0_i32 = arith.constant 0 : i32
    %c0_i32_0 = arith.constant 0 : i32
    %c0_i32_1 = arith.constant 0 : i32
    return %c0_i32, %c0_i32_0 : i32, i32
  }
  func.func @transform_4(%arg0: i32) -> (i32, i32) {
    %c0_i32 = arith.constant 0 : i32
    %c0_i32_0 = arith.constant 0 : i32
    %c0_i32_1 = arith.constant 0 : i32
    return %c0_i32, %c0_i32_0 : i32, i32
  }
  func.func @transform_5(%arg0: i32) -> (i32, i32, i32) {
    %c0_i32 = arith.constant 0 : i32
    %c0_i32_0 = arith.constant 0 : i32
    %c0_i32_1 = arith.constant 0 : i32
    return %arg0, %c0_i32, %c0_i32_0 : i32, i32, i32
  }
  func.func @transform_6(%arg0: i32) -> (i32, i32, i32) {
    %c0_i32 = arith.constant 0 : i32
    %c0_i32_0 = arith.constant 0 : i32
    %c0_i32_1 = arith.constant 0 : i32
    return %arg0, %c0_i32, %c0_i32_0 : i32, i32, i32
  }
}

module attributes {stable_mosaic.version = 11 : i64} {
  func.func @_conv3x3_kernel(%arg0: i32, %arg1: memref<1x16x256xbf16, #tpu.memory_space<vmem>>, %arg2: memref<864x256xbf16, #tpu.memory_space<vmem>>, %arg3: memref<1x256xf32, #tpu.memory_space<vmem>>, %arg4: memref<256x16xf32, #tpu.memory_space<vmem>>, %arg5: memref<1x16x256xbf16, #tpu.memory_space<vmem>>, %arg6: memref<1x2x16xf32, #tpu.memory_space<vmem>>) attributes {dimension_semantics = [#tpu.dimension_semantics<parallel>], iteration_bounds = array<i64: 2>, scalar_prefetch = 0 : i64, scratch_operands = 0 : i64, tpu.core_type = #tpu.core_type<tc>, window_params = [{transform_indices = @transform_0, window_bounds = array<i64: 1, 16, 256>}, {pipeline_mode = #tpu.pipeline_mode<synchronous>, transform_indices = @transform_1, window_bounds = array<i64: 864, 256>}, {pipeline_mode = #tpu.pipeline_mode<synchronous>, transform_indices = @transform_2, window_bounds = array<i64: 1, 256>}, {pipeline_mode = #tpu.pipeline_mode<synchronous>, transform_indices = @transform_3, window_bounds = array<i64: 256, 16>}, {transform_indices = @transform_4, window_bounds = array<i64: 1, 16, 256>}, {transform_indices = @transform_5, window_bounds = array<i64: 1, 2, 16>}]} {
    %c0 = arith.constant 0 : index
    %c0_0 = arith.constant 0 : index
    %c0_1 = arith.constant 0 : index
    %0 = vector.load %arg1[%c0, %c0_0, %c0_1] : memref<1x16x256xbf16, #tpu.memory_space<vmem>>, vector<1x16x256xbf16>
    %1 = vector.shape_cast %0 : vector<1x16x256xbf16> to vector<16x256xbf16>
    %cst = arith.constant 0.000000e+00 : bf16
    %2 = vector.broadcast %cst : bf16 to vector<16x16xbf16>
    %3 = tpu.concatenate %2, %1, %2 in 1 : vector<16x16xbf16>, vector<16x256xbf16>, vector<16x16xbf16> -> vector<16x288xbf16>
    %cst_2 = arith.constant 0.000000e+00 : bf16
    %4 = vector.broadcast %cst_2 : bf16 to vector<1x288xbf16>
    %5 = tpu.concatenate %4, %3, %4 in 0 : vector<1x288xbf16>, vector<16x288xbf16>, vector<1x288xbf16> -> vector<18x288xbf16>
    %6 = vector.extract_strided_slice %5 {offsets = [0, 0], sizes = [16, 288], strides = [1, 1]} : vector<18x288xbf16> to vector<16x288xbf16>
    %7 = vector.extract_strided_slice %5 {offsets = [1, 0], sizes = [16, 288], strides = [1, 1]} : vector<18x288xbf16> to vector<16x288xbf16>
    %8 = vector.extract_strided_slice %5 {offsets = [2, 0], sizes = [16, 288], strides = [1, 1]} : vector<18x288xbf16> to vector<16x288xbf16>
    %9 = tpu.concatenate %6, %7, %8 in 1 : vector<16x288xbf16>, vector<16x288xbf16>, vector<16x288xbf16> -> vector<16x864xbf16>
    %c0_3 = arith.constant 0 : index
    %c0_4 = arith.constant 0 : index
    %10 = vector.load %arg2[%c0_3, %c0_4] : memref<864x256xbf16, #tpu.memory_space<vmem>>, vector<864x256xbf16>
    %cst_5 = arith.constant dense<0.000000e+00> : vector<16x256xf32>
    %11 = tpu.matmul %9, %10, %cst_5 {dimension_numbers = #tpu.dot_dimension_numbers<[1], [0], [0], [1], [0, 0, 1, 1], [], []>} : vector<16x864xbf16>, vector<864x256xbf16>, vector<16x256xf32> -> vector<16x256xf32>
    %c0_6 = arith.constant 0 : index
    %c0_7 = arith.constant 0 : index
    %12 = vector.load %arg3[%c0_6, %c0_7] : memref<1x256xf32, #tpu.memory_space<vmem>>, vector<1x256xf32>
    %13 = vector.broadcast %12 : vector<1x256xf32> to vector<16x256xf32>
    %14 = arith.addf %11, %13 : vector<16x256xf32>
    %15 = arith.truncf %14 : vector<16x256xf32> to vector<16x256xbf16>
    %c0_8 = arith.constant 0 : index
    %c0_9 = arith.constant 0 : index
    %c0_10 = arith.constant 0 : index
    %16 = vector.load %arg5[%c0_8, %c0_9, %c0_10] : memref<1x16x256xbf16, #tpu.memory_space<vmem>>, vector<1x16x256xbf16>
    %17 = vector.shape_cast %16 : vector<1x16x256xbf16> to vector<16x256xbf16>
    %18 = vector.shape_cast %15 : vector<16x256xbf16> to vector<1x16x256xbf16>
    tpu.vector_store %arg5[%c0_8, %c0_9, %c0_10], %18 {strides = array<i32>} : memref<1x16x256xbf16, #tpu.memory_space<vmem>>, vector<1x16x256xbf16>,
    %cst_11 = arith.constant dense<0.000000e+00> : vector<256xf32>
    %19 = vector.multi_reduction <add>, %14, %cst_11 [0] : vector<16x256xf32> to vector<256xf32>
    %20 = vector.shape_cast %19 : vector<256xf32> to vector<1x256xf32>
    %21 = arith.mulf %14, %14 : vector<16x256xf32>
    %cst_12 = arith.constant dense<0.000000e+00> : vector<256xf32>
    %22 = vector.multi_reduction <add>, %21, %cst_12 [0] : vector<16x256xf32> to vector<256xf32>
    %23 = vector.shape_cast %22 : vector<256xf32> to vector<1x256xf32>
    %24 = tpu.concatenate %20, %23 in 0 : vector<1x256xf32>, vector<1x256xf32> -> vector<2x256xf32>
    %c0_13 = arith.constant 0 : index
    %c0_14 = arith.constant 0 : index
    %25 = vector.load %arg4[%c0_13, %c0_14] : memref<256x16xf32, #tpu.memory_space<vmem>>, vector<256x16xf32>
    %cst_15 = arith.constant dense<0.000000e+00> : vector<2x16xf32>
    %26 = tpu.matmul %24, %25, %cst_15 {dimension_numbers = #tpu.dot_dimension_numbers<[1], [0], [0], [1], [0, 0, 1, 1], [], []>} : vector<2x256xf32>, vector<256x16xf32>, vector<2x16xf32> -> vector<2x16xf32>
    %c0_16 = arith.constant 0 : index
    %c0_17 = arith.constant 0 : index
    %c0_18 = arith.constant 0 : index
    %27 = vector.load %arg6[%c0_16, %c0_17, %c0_18] : memref<1x2x16xf32, #tpu.memory_space<vmem>>, vector<1x2x16xf32>
    %28 = vector.shape_cast %27 : vector<1x2x16xf32> to vector<2x16xf32>
    %29 = vector.shape_cast %26 : vector<2x16xf32> to vector<1x2x16xf32>
    tpu.vector_store %arg6[%c0_16, %c0_17, %c0_18], %29 {strides = array<i32>} : memref<1x2x16xf32, #tpu.memory_space<vmem>>, vector<1x2x16xf32>,
    return
  }
  func.func @transform_0(%arg0: i32) -> (i32, i32, i32) {
    %c0_i32 = arith.constant 0 : i32
    %c0_i32_0 = arith.constant 0 : i32
    %c0_i32_1 = arith.constant 0 : i32
    return %arg0, %c0_i32, %c0_i32_0 : i32, i32, i32
  }
  func.func @transform_1(%arg0: i32) -> (i32, i32) {
    %c0_i32 = arith.constant 0 : i32
    %c0_i32_0 = arith.constant 0 : i32
    %c0_i32_1 = arith.constant 0 : i32
    return %c0_i32, %c0_i32_0 : i32, i32
  }
  func.func @transform_2(%arg0: i32) -> (i32, i32) {
    %c0_i32 = arith.constant 0 : i32
    %c0_i32_0 = arith.constant 0 : i32
    %c0_i32_1 = arith.constant 0 : i32
    return %c0_i32, %c0_i32_0 : i32, i32
  }
  func.func @transform_3(%arg0: i32) -> (i32, i32) {
    %c0_i32 = arith.constant 0 : i32
    %c0_i32_0 = arith.constant 0 : i32
    %c0_i32_1 = arith.constant 0 : i32
    return %c0_i32, %c0_i32_0 : i32, i32
  }
  func.func @transform_4(%arg0: i32) -> (i32, i32, i32) {
    %c0_i32 = arith.constant 0 : i32
    %c0_i32_0 = arith.constant 0 : i32
    %c0_i32_1 = arith.constant 0 : i32
    return %arg0, %c0_i32, %c0_i32_0 : i32, i32, i32
  }
  func.func @transform_5(%arg0: i32) -> (i32, i32, i32) {
    %c0_i32 = arith.constant 0 : i32
    %c0_i32_0 = arith.constant 0 : i32
    %c0_i32_1 = arith.constant 0 : i32
    return %arg0, %c0_i32, %c0_i32_0 : i32, i32, i32
  }
}

module attributes {stable_mosaic.version = 11 : i64} {
  func.func @_bn_act_kernel(%arg0: i32, %arg1: memref<16x256xbf16, #tpu.memory_space<vmem>>, %arg2: memref<2x2x16xf32, #tpu.memory_space<vmem>>, %arg3: memref<2x16xf32, #tpu.memory_space<vmem>>, %arg4: memref<16x256xf32, #tpu.memory_space<vmem>>, %arg5: memref<16x256xbf16, #tpu.memory_space<vmem>>) attributes {dimension_semantics = [#tpu.dimension_semantics<parallel>], iteration_bounds = array<i64: 2>, scalar_prefetch = 0 : i64, scratch_operands = 0 : i64, tpu.core_type = #tpu.core_type<tc>, window_params = [{transform_indices = @transform_0, window_bounds = array<i64: 16, 256>}, {pipeline_mode = #tpu.pipeline_mode<synchronous>, transform_indices = @transform_1, window_bounds = array<i64: 2, 2, 16>}, {pipeline_mode = #tpu.pipeline_mode<synchronous>, transform_indices = @transform_2, window_bounds = array<i64: 2, 16>}, {pipeline_mode = #tpu.pipeline_mode<synchronous>, transform_indices = @transform_3, window_bounds = array<i64: 16, 256>}, {transform_indices = @transform_4, window_bounds = array<i64: 16, 256>}]} {
    %c0 = arith.constant 0 : index
    %c0_0 = arith.constant 0 : index
    %c0_1 = arith.constant 0 : index
    %0 = vector.load %arg2[%c0, %c0_0, %c0_1] : memref<2x2x16xf32, #tpu.memory_space<vmem>>, vector<2x2x16xf32>
    %c0_2 = arith.constant 0 : index
    %c0_3 = arith.constant 0 : index
    %1 = vector.load %arg3[%c0_2, %c0_3] : memref<2x16xf32, #tpu.memory_space<vmem>>, vector<1x16xf32>
    %c1 = arith.constant 1 : index
    %c0_4 = arith.constant 0 : index
    %2 = vector.load %arg3[%c1, %c0_4] : memref<2x16xf32, #tpu.memory_space<vmem>>, vector<1x16xf32>
    %c0_5 = arith.constant 0 : index
    %c0_6 = arith.constant 0 : index
    %3 = vector.load %arg4[%c0_5, %c0_6] : memref<16x256xf32, #tpu.memory_space<vmem>>, vector<16x256xf32>
    %cst = arith.constant dense<0.000000e+00> : vector<2x16xf32>
    %4 = vector.multi_reduction <add>, %0, %cst [0] : vector<2x2x16xf32> to vector<2x16xf32>
    %5 = vector.extract_strided_slice %4 {offsets = [0, 0], sizes = [1, 16], strides = [1, 1]} : vector<2x16xf32> to vector<1x16xf32>
    %cst_7 = arith.constant 0.001953125 : f32
    %6 = vector.broadcast %cst_7 : f32 to vector<1x16xf32>
    %7 = arith.mulf %5, %6 : vector<1x16xf32>
    %8 = vector.extract_strided_slice %4 {offsets = [1, 0], sizes = [1, 16], strides = [1, 1]} : vector<2x16xf32> to vector<1x16xf32>
    %cst_8 = arith.constant 0.001953125 : f32
    %9 = vector.broadcast %cst_8 : f32 to vector<1x16xf32>
    %10 = arith.mulf %8, %9 : vector<1x16xf32>
    %11 = arith.mulf %7, %7 : vector<1x16xf32>
    %12 = arith.subf %10, %11 : vector<1x16xf32>
    %cst_9 = arith.constant 0.000000e+00 : f32
    %13 = vector.broadcast %cst_9 : f32 to vector<1x16xf32>
    %14 = arith.maximumf %12, %13 : vector<1x16xf32>
    %cst_10 = arith.constant 9.99999974E-6 : f32
    %15 = vector.broadcast %cst_10 : f32 to vector<1x16xf32>
    %16 = arith.addf %14, %15 : vector<1x16xf32>
    %17 = math.rsqrt %16 : vector<1x16xf32>
    %18 = arith.mulf %17, %1 : vector<1x16xf32>
    %19 = arith.mulf %7, %18 : vector<1x16xf32>
    %20 = arith.subf %2, %19 : vector<1x16xf32>
    %21 = tpu.concatenate %18, %20 in 0 : vector<1x16xf32>, vector<1x16xf32> -> vector<2x16xf32>
    %cst_11 = arith.constant dense<0.000000e+00> : vector<2x256xf32>
    %22 = tpu.matmul %21, %3, %cst_11 {dimension_numbers = #tpu.dot_dimension_numbers<[1], [0], [0], [1], [0, 0, 1, 1], [], []>} : vector<2x16xf32>, vector<16x256xf32>, vector<2x256xf32> -> vector<2x256xf32>
    %c0_12 = arith.constant 0 : index
    %c0_13 = arith.constant 0 : index
    %23 = vector.load %arg1[%c0_12, %c0_13] : memref<16x256xbf16, #tpu.memory_space<vmem>>, vector<16x256xbf16>
    %24 = arith.extf %23 : vector<16x256xbf16> to vector<16x256xf32>
    %25 = vector.extract_strided_slice %22 {offsets = [0, 0], sizes = [1, 256], strides = [1, 1]} : vector<2x256xf32> to vector<1x256xf32>
    %26 = vector.broadcast %25 : vector<1x256xf32> to vector<16x256xf32>
    %27 = arith.mulf %24, %26 : vector<16x256xf32>
    %28 = vector.extract_strided_slice %22 {offsets = [1, 0], sizes = [1, 256], strides = [1, 1]} : vector<2x256xf32> to vector<1x256xf32>
    %29 = vector.broadcast %28 : vector<1x256xf32> to vector<16x256xf32>
    %30 = arith.addf %27, %29 : vector<16x256xf32>
    %cst_14 = arith.constant 0.000000e+00 : f32
    %31 = vector.broadcast %cst_14 : f32 to vector<16x256xf32>
    %32 = arith.maximumf %30, %31 : vector<16x256xf32>
    %33 = arith.truncf %32 : vector<16x256xf32> to vector<16x256xbf16>
    %c0_15 = arith.constant 0 : index
    %c0_16 = arith.constant 0 : index
    %34 = vector.load %arg5[%c0_15, %c0_16] : memref<16x256xbf16, #tpu.memory_space<vmem>>, vector<16x256xbf16>
    tpu.vector_store %arg5[%c0_15, %c0_16], %33 {strides = array<i32>} : memref<16x256xbf16, #tpu.memory_space<vmem>>, vector<16x256xbf16>,
    return
  }
  func.func @transform_0(%arg0: i32) -> (i32, i32) {
    %c0_i32 = arith.constant 0 : i32
    %c0_i32_0 = arith.constant 0 : i32
    return %arg0, %c0_i32 : i32, i32
  }
  func.func @transform_1(%arg0: i32) -> (i32, i32, i32) {
    %c0_i32 = arith.constant 0 : i32
    %c0_i32_0 = arith.constant 0 : i32
    %c0_i32_1 = arith.constant 0 : i32
    %c0_i32_2 = arith.constant 0 : i32
    return %c0_i32, %c0_i32_0, %c0_i32_1 : i32, i32, i32
  }
  func.func @transform_2(%arg0: i32) -> (i32, i32) {
    %c0_i32 = arith.constant 0 : i32
    %c0_i32_0 = arith.constant 0 : i32
    %c0_i32_1 = arith.constant 0 : i32
    return %c0_i32, %c0_i32_0 : i32, i32
  }
  func.func @transform_3(%arg0: i32) -> (i32, i32) {
    %c0_i32 = arith.constant 0 : i32
    %c0_i32_0 = arith.constant 0 : i32
    %c0_i32_1 = arith.constant 0 : i32
    return %c0_i32, %c0_i32_0 : i32, i32
  }
  func.func @transform_4(%arg0: i32) -> (i32, i32) {
    %c0_i32 = arith.constant 0 : i32
    %c0_i32_0 = arith.constant 0 : i32
    return %arg0, %c0_i32 : i32, i32
  }
}

module attributes {stable_mosaic.version = 11 : i64} {
  func.func @_bn_res_act_kernel(%arg0: i32, %arg1: memref<16x256xbf16, #tpu.memory_space<vmem>>, %arg2: memref<16x256xbf16, #tpu.memory_space<vmem>>, %arg3: memref<2x2x16xf32, #tpu.memory_space<vmem>>, %arg4: memref<2x16xf32, #tpu.memory_space<vmem>>, %arg5: memref<16x256xf32, #tpu.memory_space<vmem>>, %arg6: memref<16x256xf32, #tpu.memory_space<vmem>>) attributes {dimension_semantics = [#tpu.dimension_semantics<parallel>], iteration_bounds = array<i64: 2>, scalar_prefetch = 0 : i64, scratch_operands = 0 : i64, tpu.core_type = #tpu.core_type<tc>, window_params = [{transform_indices = @transform_0, window_bounds = array<i64: 16, 256>}, {transform_indices = @transform_1, window_bounds = array<i64: 16, 256>}, {pipeline_mode = #tpu.pipeline_mode<synchronous>, transform_indices = @transform_2, window_bounds = array<i64: 2, 2, 16>}, {pipeline_mode = #tpu.pipeline_mode<synchronous>, transform_indices = @transform_3, window_bounds = array<i64: 2, 16>}, {pipeline_mode = #tpu.pipeline_mode<synchronous>, transform_indices = @transform_4, window_bounds = array<i64: 16, 256>}, {transform_indices = @transform_5, window_bounds = array<i64: 16, 256>}]} {
    %c0 = arith.constant 0 : index
    %c0_0 = arith.constant 0 : index
    %c0_1 = arith.constant 0 : index
    %0 = vector.load %arg3[%c0, %c0_0, %c0_1] : memref<2x2x16xf32, #tpu.memory_space<vmem>>, vector<2x2x16xf32>
    %c0_2 = arith.constant 0 : index
    %c0_3 = arith.constant 0 : index
    %1 = vector.load %arg4[%c0_2, %c0_3] : memref<2x16xf32, #tpu.memory_space<vmem>>, vector<1x16xf32>
    %c1 = arith.constant 1 : index
    %c0_4 = arith.constant 0 : index
    %2 = vector.load %arg4[%c1, %c0_4] : memref<2x16xf32, #tpu.memory_space<vmem>>, vector<1x16xf32>
    %c0_5 = arith.constant 0 : index
    %c0_6 = arith.constant 0 : index
    %3 = vector.load %arg5[%c0_5, %c0_6] : memref<16x256xf32, #tpu.memory_space<vmem>>, vector<16x256xf32>
    %cst = arith.constant dense<0.000000e+00> : vector<2x16xf32>
    %4 = vector.multi_reduction <add>, %0, %cst [0] : vector<2x2x16xf32> to vector<2x16xf32>
    %5 = vector.extract_strided_slice %4 {offsets = [0, 0], sizes = [1, 16], strides = [1, 1]} : vector<2x16xf32> to vector<1x16xf32>
    %cst_7 = arith.constant 0.001953125 : f32
    %6 = vector.broadcast %cst_7 : f32 to vector<1x16xf32>
    %7 = arith.mulf %5, %6 : vector<1x16xf32>
    %8 = vector.extract_strided_slice %4 {offsets = [1, 0], sizes = [1, 16], strides = [1, 1]} : vector<2x16xf32> to vector<1x16xf32>
    %cst_8 = arith.constant 0.001953125 : f32
    %9 = vector.broadcast %cst_8 : f32 to vector<1x16xf32>
    %10 = arith.mulf %8, %9 : vector<1x16xf32>
    %11 = arith.mulf %7, %7 : vector<1x16xf32>
    %12 = arith.subf %10, %11 : vector<1x16xf32>
    %cst_9 = arith.constant 0.000000e+00 : f32
    %13 = vector.broadcast %cst_9 : f32 to vector<1x16xf32>
    %14 = arith.maximumf %12, %13 : vector<1x16xf32>
    %cst_10 = arith.constant 9.99999974E-6 : f32
    %15 = vector.broadcast %cst_10 : f32 to vector<1x16xf32>
    %16 = arith.addf %14, %15 : vector<1x16xf32>
    %17 = math.rsqrt %16 : vector<1x16xf32>
    %18 = arith.mulf %17, %1 : vector<1x16xf32>
    %19 = arith.mulf %7, %18 : vector<1x16xf32>
    %20 = arith.subf %2, %19 : vector<1x16xf32>
    %21 = tpu.concatenate %18, %20 in 0 : vector<1x16xf32>, vector<1x16xf32> -> vector<2x16xf32>
    %cst_11 = arith.constant dense<0.000000e+00> : vector<2x256xf32>
    %22 = tpu.matmul %21, %3, %cst_11 {dimension_numbers = #tpu.dot_dimension_numbers<[1], [0], [0], [1], [0, 0, 1, 1], [], []>} : vector<2x16xf32>, vector<16x256xf32>, vector<2x256xf32> -> vector<2x256xf32>
    %c0_12 = arith.constant 0 : index
    %c0_13 = arith.constant 0 : index
    %23 = vector.load %arg1[%c0_12, %c0_13] : memref<16x256xbf16, #tpu.memory_space<vmem>>, vector<16x256xbf16>
    %24 = arith.extf %23 : vector<16x256xbf16> to vector<16x256xf32>
    %25 = vector.extract_strided_slice %22 {offsets = [0, 0], sizes = [1, 256], strides = [1, 1]} : vector<2x256xf32> to vector<1x256xf32>
    %26 = vector.broadcast %25 : vector<1x256xf32> to vector<16x256xf32>
    %27 = arith.mulf %24, %26 : vector<16x256xf32>
    %28 = vector.extract_strided_slice %22 {offsets = [1, 0], sizes = [1, 256], strides = [1, 1]} : vector<2x256xf32> to vector<1x256xf32>
    %29 = vector.broadcast %28 : vector<1x256xf32> to vector<16x256xf32>
    %30 = arith.addf %27, %29 : vector<16x256xf32>
    %c0_14 = arith.constant 0 : index
    %c0_15 = arith.constant 0 : index
    %31 = vector.load %arg2[%c0_14, %c0_15] : memref<16x256xbf16, #tpu.memory_space<vmem>>, vector<16x256xbf16>
    %32 = arith.extf %31 : vector<16x256xbf16> to vector<16x256xf32>
    %33 = arith.addf %30, %32 : vector<16x256xf32>
    %cst_16 = arith.constant 0.000000e+00 : f32
    %34 = vector.broadcast %cst_16 : f32 to vector<16x256xf32>
    %35 = arith.maximumf %33, %34 : vector<16x256xf32>
    %c0_17 = arith.constant 0 : index
    %c0_18 = arith.constant 0 : index
    %36 = vector.load %arg6[%c0_17, %c0_18] : memref<16x256xf32, #tpu.memory_space<vmem>>, vector<16x256xf32>
    tpu.vector_store %arg6[%c0_17, %c0_18], %35 {strides = array<i32>} : memref<16x256xf32, #tpu.memory_space<vmem>>, vector<16x256xf32>,
    return
  }
  func.func @transform_0(%arg0: i32) -> (i32, i32) {
    %c0_i32 = arith.constant 0 : i32
    %c0_i32_0 = arith.constant 0 : i32
    return %arg0, %c0_i32 : i32, i32
  }
  func.func @transform_1(%arg0: i32) -> (i32, i32) {
    %c0_i32 = arith.constant 0 : i32
    %c0_i32_0 = arith.constant 0 : i32
    return %arg0, %c0_i32 : i32, i32
  }
  func.func @transform_2(%arg0: i32) -> (i32, i32, i32) {
    %c0_i32 = arith.constant 0 : i32
    %c0_i32_0 = arith.constant 0 : i32
    %c0_i32_1 = arith.constant 0 : i32
    %c0_i32_2 = arith.constant 0 : i32
    return %c0_i32, %c0_i32_0, %c0_i32_1 : i32, i32, i32
  }
  func.func @transform_3(%arg0: i32) -> (i32, i32) {
    %c0_i32 = arith.constant 0 : i32
    %c0_i32_0 = arith.constant 0 : i32
    %c0_i32_1 = arith.constant 0 : i32
    return %c0_i32, %c0_i32_0 : i32, i32
  }
  func.func @transform_4(%arg0: i32) -> (i32, i32) {
    %c0_i32 = arith.constant 0 : i32
    %c0_i32_0 = arith.constant 0 : i32
    %c0_i32_1 = arith.constant 0 : i32
    return %c0_i32, %c0_i32_0 : i32, i32
  }
  func.func @transform_5(%arg0: i32) -> (i32, i32) {
    %c0_i32 = arith.constant 0 : i32
    %c0_i32_0 = arith.constant 0 : i32
    return %arg0, %c0_i32 : i32, i32
  }
}

</mosaic_0001>

<bundles_post_ra>
// kernel: tile.34
= control target key start
LH: loop header
LB: loop body
LE: loop exit
PB: predicated region body
PF: predicated region fallthrough
CT: control target
= control target key end

     0   :  { %s40_s0 = inlined_call_operand.vmem [shape: f32[16], index: 0, kind: input, shape index: {}]   ;;  %s41_s1 = inlined_call_operand.vmem [shape: f32[32,16], index: 1, kind: output, shape index: {}]  }
   0x1   :  { %v4_v0 = vld [vmem:[%s40_s0] ss:$0 sm:$0xff] }
   0x2   :  { %5 = vst [vmem:[%s41_s1] sm:$0xff] %v4_v0  ;;  %12 = vst [vmem:[%s41_s1 + $0x8] sm:$0xff] %v4_v0 }
   0x3   :  { %13 = vst [vmem:[%s41_s1 + $0x10] sm:$0xff] %v4_v0  ;;  %14 = vst [vmem:[%s41_s1 + $0x18] sm:$0xff] %v4_v0 }

// kernel: tile.35
= control target key start
LH: loop header
LB: loop body
LE: loop exit
PB: predicated region body
PF: predicated region fallthrough
CT: control target
= control target key end

     0   :  { %s94_s8 = smov 112   ;;  %s95_s11 = smov 80   ;;  %vm3_vm0 = vcmask 130048   ;;  %vm9_vm1 = vcmask 1048448   ;;  %vm15_vm2 = vcmask 917248   ;;  %vm21_vm3 = vcmask 786048   ;;  %s147_s0 = inlined_call_operand.vmem [shape: f32[32,16], index: 0, kind: input, shape index: {}]   ;;  %s148_s1 = inlined_call_operand.vmem [shape: f32[1,512], index: 1, kind: output, shape index: {}]  }
   0x1   :  { %v77_v0 = vld [vmem:[%s147_s0 + $0x7] ss:$8 sm:$0xf]   ;;  %v79_v1 = vld [vmem:[%s147_s0 + $0x5] ss:$8 sm:$0xf]  }
   0x2   :  { %7 = vrot.lane.b32.xlu0 %v77_v0, %s94_s8  ;;  %19 = vrot.lane.b32.xlu1 %v79_v1, %s95_s11  ;;  %v78_v2 = vld [vmem:[%s147_s0 + $0x6] ss:$8 sm:$0xf]   ;;  %v80_v3 = vld [vmem:[%s147_s0 + $0x4] ss:$8 sm:$0xf]  }
   0x3   :  { %s96_s16 = smov 96   ;;  %v2_v4 = vld [vmem:[%s147_s0] ss:$8 sm:$0xf]   ;;  %s97_s19 = smov 64   ;;  %vm27_vm4 = vcmask 654848  }
   0x4   :  { %v81_v5 = vld [vmem:[%s147_s0 + $0x3] ss:$8 sm:$0xf]   ;;  %4 = vst.msk [vmem:[#allocation0] ss:$8 sm:$0xf] %vm3_vm0, %v2_v4  }
   0x5   :  { %v82_v6 = vld [vmem:[%s147_s0 + $0x2] ss:$8 sm:$0xf]   ;;  %s98_s24 = smov 48   ;;  %s99_s25 = smov 32   ;;  %vm33_vm5 = vcmask 523648  }
   0x6   :  { %13 = vrot.lane.b32.xlu0 %v78_v2, %s96_s16  ;;  %25 = vrot.lane.b32.xlu1 %v80_v3, %s97_s19  ;;  %v83_v7 = vld [vmem:[%s147_s0 + $0x1] ss:$8 sm:$0xf]   ;;  %s100_s0 = smov 16   ;;  %vm39_vm6 = vcmask 392448   ;;  %vm45_vm7 = vcmask 261248  }
   0xa   :  { %31 = vrot.lane.b32.xlu0 %v81_v5, %s98_s24  ;;  %37 = vrot.lane.b32.xlu1 %v82_v6, %s99_s25 }
   0xe   :  { %43 = vrot.lane.b32.xlu0 %v83_v7, %s100_s0 }
  0x74   :  { %v8_v8 = vpop.permute.xlu0 %7   ;;  %v20_v9 = vpop.permute.xlu1 %19  }
  0x75   :  { %10 = vst.msk [vmem:[#allocation0] ss:$8 sm:$0xf] %vm9_vm1, %v8_v8  }
  0x78   :  { %v14_v10 = vpop.permute.xlu0 %13   ;;  %v26_v11 = vpop.permute.xlu1 %25  }
  0x79   :  { %16 = vst.msk [vmem:[#allocation0] ss:$8 sm:$0xf] %vm15_vm2, %v14_v10  }
  0x7a   :  { %22 = vst.msk [vmem:[#allocation0] ss:$8 sm:$0xf] %vm21_vm3, %v20_v9  }
  0x7b   :  { %28 = vst.msk [vmem:[#allocation0] ss:$8 sm:$0xf] %vm27_vm4, %v26_v11  }
  0x7c   :  { %v32_v12 = vpop.permute.xlu0 %31   ;;  %v38_v13 = vpop.permute.xlu1 %37  }
  0x7d   :  { %34 = vst.msk [vmem:[#allocation0] ss:$8 sm:$0xf] %vm33_vm5, %v32_v12  }
  0x7e   :  { %40 = vst.msk [vmem:[#allocation0] ss:$8 sm:$0xf] %vm39_vm6, %v38_v13  }
  0x80   :  { %v44_v14 = vpop.permute.xlu0 %43  }
  0x81   :  { %46 = vst.msk [vmem:[#allocation0] ss:$8 sm:$0xf] %vm45_vm7, %v44_v14  }
  0x88   :  { %v51_v15 = vld [vmem:[#allocation0] sm:$0x1]  ;;  %v56_v16 = vld [vmem:[#allocation0 + $0x8] sm:$0x1]  ;;  %v62_v17 = vld [vmem:[#allocation0 + $0x10] sm:$0x1] }
  0x89   :  { %54 = vst [vmem:[%s148_s1] sm:$0x1] %v51_v15  ;;  %84 = vst [vmem:[%s148_s1 + $0x1] sm:$0x1] %v56_v16  ;;  %v69_v18 = vld [vmem:[#allocation0 + $0x18] sm:$0x1] }
  0x8a   :  { %85 = vst [vmem:[%s148_s1 + $0x2] sm:$0x1] %v62_v17  ;;  %86 = vst [vmem:[%s148_s1 + $0x3] sm:$0x1] %v69_v18 }

// kernel: up_forward.5
= control target key start
LH: loop header
LB: loop body
LE: loop exit
PB: predicated region body
PF: predicated region fallthrough
CT: control target
= control target key end

     0   :  { %s957_s12 = smov 0   ;;  %s1177_s0 = inlined_call_operand.vmem [shape: bf16[16,256], index: 0, kind: input, shape index: {}]   ;;  %s1178_s1 = inlined_call_operand.vmem [shape: bf16[256,512], index: 1, kind: input, shape index: {}]   ;;  %s1179_s2 = inlined_call_operand.vmem [shape: f32[1,512], index: 2, kind: input, shape index: {}]   ;;  %s1180_s3 = inlined_call_operand.vmem [shape: bf16[16,512], index: 3, kind: output, shape index: {}]  }
   0x1 LB: > { %s740_s13 = sadd.s32 4294967295, %s935_s12   ;;  %p744_p0 = scmp.ge.s32.totalorder %s935_s12, 1  ;;  %s935_s12 = sphi %s957_s12, %s13_s12  }
   0x2   : > { %p137_p1 = scmp.lt.s32.totalorder %s935_s12, 3 }
   0x4   : > { %p138_p2 = pnand %p744_p0, %p137_p1 }
   0x5   : > { %p161_p3 = scmp.lt.s32.totalorder (!%p138_p2), %s740_s13, 1 }
   0x6   : > { %141 = sbr.rel (%p138_p2) target bundleno = 276 (0x114), region = 32 }
   0xb   : > { %v831_v0 = vld [vmem:[%s1178_s1 + $0xe4] ss:$16 sps:$4 sm:$0xff]   ;;  %v833_v1 = vld [vmem:[%s1178_s1 + $0xec] ss:$16 sps:$4 sm:$0xff]   ;;  %v835_v2 = vld [vmem:[%s1178_s1 + $0xe0] ss:$16 sps:$4 sm:$0xff]  }
   0xc   : > { %585 = vmatprep.subr.bf16.mxu0 %v831_v0  ;;  %v836_v3 = vld [vmem:[%s1178_s1 + $0xe8] ss:$16 sps:$4 sm:$0xff]   ;;  %626 = vmatprep.subr.bf16.mxu1 %v833_v1  ;;  %v837_v4 = vld [vmem:[%s1178_s1 + $0xc4] ss:$16 sps:$4 sm:$0xff]   ;;  %v839_v5 = vld [vmem:[%s1178_s1 + $0xcc] ss:$16 sps:$4 sm:$0xff]  }
   0xd   : > { %586 = vmatpush1.bf16.msra.mxu0 %v835_v2  ;;  %627 = vmatpush1.bf16.msra.mxu1 %v836_v3  ;;  %v841_v6 = vld [vmem:[%s1178_s1 + $0xc0] ss:$16 sps:$4 sm:$0xff]   ;;  %v842_v7 = vld [vmem:[%s1178_s1 + $0xc8] ss:$16 sps:$4 sm:$0xff]   ;;  %v843_v8 = vld [vmem:[%s1178_s1 + $0xa4] ss:$16 sps:$4 sm:$0xff]   ;;  %v238_v3 = vlaneseq }
   0xe   : > { %587 = vmatprep.subr.bf16.mxu0 %v837_v4  ;;  %628 = vmatprep.subr.bf16.mxu1 %v839_v5  ;;  %v845_v9 = vld [vmem:[%s1178_s1 + $0xac] ss:$16 sps:$4 sm:$0xff]   ;;  %v847_v10 = vld [vmem:[%s1178_s1 + $0xa0] ss:$16 sps:$4 sm:$0xff]   ;;  %v848_v11 = vld [vmem:[%s1178_s1 + $0xa8] ss:$16 sps:$4 sm:$0xff]  }
   0xf   : > { %v849_v12 = vld [vmem:[%s1178_s1 + $0x84] ss:$16 sps:$4 sm:$0xff]   ;;  %v851_v13 = vld [vmem:[%s1178_s1 + $0x8c] ss:$16 sps:$4 sm:$0xff]   ;;  %v853_v14 = vld [vmem:[%s1178_s1 + $0x80] ss:$16 sps:$4 sm:$0xff]  }
  0x10   : > { %v854_v15 = vld [vmem:[%s1178_s1 + $0x88] ss:$16 sps:$4 sm:$0xff]   ;;  %v855_v16 = vld [vmem:[%s1178_s1 + $0x64] ss:$16 sps:$4 sm:$0xff]   ;;  %v857_v17 = vld [vmem:[%s1178_s1 + $0x6c] ss:$16 sps:$4 sm:$0xff]  }
  0x11   : > { %588 = vmatpush1.bf16.msra.mxu0 %v841_v6  ;;  %629 = vmatpush1.bf16.msra.mxu1 %v842_v7  ;;  %v859_v18 = vld [vmem:[%s1178_s1 + $0x60] ss:$16 sps:$4 sm:$0xff]   ;;  %v860_v19 = vld [vmem:[%s1178_s1 + $0x68] ss:$16 sps:$4 sm:$0xff]   ;;  %v861_v20 = vld [vmem:[%s1178_s1 + $0x44] ss:$16 sps:$4 sm:$0xff]  }
  0x12   : > { %589 = vmatprep.subr.bf16.mxu0 %v843_v8  ;;  %630 = vmatprep.subr.bf16.mxu1 %v845_v9  ;;  %v863_v21 = vld [vmem:[%s1178_s1 + $0x4c] ss:$16 sps:$4 sm:$0xff]   ;;  %v865_v22 = vld [vmem:[%s1178_s1 + $0x40] ss:$16 sps:$4 sm:$0xff]   ;;  %v866_v23 = vld [vmem:[%s1178_s1 + $0x48] ss:$16 sps:$4 sm:$0xff]  }
  0x13   : > { %v867_v24 = vld [vmem:[%s1178_s1 + $0x24] ss:$16 sps:$4 sm:$0xff]   ;;  %v869_v25 = vld [vmem:[%s1178_s1 + $0x2c] ss:$16 sps:$4 sm:$0xff]   ;;  %v871_v26 = vld [vmem:[%s1178_s1 + $0x20] ss:$16 sps:$4 sm:$0xff]  }
  0x14   : > { %v872_v27 = vld [vmem:[%s1178_s1 + $0x28] ss:$16 sps:$4 sm:$0xff]   ;;  %v873_v28 = vld [vmem:[%s1178_s1 + $0x4] ss:$16 sps:$4 sm:$0xff]   ;;  %v875_v29 = vld [vmem:[%s1178_s1 + $0xc] ss:$16 sps:$4 sm:$0xff]  }
  0x15   : > { %590 = vmatpush1.bf16.msra.mxu0 %v847_v10  ;;  %631 = vmatpush1.bf16.msra.mxu1 %v848_v11  ;;  %v877_v30 = vld [vmem:[%s1178_s1] ss:$16 sps:$4 sm:$0xff]   ;;  %v878_v31 = vld [vmem:[%s1178_s1 + $0x8] ss:$16 sps:$4 sm:$0xff]   ;;  %v879_v32 = vld [vmem:[%s1178_s1 + $0x1e4] ss:$16 sps:$4 sm:$0xff]  }
  0x16   : > { %591 = vmatprep.subr.bf16.mxu0 %v849_v12  ;;  %632 = vmatprep.subr.bf16.mxu1 %v851_v13  ;;  %v881_v33 = vld [vmem:[%s1178_s1 + $0x1ec] ss:$16 sps:$4 sm:$0xff]   ;;  %v883_v34 = vld [vmem:[%s1178_s1 + $0x1e0] ss:$16 sps:$4 sm:$0xff]   ;;  %v884_v35 = vld [vmem:[%s1178_s1 + $0x1e8] ss:$16 sps:$4 sm:$0xff]  }
  0x17   : > { %v885_v36 = vld [vmem:[%s1178_s1 + $0x1c4] ss:$16 sps:$4 sm:$0xff]   ;;  %s1182_s13 = smov (!%p161_p3, %s740_s13), 1  ;;  %v887_v37 = vld [vmem:[%s1178_s1 + $0x1cc] ss:$16 sps:$4 sm:$0xff]   ;;  %v239_v4 = vshrl.u32 %v238_v3, 7 }
  0x18   : > { %v889_v38 = vld [vmem:[%s1178_s1 + $0x1c0] ss:$16 sps:$4 sm:$0xff]   ;;  %v890_v39 = vld [vmem:[%s1178_s1 + $0x1c8] ss:$16 sps:$4 sm:$0xff]   ;;  %v891_v40 = vld [vmem:[%s1178_s1 + $0x1a4] ss:$16 sps:$4 sm:$0xff]  }
  0x19   : > { %592 = vmatpush1.bf16.msra.mxu0 %v853_v14  ;;  %633 = vmatpush1.bf16.msra.mxu1 %v854_v15  ;;  %s819_s21 = sshll.u32 %s1182_s13, 3  ;;  %v893_v41 = vld [vmem:[%s1178_s1 + $0x1ac] ss:$16 sps:$4 sm:$0xff]   ;;  %v895_v42 = vld [vmem:[%s1178_s1 + $0x1a0] ss:$16 sps:$4 sm:$0xff]   ;;  %v240_v5 = vsub.s32 0, %v239_v4 }
  0x1a   : > { %593 = vmatprep.subr.bf16.mxu0 %v855_v16  ;;  %634 = vmatprep.subr.bf16.mxu1 %v857_v17  ;;  %v896_v43 = vld [vmem:[%s1178_s1 + $0x1a8] ss:$16 sps:$4 sm:$0xff]   ;;  %s165_s30 = scalar_lea.vmem %s1177_s0, %s819_s21  ;;  %v897_v44 = vld [vmem:[%s1178_s1 + $0x184] ss:$16 sps:$4 sm:$0xff]   ;;  %v899_v45 = vld [vmem:[%s1178_s1 + $0x18c] ss:$16 sps:$4 sm:$0xff]  }
  0x1b   : > { %v171_v46 = vld [vmem:[%s165_s30] sm:$0xff]  ;;  %v902_v49 = vld [vmem:[%s1178_s1 + $0x188] ss:$16 sps:$4 sm:$0xff]   ;;  %v905_v51 = vld [vmem:[%s1178_s1 + $0x16c] ss:$16 sps:$4 sm:$0xff]   ;;  %v248_v6 = vsub.s32 2, %v239_v4 }
  0x1c   : > { %v750_v47 = vcombine.high %v171_v46, %v171_v46  ;;  %v901_v48 = vld [vmem:[%s1178_s1 + $0x180] ss:$16 sps:$4 sm:$0xff]   ;;  %v903_v50 = vld [vmem:[%s1178_s1 + $0x164] ss:$16 sps:$4 sm:$0xff]   ;;  %v908_v53 = vld [vmem:[%s1178_s1 + $0x168] ss:$16 sps:$4 sm:$0xff]   ;;  %v749_v2 = vcombine.low %v171_v46, %v171_v46 }
  0x1d   : > { %594 = vmatpush1.bf16.msra.mxu0 %v859_v18  ;;  %635 = vmatpush1.bf16.msra.mxu1 %v860_v19  ;;  %v907_v52 = vld [vmem:[%s1178_s1 + $0x160] ss:$16 sps:$4 sm:$0xff]   ;;  %v909_v54 = vld [vmem:[%s1178_s1 + $0x144] ss:$16 sps:$4 sm:$0xff]   ;;  %v911_v55 = vld [vmem:[%s1178_s1 + $0x14c] ss:$16 sps:$4 sm:$0xff]  }
  0x1e   : > { %595 = vmatprep.subr.bf16.mxu0 %v861_v20  ;;  %636 = vmatprep.subr.bf16.mxu1 %v863_v21  ;;  %v913_v56 = vld [vmem:[%s1178_s1 + $0x140] ss:$16 sps:$4 sm:$0xff]   ;;  %v914_v57 = vld [vmem:[%s1178_s1 + $0x148] ss:$16 sps:$4 sm:$0xff]   ;;  %v915_v58 = vld [vmem:[%s1178_s1 + $0x124] ss:$16 sps:$4 sm:$0xff]  }
  0x1f   : > { %617 = vmatprep.mubr.bf16.mxu0 %v750_v47  ;;  %658 = vmatprep.mubr.bf16.mxu1 %v750_v47  ;;  %v917_v59 = vld [vmem:[%s1178_s1 + $0x12c] ss:$16 sps:$4 sm:$0xff]   ;;  %v919_v60 = vld [vmem:[%s1178_s1 + $0x120] ss:$16 sps:$4 sm:$0xff]   ;;  %v920_v61 = vld [vmem:[%s1178_s1 + $0x128] ss:$16 sps:$4 sm:$0xff]  }
  0x20   : > { %v921_v62 = vld [vmem:[%s1178_s1 + $0x104] ss:$16 sps:$4 sm:$0xff]   ;;  %v923_v63 = vld [vmem:[%s1178_s1 + $0x10c] ss:$16 sps:$4 sm:$0xff]   ;;  %v925_v0 = vld [vmem:[%s1178_s1 + $0x100] ss:$16 sps:$4 sm:$0xff]  }
  0x21   : > { %596 = vmatpush1.bf16.msra.mxu0 %v865_v22  ;;  %637 = vmatpush1.bf16.msra.mxu1 %v866_v23  ;;  %v926_v1 = vld [vmem:[%s1178_s1 + $0x108] ss:$16 sps:$4 sm:$0xff]   ;;  %v244_v7 = vsub.s32 1, %v239_v4  ;;  %v252_v8 = vsub.s32 3, %v239_v4  ;;  %v236_v9 = vld [vmem:[%s1179_s2] sm:$0xf] }
  0x22   : > { %597 = vmatprep.subr.bf16.mxu0 %v867_v24  ;;  %638 = vmatprep.subr.bf16.mxu1 %v869_v25  ;;  %v241_v10 = vrot.slane %v236_v9, %v240_v5  ;;  %v249_v11 = vrot.slane %v236_v9, %v248_v6  ;;  %s820_s23 = sshll.u32 %s1182_s13, 4 }
  0x23   : > { %v245_v12 = vrot.slane %v236_v9, %v244_v7  ;;  %v253_v13 = vrot.slane %v236_v9, %v252_v8  ;;  %s170_s26 = scalar_lea.vmem %s1180_s3, %s820_s23 }
  0x25   : > { %598 = vmatpush1.bf16.msra.mxu0 %v871_v26  ;;  %639 = vmatpush1.bf16.msra.mxu1 %v872_v27 }
  0x26   : > { %599 = vmatprep.subr.bf16.mxu0 %v873_v28  ;;  %640 = vmatprep.subr.bf16.mxu1 %v875_v29 }
  0x29   : > { %600 = vmatpush1.bf16.msra.mxu0 %v877_v30  ;;  %641 = vmatpush1.bf16.msra.mxu1 %v878_v31 }
  0x2a   : > { %601 = vmatprep.subr.bf16.mxu0 %v879_v32  ;;  %642 = vmatprep.subr.bf16.mxu1 %v881_v33 }
  0x2d   : > { %602 = vmatpush2.bf16.msra.mxu0 %v883_v34  ;;  %643 = vmatpush2.bf16.msra.mxu1 %v884_v35 }
  0x2e   : > { %603 = vmatprep.subr.bf16.mxu0 %v885_v36  ;;  %644 = vmatprep.subr.bf16.mxu1 %v887_v37 }
  0x31   : > { %604 = vmatpush2.bf16.msra.mxu0 %v889_v38  ;;  %645 = vmatpush2.bf16.msra.mxu1 %v890_v39 }
  0x32   : > { %605 = vmatprep.subr.bf16.mxu0 %v891_v40  ;;  %646 = vmatprep.subr.bf16.mxu1 %v893_v41 }
  0x35   : > { %606 = vmatpush2.bf16.msra.mxu0 %v895_v42  ;;  %647 = vmatpush2.bf16.msra.mxu1 %v896_v43 }
  0x36   : > { %607 = vmatprep.subr.bf16.mxu0 %v897_v44  ;;  %648 = vmatprep.subr.bf16.mxu1 %v899_v45 }
  0x39   : > { %608 = vmatpush2.bf16.msra.mxu0 %v901_v48  ;;  %649 = vmatpush2.bf16.msra.mxu1 %v902_v49 }
  0x3a   : > { %609 = vmatprep.subr.bf16.mxu0 %v903_v50  ;;  %650 = vmatprep.subr.bf16.mxu1 %v905_v51 }
  0x3d   : > { %610 = vmatpush2.bf16.msra.mxu0 %v907_v52  ;;  %651 = vmatpush2.bf16.msra.mxu1 %v908_v53 }
  0x3e   : > { %611 = vmatprep.subr.bf16.mxu0 %v909_v54  ;;  %652 = vmatprep.subr.bf16.mxu1 %v911_v55 }
  0x41   : > { %612 = vmatpush2.bf16.msra.mxu0 %v913_v56  ;;  %653 = vmatpush2.bf16.msra.mxu1 %v914_v57 }
  0x42   : > { %613 = vmatprep.subr.bf16.mxu0 %v915_v58  ;;  %654 = vmatprep.subr.bf16.mxu1 %v917_v59 }
  0x45   : > { %614 = vmatpush2.bf16.msra.mxu0 %v919_v60  ;;  %655 = vmatpush2.bf16.msra.mxu1 %v920_v61 }
  0x46   : > { %615 = vmatprep.subr.bf16.mxu0 %v921_v62  ;;  %656 = vmatprep.subr.bf16.mxu1 %v923_v63 }
  0x49   : > { %616 = vmatpush2.bf16.msra.mxu0 %v925_v0  ;;  %657 = vmatpush2.bf16.msra.mxu1 %v926_v1 }
  0x4c   : > { %618 = vmatmul.mubr.bf16.vlgmr.msra.gmra.mxu0 %v749_v2  ;;  %659 = vmatmul.mubr.bf16.vlgmr.msra.gmra.mxu1 %v749_v2 }
 0x10c   : > { %v619_v14 = vpop.f32.mrf.mxu0  ;;  %v660_v15 = vpop.f32.mrf.mxu1 }
 0x10d   : > { %v620_v18 = vadd.f32 %v619_v14, %v241_v10  ;;  %v661_v19 = vadd.f32 %v660_v15, %v249_v11 }
 0x10e   : > { %v621_v16 = vpop.f32.mrf.mxu0  ;;  %v662_v17 = vpop.f32.mrf.mxu1 }
 0x10f   : > { %v622_v20 = vadd.f32 %v621_v16, %v245_v12  ;;  %v663_v21 = vadd.f32 %v662_v17, %v253_v13 }
 0x110   : > { %v623_v22 = vpop.f32.mrf.mxu0  ;;  %v664_v23 = vpop.f32.mrf.mxu1 }
 0x111   : > { %v821_v24 = vpack.c.bf16 %v622_v20, %v620_v18  ;;  %v822_v25 = vpack.c.bf16 %v663_v21, %v661_v19 }
 0x112   : > { %v624_v26 = vpop.f32.mrf.mxu0  ;;  %v665_v27 = vpop.f32.mrf.mxu1 }
 0x113   : > { %683 = vst [vmem:[%s170_s26] sm:$0xff] %v821_v24  ;;  %684 = vst [vmem:[%s170_s26 + $0x8] sm:$0xff] %v822_v25 }
 0x114 PF: > { %s13_s12 = sadd.s32 1, %s935_s12  }
 0x115   : > { %p10_p4 = scmp.ge.s32.totalorder %s13_s12, 4  }
 0x117   :  { %12 = sbr.rel (!%p10_p4) target bundleno = 1 (0x1), region = 62 }

// kernel: tile.38
= control target key start
LH: loop header
LB: loop body
LE: loop exit
PB: predicated region body
PF: predicated region fallthrough
CT: control target
= control target key end

     0   :  { %s28_s0 = inlined_call_operand.vmem [shape: f32[16], index: 0, kind: input, shape index: {}]   ;;  %s29_s1 = inlined_call_operand.vmem [shape: f32[16,16], index: 1, kind: output, shape index: {}]  }
   0x1   :  { %v4_v0 = vld [vmem:[%s28_s0] ss:$0 sm:$0xff] }
   0x2   :  { %5 = vst [vmem:[%s29_s1] sm:$0xff] %v4_v0  ;;  %8 = vst [vmem:[%s29_s1 + $0x8] sm:$0xff] %v4_v0 }

// kernel: tile.39
= control target key start
LH: loop header
LB: loop body
LE: loop exit
PB: predicated region body
PF: predicated region fallthrough
CT: control target
= control target key end

     0   :  { %s7_s6 = smov 3  ;;  %s21_s9 = smov 3  ;;  %vm4_vm0 = vcmask 130048   ;;  %vm11_vm1 = vcmask 1048448   ;;  %vm18_vm2 = vcmask 917248   ;;  %vm25_vm3 = vcmask 786048   ;;  %s131_s0 = inlined_call_operand.vmem [shape: f32[16,16], index: 0, kind: input, shape index: {}]   ;;  %s132_s1 = inlined_call_operand.vmem [shape: f32[1,256], index: 1, kind: output, shape index: {}]  }
   0x1   :  { %v69_v0 = vld [vmem:[%s131_s0 + $0x7] ss:$8 sm:%s7_s6]   ;;  %s84_s10 = smov 112   ;;  %v71_v1 = vld [vmem:[%s131_s0 + $0x5] ss:$8 sm:%s21_s9]   ;;  %s14_s13 = smov 3 }
   0x2   :  { %9 = vrot.lane.b32.xlu0 %v69_v0, %s84_s10  ;;  %s85_s14 = smov 80   ;;  %v70_v2 = vld [vmem:[%s131_s0 + $0x6] ss:$8 sm:%s14_s13]   ;;  %s28_s17 = smov 3  ;;  %vm32_vm4 = vcmask 654848   ;;  %vm39_vm5 = vcmask 523648  }
   0x3   :  { %23 = vrot.lane.b32.xlu1 %v71_v1, %s85_s14  ;;  %v72_v3 = vld [vmem:[%s131_s0 + $0x4] ss:$8 sm:%s28_s17]   ;;  %s35_s20 = smov 3  ;;  %s42_s21 = smov 3  ;;  %vm46_vm6 = vcmask 392448   ;;  %vm53_vm7 = vcmask 261248  }
   0x4   :  { %s86_s22 = smov 96   ;;  %s87_s23 = smov 64   ;;  %v73_v4 = vld [vmem:[%s131_s0 + $0x3] ss:$8 sm:%s35_s20]   ;;  %v74_v5 = vld [vmem:[%s131_s0 + $0x2] ss:$8 sm:%s42_s21]  }
   0x5   :  { %s2_s26 = smov 3  ;;  %s49_s29 = smov 3 }
   0x6   :  { %16 = vrot.lane.b32.xlu0 %v70_v2, %s86_s22  ;;  %v3_v6 = vld [vmem:[%s131_s0] ss:$8 sm:%s2_s26]   ;;  %s88_s3 = smov 48   ;;  %s89_s4 = smov 32  }
   0x7   :  { %30 = vrot.lane.b32.xlu1 %v72_v3, %s87_s23  ;;  %5 = vst.msk [vmem:[#allocation0] ss:$8 sm:$0x3] %vm4_vm0, %v3_v6   ;;  %v75_v7 = vld [vmem:[%s131_s0 + $0x1] ss:$8 sm:%s49_s29]   ;;  %s90_s0 = smov 16  }
   0xa   :  { %37 = vrot.lane.b32.xlu0 %v73_v4, %s88_s3 }
   0xb   :  { %44 = vrot.lane.b32.xlu1 %v74_v5, %s89_s4 }
   0xe   :  { %51 = vrot.lane.b32.xlu0 %v75_v7, %s90_s0 }
  0x74   :  { %v10_v8 = vpop.permute.xlu0 %9  }
  0x75   :  { %12 = vst.msk [vmem:[#allocation0] ss:$8 sm:$0x3] %vm11_vm1, %v10_v8   ;;  %v24_v9 = vpop.permute.xlu1 %23  }
  0x78   :  { %v17_v10 = vpop.permute.xlu0 %16  }
  0x79   :  { %19 = vst.msk [vmem:[#allocation0] ss:$8 sm:$0x3] %vm18_vm2, %v17_v10   ;;  %v31_v11 = vpop.permute.xlu1 %30  }
  0x7a   :  { %26 = vst.msk [vmem:[#allocation0] ss:$8 sm:$0x3] %vm25_vm3, %v24_v9  }
  0x7b   :  { %33 = vst.msk [vmem:[#allocation0] ss:$8 sm:$0x3] %vm32_vm4, %v31_v11  }
  0x7c   :  { %v38_v12 = vpop.permute.xlu0 %37  }
  0x7d   :  { %40 = vst.msk [vmem:[#allocation0] ss:$8 sm:$0x3] %vm39_vm5, %v38_v12   ;;  %v45_v13 = vpop.permute.xlu1 %44  }
  0x7e   :  { %47 = vst.msk [vmem:[#allocation0] ss:$8 sm:$0x3] %vm46_vm6, %v45_v13  }
  0x80   :  { %v52_v14 = vpop.permute.xlu0 %51  }
  0x81   :  { %54 = vst.msk [vmem:[#allocation0] ss:$8 sm:$0x3] %vm53_vm7, %v52_v14  }
  0x88   :  { %v59_v15 = vld [vmem:[#allocation0] sm:$0x1]  ;;  %v64_v16 = vld [vmem:[#allocation0 + $0x8] sm:$0x1] }
  0x89   :  { %62 = vst [vmem:[%s132_s1] sm:$0x1] %v59_v15  ;;  %76 = vst [vmem:[%s132_s1 + $0x1] sm:$0x1] %v64_v16 }

// kernel: tile.49
= control target key start
LH: loop header
LB: loop body
LE: loop exit
PB: predicated region body
PF: predicated region fallthrough
CT: control target
= control target key end

     0   :  { %vm65_vm0 = vcmask 1043458   ;;  %s105_s6 = smov 3  ;;  %vm70_vm1 = vcmask 1045508   ;;  %vm75_vm2 = vcmask 1047558   ;;  %s108_s9 = smov 12  ;;  %vm4_vm3 = vcmask 1047556   ;;  %s1498_s0 = inlined_call_operand.vmem [shape: f32[16,16,16], index: 0, kind: input, shape index: {}]   ;;  %s1499_s1 = inlined_call_operand.vmem [shape: f32[16,256], index: 1, kind: output, shape index: {}]  }
   0x1   :  { %v726_v0 = vld [vmem:[%s1498_s0 + $0x87] ss:$16 sm:%s105_s6]   ;;  %s113_s10 = smov 48  ;;  %s118_s15 = smov 192  ;;  %vm6_vm4 = vcmask 130048   ;;  %vm79_vm5 = vcmask 1048448  }
   0x2   :  { %v727_v1 = vld [vmem:[%s1498_s0 + $0x87] ss:$16 sm:%s108_s9]   ;;  %s60_s16 = smov 3  ;;  %s63_s21 = smov 12  ;;  %vm170_vm6 = vcmask 917248   ;;  %vm261_vm7 = vcmask 786048  }
   0x3   :  { %v728_v2 = vld [vmem:[%s1498_s0 + $0x87] ss:$16 sm:%s113_s10]   ;;  %v111_v3 = vsel %vm65_vm0, %v727_v1, %v726_v0  ;;  %s68_s22 = smov 48  ;;  %s73_s27 = smov 192  ;;  %vm352_vm8 = vcmask 654848   ;;  %vm443_vm9 = vcmask 523648  }
   0x4   :  { %v729_v4 = vld [vmem:[%s1498_s0 + $0x87] ss:$16 sm:%s118_s15]   ;;  %v116_v6 = vsel %vm70_vm1, %v728_v2, %v111_v3  ;;  %s128_s28 = smov 3  ;;  %s131_s4 = smov 12  ;;  %vm534_vm10 = vcmask 392448   ;;  %vm625_vm11 = vcmask 261248  }
   0x5   :  { %v717_v5 = vld [vmem:[%s1498_s0 + $0x7] ss:$16 sm:%s60_s16]   ;;  %v121_v9 = vsel %vm75_vm2, %v729_v4, %v116_v6  ;;  %v731_v12 = vld [vmem:[%s1498_s0 + $0x8f] ss:$16 sm:%s128_s28]   ;;  %s136_s5 = smov 48  ;;  %s857_s6 = smov 112  }
   0x6   :  { %v718_v7 = vld [vmem:[%s1498_s0 + $0x7] ss:$16 sm:%s63_s21]   ;;  %122 = vrot.lane.b32.xlu1 %v121_v9, %s857_s6  ;;  %s141_s9 = smov 192  ;;  %s82_s10 = smov 3 }
   0x7   :  { %v719_v8 = vld [vmem:[%s1498_s0 + $0x7] ss:$16 sm:%s68_s22]   ;;  %v66_v10 = vsel %vm65_vm0, %v718_v7, %v717_v5  ;;  %v732_v14 = vld [vmem:[%s1498_s0 + $0x8f] ss:$16 sm:%s131_s4]   ;;  %s85_s15 = smov 12  ;;  %s90_s16 = smov 48 }
   0x8   :  { %v720_v11 = vld [vmem:[%s1498_s0 + $0x7] ss:$16 sm:%s73_s27]   ;;  %v71_v13 = vsel %vm70_vm1, %v719_v8, %v66_v10  ;;  %v134_v16 = vsel %vm65_vm0, %v732_v14, %v731_v12  ;;  %v733_v17 = vld [vmem:[%s1498_s0 + $0x8f] ss:$16 sm:%s136_s5]   ;;  %s95_s19 = smov 192  ;;  %s173_s24 = smov 3 }
   0x9   :  { %v76_v15 = vsel %vm75_vm2, %v720_v11, %v71_v13  ;;  %v734_v18 = vld [vmem:[%s1498_s0 + $0x8f] ss:$16 sm:%s141_s9]   ;;  %v139_v19 = vsel %vm70_vm1, %v733_v17, %v134_v16  ;;  %s176_s25 = smov 12  ;;  %s181_s28 = smov 48  ;;  %v740_v27 = vld [vmem:[%s1498_s0 + $0xe] ss:$16 sm:%s173_s24]  }
   0xa   :  { %77 = vrot.lane.b32.xlu0 %v76_v15, %s857_s6  ;;  %v721_v20 = vld [vmem:[%s1498_s0 + $0xf] ss:$16 sm:%s82_s10]   ;;  %v144_v21 = vsel %vm75_vm2, %v734_v18, %v139_v19  ;;  %s186_s29 = smov 192  ;;  %s151_s5 = smov 3 }
   0xb   :  { %v722_v22 = vld [vmem:[%s1498_s0 + $0xf] ss:$16 sm:%s85_s15]   ;;  %145 = vrot.lane.b32.xlu1 %v144_v21, %s857_s6  ;;  %s154_s7 = smov 12  ;;  %s159_s12 = smov 48 }
   0xc   :  { %v723_v23 = vld [vmem:[%s1498_s0 + $0xf] ss:$16 sm:%s90_s16]   ;;  %v88_v24 = vsel %vm65_vm0, %v722_v22, %v721_v20  ;;  %v741_v28 = vld [vmem:[%s1498_s0 + $0xe] ss:$16 sm:%s176_s25]   ;;  %s164_s13 = smov 192  ;;  %s219_s15 = smov 3 }
   0xd   :  { %v724_v25 = vld [vmem:[%s1498_s0 + $0xf] ss:$16 sm:%s95_s19]   ;;  %v93_v26 = vsel %vm70_vm1, %v723_v23, %v88_v24  ;;  %v179_v30 = vsel %vm65_vm0, %v741_v28, %v740_v27  ;;  %v742_v31 = vld [vmem:[%s1498_s0 + $0xe] ss:$16 sm:%s181_s28]   ;;  %s222_s16 = smov 12  ;;  %s227_s21 = smov 48 }
   0xe   :  { %v98_v29 = vsel %vm75_vm2, %v724_v25, %v93_v26  ;;  %v743_v32 = vld [vmem:[%s1498_s0 + $0xe] ss:$16 sm:%s186_s29]   ;;  %v184_v33 = vsel %vm70_vm1, %v742_v31, %v179_v30  ;;  %v736_v34 = vld [vmem:[%s1498_s0 + $0x6] ss:$16 sm:%s151_s5]   ;;  %s232_s22 = smov 192  ;;  %s858_s23 = smov 96  }
   0xf   :  { %99 = vrot.lane.b32.xlu0 %v98_v29, %s857_s6  ;;  %v189_v35 = vsel %vm75_vm2, %v743_v32, %v184_v33  ;;  %v737_v36 = vld [vmem:[%s1498_s0 + $0x6] ss:$16 sm:%s154_s7]   ;;  %s196_s26 = smov 3  ;;  %s199_s2 = smov 12 }
  0x10   :  { %v738_v37 = vld [vmem:[%s1498_s0 + $0x6] ss:$16 sm:%s159_s12]   ;;  %190 = vrot.lane.b32.xlu1 %v189_v35, %s858_s23  ;;  %v157_v38 = vsel %vm65_vm0, %v737_v36, %v736_v34  ;;  %s204_s3 = smov 48  ;;  %s209_s9 = smov 192 }
  0x11   :  { %v739_v39 = vld [vmem:[%s1498_s0 + $0x6] ss:$16 sm:%s164_s13]   ;;  %v162_v40 = vsel %vm70_vm1, %v738_v37, %v157_v38  ;;  %v750_v41 = vld [vmem:[%s1498_s0 + $0x8e] ss:$16 sm:%s219_s15]   ;;  %s264_s12 = smov 3  ;;  %s267_s13 = smov 12 }
  0x12   :  { %v751_v42 = vld [vmem:[%s1498_s0 + $0x8e] ss:$16 sm:%s222_s16]   ;;  %v167_v43 = vsel %vm75_vm2, %v739_v39, %v162_v40  ;;  %v745_v48 = vld [vmem:[%s1498_s0 + $0x86] ss:$16 sm:%s196_s26]   ;;  %s272_s17 = smov 48  ;;  %s277_s18 = smov 192 }
  0x13   :  { %v225_v44 = vsel %vm65_vm0, %v751_v42, %v750_v41  ;;  %v752_v45 = vld [vmem:[%s1498_s0 + $0x8e] ss:$16 sm:%s227_s21]   ;;  %168 = vrot.lane.b32.xlu0 %v167_v43, %s858_s23  ;;  %s242_s21 = smov 3  ;;  %s245_s27 = smov 12 }
  0x14   :  { %v753_v46 = vld [vmem:[%s1498_s0 + $0x8e] ss:$16 sm:%s232_s22]   ;;  %v230_v47 = vsel %vm70_vm1, %v752_v45, %v225_v44  ;;  %v746_v50 = vld [vmem:[%s1498_s0 + $0x86] ss:$16 sm:%s199_s2]   ;;  %s250_s28 = smov 48  ;;  %s255_s4 = smov 192 }
  0x15   :  { %v235_v49 = vsel %vm75_vm2, %v753_v46, %v230_v47  ;;  %v747_v51 = vld [vmem:[%s1498_s0 + $0x86] ss:$16 sm:%s204_s3]   ;;  %v202_v52 = vsel %vm65_vm0, %v746_v50, %v745_v48  ;;  %v759_v55 = vld [vmem:[%s1498_s0 + $0xd] ss:$16 sm:%s264_s12]   ;;  %s310_s7 = smov 3  ;;  %s313_s8 = smov 12 }
  0x16   :  { %236 = vrot.lane.b32.xlu1 %v235_v49, %s858_s23  ;;  %v748_v53 = vld [vmem:[%s1498_s0 + $0x86] ss:$16 sm:%s209_s9]   ;;  %v207_v54 = vsel %vm70_vm1, %v747_v51, %v202_v52  ;;  %s323_s6 = smov 192  ;;  %s859_s14 = smov 80  }
  0x17   :  { %v760_v56 = vld [vmem:[%s1498_s0 + $0xd] ss:$16 sm:%s267_s13]   ;;  %v212_v57 = vsel %vm75_vm2, %v748_v53, %v207_v54  ;;  %v755_v62 = vld [vmem:[%s1498_s0 + $0x5] ss:$16 sm:%s242_s21]   ;;  %s318_s13 = smov 48  ;;  %s290_s22 = smov 12 }
  0x18   :  { %v270_v58 = vsel %vm65_vm0, %v760_v56, %v759_v55  ;;  %v761_v59 = vld [vmem:[%s1498_s0 + $0xd] ss:$16 sm:%s272_s17]   ;;  %213 = vrot.lane.b32.xlu0 %v212_v57, %s858_s23  ;;  %s287_s17 = smov 3  ;;  %s295_s24 = smov 48 }
  0x19   :  { %v762_v60 = vld [vmem:[%s1498_s0 + $0xd] ss:$16 sm:%s277_s18]   ;;  %v275_v61 = vsel %vm70_vm1, %v761_v59, %v270_v58  ;;  %v756_v0 = vld [vmem:[%s1498_s0 + $0x5] ss:$16 sm:%s245_s27]   ;;  %s300_s29 = smov 192  ;;  %s355_s3 = smov 3 }
  0x1a   :  { %v280_v63 = vsel %vm75_vm2, %v762_v60, %v275_v61  ;;  %v757_v1 = vld [vmem:[%s1498_s0 + $0x5] ss:$16 sm:%s250_s28]   ;;  %v248_v2 = vsel %vm65_vm0, %v756_v0, %v755_v62  ;;  %v769_v5 = vld [vmem:[%s1498_s0 + $0x8d] ss:$16 sm:%s310_s7]   ;;  %s363_s9 = smov 48  ;;  %s368_s10 = smov 192 }
  0x1b   :  { %281 = vrot.lane.b32.xlu1 %v280_v63, %s859_s14  ;;  %v758_v3 = vld [vmem:[%s1498_s0 + $0x5] ss:$16 sm:%s255_s4]   ;;  %v253_v4 = vsel %vm70_vm1, %v757_v1, %v248_v2  ;;  %s358_s4 = smov 12  ;;  %s336_s18 = smov 12 }
  0x1c   :  { %v770_v6 = vld [vmem:[%s1498_s0 + $0x8d] ss:$16 sm:%s313_s8]   ;;  %v258_v7 = vsel %vm75_vm2, %v758_v3, %v253_v4  ;;  %v764_v12 = vld [vmem:[%s1498_s0 + $0x85] ss:$16 sm:%s287_s17]   ;;  %s341_s19 = smov 48  ;;  %s346_s25 = smov 192 }
  0x1d   :  { %v316_v8 = vsel %vm65_vm0, %v770_v6, %v769_v5  ;;  %v771_v9 = vld [vmem:[%s1498_s0 + $0x8d] ss:$16 sm:%s318_s13]   ;;  %259 = vrot.lane.b32.xlu0 %v258_v7, %s859_s14  ;;  %s333_s13 = smov 3  ;;  %s401_s27 = smov 3 }
  0x1e   :  { %v772_v10 = vld [vmem:[%s1498_s0 + $0x8d] ss:$16 sm:%s323_s6]   ;;  %v321_v11 = vsel %vm70_vm1, %v771_v9, %v316_v8  ;;  %v765_v14 = vld [vmem:[%s1498_s0 + $0x85] ss:$16 sm:%s290_s22]   ;;  %s404_s28 = smov 12  ;;  %s414_s23 = smov 192 }
  0x1f   :  { %v326_v13 = vsel %vm75_vm2, %v772_v10, %v321_v11  ;;  %v766_v15 = vld [vmem:[%s1498_s0 + $0x85] ss:$16 sm:%s295_s24]   ;;  %v293_v16 = vsel %vm65_vm0, %v765_v14, %v764_v12  ;;  %v778_v19 = vld [vmem:[%s1498_s0 + $0xc] ss:$16 sm:%s355_s3]   ;;  %s860_s5 = smov 64   ;;  %s381_s6 = smov 12 }
  0x20   :  { %327 = vrot.lane.b32.xlu1 %v326_v13, %s859_s14  ;;  %v767_v17 = vld [vmem:[%s1498_s0 + $0x85] ss:$16 sm:%s300_s29]   ;;  %v298_v18 = vsel %vm70_vm1, %v766_v15, %v293_v16  ;;  %s386_s15 = smov 48  ;;  %s391_s20 = smov 192 }
  0x21   :  { %v779_v20 = vld [vmem:[%s1498_s0 + $0xc] ss:$16 sm:%s358_s4]   ;;  %v303_v21 = vsel %vm75_vm2, %v767_v17, %v298_v18  ;;  %v774_v26 = vld [vmem:[%s1498_s0 + $0x4] ss:$16 sm:%s333_s13]   ;;  %s409_s4 = smov 48  ;;  %s446_s24 = smov 3 }
  0x22   :  { %v361_v22 = vsel %vm65_vm0, %v779_v20, %v778_v19  ;;  %v780_v23 = vld [vmem:[%s1498_s0 + $0xc] ss:$16 sm:%s363_s9]   ;;  %304 = vrot.lane.b32.xlu0 %v303_v21, %s859_s14  ;;  %s378_s9 = smov 3  ;;  %s454_s29 = smov 48 }
  0x23   :  { %v781_v24 = vld [vmem:[%s1498_s0 + $0xc] ss:$16 sm:%s368_s10]   ;;  %v366_v25 = vsel %vm70_vm1, %v780_v23, %v361_v22  ;;  %v775_v28 = vld [vmem:[%s1498_s0 + $0x4] ss:$16 sm:%s336_s18]   ;;  %s459_s30 = smov 192  ;;  %s427_s10 = smov 12 }
  0x24   :  { %v371_v27 = vsel %vm75_vm2, %v781_v24, %v366_v25  ;;  %v776_v29 = vld [vmem:[%s1498_s0 + $0x4] ss:$16 sm:%s341_s19]   ;;  %v339_v30 = vsel %vm65_vm0, %v775_v28, %v774_v26  ;;  %v788_v33 = vld [vmem:[%s1498_s0 + $0x8c] ss:$16 sm:%s401_s27]   ;;  %s432_s11 = smov 48  ;;  %s437_s16 = smov 192 }
  0x25   :  { %372 = vrot.lane.b32.xlu1 %v371_v27, %s860_s5  ;;  %v777_v31 = vld [vmem:[%s1498_s0 + $0x4] ss:$16 sm:%s346_s25]   ;;  %v344_v32 = vsel %vm70_vm1, %v776_v29, %v339_v30  ;;  %s449_s25 = smov 12  ;;  %s492_s18 = smov 3 }
  0x26   :  { %v789_v34 = vld [vmem:[%s1498_s0 + $0x8c] ss:$16 sm:%s404_s28]   ;;  %v349_v35 = vsel %vm75_vm2, %v777_v31, %v344_v32  ;;  %v783_v40 = vld [vmem:[%s1498_s0 + $0x84] ss:$16 sm:%s378_s9]   ;;  %s495_s19 = smov 12  ;;  %s505_s14 = smov 192 }
  0x27   :  { %v407_v36 = vsel %vm65_vm0, %v789_v34, %v788_v33  ;;  %v790_v37 = vld [vmem:[%s1498_s0 + $0x8c] ss:$16 sm:%s409_s4]   ;;  %350 = vrot.lane.b32.xlu0 %v349_v35, %s860_s5  ;;  %s424_s4 = smov 3  ;;  %s861_s26 = smov 48  }
  0x28   :  { %v791_v38 = vld [vmem:[%s1498_s0 + $0x8c] ss:$16 sm:%s414_s23]   ;;  %v412_v39 = vsel %vm70_vm1, %v790_v37, %v407_v36  ;;  %v784_v42 = vld [vmem:[%s1498_s0 + $0x84] ss:$16 sm:%s381_s6]   ;;  %s472_s23 = smov 12  ;;  %s477_s7 = smov 48 }
  0x29   :  { %v417_v41 = vsel %vm75_vm2, %v791_v38, %v412_v39  ;;  %v785_v43 = vld [vmem:[%s1498_s0 + $0x84] ss:$16 sm:%s386_s15]   ;;  %v384_v44 = vsel %vm65_vm0, %v784_v42, %v783_v40  ;;  %v797_v47 = vld [vmem:[%s1498_s0 + $0xb] ss:$16 sm:%s446_s24]   ;;  %s482_s12 = smov 192  ;;  %s537_s15 = smov 3 }
  0x2a   :  { %418 = vrot.lane.b32.xlu1 %v417_v41, %s860_s5  ;;  %v786_v45 = vld [vmem:[%s1498_s0 + $0x84] ss:$16 sm:%s391_s20]   ;;  %v389_v46 = vsel %vm70_vm1, %v785_v43, %v384_v44  ;;  %s545_s20 = smov 48  ;;  %s550_s21 = smov 192 }
  0x2b   :  { %v798_v48 = vld [vmem:[%s1498_s0 + $0xb] ss:$16 sm:%s449_s25]   ;;  %v394_v49 = vsel %vm75_vm2, %v786_v45, %v389_v46  ;;  %v793_v54 = vld [vmem:[%s1498_s0 + $0x3] ss:$16 sm:%s424_s4]   ;;  %s500_s25 = smov 48  ;;  %s523_s2 = smov 48 }
  0x2c   :  { %v452_v50 = vsel %vm65_vm0, %v798_v48, %v797_v47  ;;  %v799_v51 = vld [vmem:[%s1498_s0 + $0xb] ss:$16 sm:%s454_s29]   ;;  %395 = vrot.lane.b32.xlu0 %v394_v49, %s860_s5  ;;  %s469_s29 = smov 3  ;;  %s528_s8 = smov 192 }
  0x2d   :  { %v800_v52 = vld [vmem:[%s1498_s0 + $0xb] ss:$16 sm:%s459_s30]   ;;  %v457_v53 = vsel %vm70_vm1, %v799_v51, %v452_v50  ;;  %v794_v56 = vld [vmem:[%s1498_s0 + $0x3] ss:$16 sm:%s427_s10]   ;;  %s518_s30 = smov 12  ;;  %s583_s10 = smov 3 }
  0x2e   :  { %v462_v55 = vsel %vm75_vm2, %v800_v52, %v457_v53  ;;  %v795_v57 = vld [vmem:[%s1498_s0 + $0x3] ss:$16 sm:%s432_s11]   ;;  %v430_v58 = vsel %vm65_vm0, %v794_v56, %v793_v54  ;;  %v807_v61 = vld [vmem:[%s1498_s0 + $0x8b] ss:$16 sm:%s492_s18]   ;;  %s586_s11 = smov 12  ;;  %s596_s5 = smov 192 }
  0x2f   :  { %463 = vrot.lane.b32.xlu1 %v462_v55, %s861_s26  ;;  %v796_v59 = vld [vmem:[%s1498_s0 + $0x3] ss:$16 sm:%s437_s16]   ;;  %v435_v60 = vsel %vm70_vm1, %v795_v57, %v430_v58  ;;  %s540_s16 = smov 12  ;;  %s862_s17 = smov 32  }
  0x30   :  { %v808_v62 = vld [vmem:[%s1498_s0 + $0x8b] ss:$16 sm:%s495_s19]   ;;  %v440_v63 = vsel %vm75_vm2, %v796_v59, %v435_v60  ;;  %v802_v4 = vld [vmem:[%s1498_s0 + $0x83] ss:$16 sm:%s469_s29]   ;;  %s568_s27 = smov 48  ;;  %s573_s3 = smov 192 }
  0x31   :  { %v498_v0 = vsel %vm65_vm0, %v808_v62, %v807_v61  ;;  %v809_v1 = vld [vmem:[%s1498_s0 + $0x8b] ss:$16 sm:%s500_s25]   ;;  %441 = vrot.lane.b32.xlu0 %v440_v63, %s861_s26  ;;  %s515_s25 = smov 3  ;;  %s641_s13 = smov 192 }
  0x32   :  { %v810_v2 = vld [vmem:[%s1498_s0 + $0x8b] ss:$16 sm:%s505_s14]   ;;  %v503_v3 = vsel %vm70_vm1, %v809_v1, %v498_v0  ;;  %v803_v6 = vld [vmem:[%s1498_s0 + $0x83] ss:$16 sm:%s472_s23]   ;;  %s563_s14 = smov 12  ;;  %s609_s24 = smov 12 }
  0x33   :  { %v508_v5 = vsel %vm75_vm2, %v810_v2, %v503_v3  ;;  %v804_v7 = vld [vmem:[%s1498_s0 + $0x83] ss:$16 sm:%s477_s7]   ;;  %v475_v8 = vsel %vm65_vm0, %v803_v6, %v802_v4  ;;  %v816_v11 = vld [vmem:[%s1498_s0 + $0xa] ss:$16 sm:%s537_s15]   ;;  %s628_s7 = smov 3  ;;  %s677_s4 = smov 12 }
  0x34   :  { %509 = vrot.lane.b32.xlu1 %v508_v5, %s861_s26  ;;  %v805_v9 = vld [vmem:[%s1498_s0 + $0x83] ss:$16 sm:%s482_s12]   ;;  %v480_v10 = vsel %vm70_vm1, %v804_v7, %v475_v8  ;;  %s636_s12 = smov 48  ;;  %v2_v38 = vld [vmem:[%s1498_s0] ss:$8 sm:$0xf]  }
  0x35   :  { %v817_v12 = vld [vmem:[%s1498_s0 + $0xa] ss:$16 sm:%s540_s16]   ;;  %v485_v13 = vsel %vm75_vm2, %v805_v9, %v480_v10  ;;  %v812_v18 = vld [vmem:[%s1498_s0 + $0x2] ss:$16 sm:%s515_s25]   ;;  %s591_s16 = smov 48  ;;  %s614_s25 = smov 48 }
  0x36   :  { %v543_v14 = vsel %vm65_vm0, %v817_v12, %v816_v11  ;;  %v818_v15 = vld [vmem:[%s1498_s0 + $0xa] ss:$16 sm:%s545_s20]   ;;  %486 = vrot.lane.b32.xlu0 %v485_v13, %s861_s26  ;;  %s560_s20 = smov 3  ;;  %v3_v48 = vld [vmem:[%s1498_s0] ss:$8 sm:$0xf0]  }
  0x37   :  { %v819_v16 = vld [vmem:[%s1498_s0 + $0xa] ss:$16 sm:%s550_s21]   ;;  %v548_v17 = vsel %vm70_vm1, %v818_v15, %v543_v14  ;;  %v813_v20 = vld [vmem:[%s1498_s0 + $0x2] ss:$16 sm:%s518_s30]   ;;  %s619_s30 = smov 192  ;;  %v5_v52 = vsel %vm4_vm3, %v3_v48, %v2_v38  ;;  %s664_s26 = smov 192 }
  0x38   :  { %v553_v19 = vsel %vm75_vm2, %v819_v16, %v548_v17  ;;  %v814_v21 = vld [vmem:[%s1498_s0 + $0x2] ss:$16 sm:%s523_s2]   ;;  %v521_v22 = vsel %vm65_vm0, %v813_v20, %v812_v18  ;;  %v826_v25 = vld [vmem:[%s1498_s0 + $0x8a] ss:$16 sm:%s583_s10]   ;;  %s674_s2 = smov 3 }
  0x39   :  { %554 = vrot.lane.b32.xlu1 %v553_v19, %s862_s17  ;;  %v815_v23 = vld [vmem:[%s1498_s0 + $0x2] ss:$16 sm:%s528_s8]   ;;  %v526_v24 = vsel %vm70_vm1, %v814_v21, %v521_v22  ;;  %s631_s8 = smov 12  ;;  %7 = vst.msk [vmem:[%s1499_s1] ss:$8 sm:$0x3] %vm6_vm4, %v5_v52  }
  0x3a   :  { %v827_v26 = vld [vmem:[%s1498_s0 + $0x8a] ss:$16 sm:%s586_s11]   ;;  %v531_v27 = vsel %vm75_vm2, %v815_v23, %v526_v24  ;;  %v821_v32 = vld [vmem:[%s1498_s0 + $0x82] ss:$16 sm:%s560_s20]   ;;  %s682_s11 = smov 48 }
  0x3b   :  { %v589_v28 = vsel %vm65_vm0, %v827_v26, %v826_v25  ;;  %v828_v29 = vld [vmem:[%s1498_s0 + $0x8a] ss:$16 sm:%s591_s16]   ;;  %532 = vrot.lane.b32.xlu0 %v531_v27, %s862_s17  ;;  %s606_s16 = smov 3  ;;  %696 = vst.msk [vmem:[%s1499_s1 - $0xf] ss:$8 sm:$0xc] %vm6_vm4, %v5_v52  }
  0x3c   :  { %v829_v30 = vld [vmem:[%s1498_s0 + $0x8a] ss:$16 sm:%s596_s5]   ;;  %v594_v31 = vsel %vm70_vm1, %v828_v29, %v589_v28  ;;  %v822_v34 = vld [vmem:[%s1498_s0 + $0x82] ss:$16 sm:%s563_s14]  }
  0x3d   :  { %v599_v33 = vsel %vm75_vm2, %v829_v30, %v594_v31  ;;  %v823_v35 = vld [vmem:[%s1498_s0 + $0x82] ss:$16 sm:%s568_s27]   ;;  %v566_v36 = vsel %vm65_vm0, %v822_v34, %v821_v32  ;;  %v835_v40 = vld [vmem:[%s1498_s0 + $0x9] ss:$16 sm:%s628_s7]  }
  0x3e   :  { %600 = vrot.lane.b32.xlu1 %v599_v33, %s862_s17  ;;  %v824_v37 = vld [vmem:[%s1498_s0 + $0x82] ss:$16 sm:%s573_s3]   ;;  %v571_v39 = vsel %vm70_vm1, %v823_v35, %v566_v36  ;;  %697 = vst.msk [vmem:[%s1499_s1 - $0x1e] ss:$8 sm:$0x30] %vm6_vm4, %v5_v52   ;;  %s659_s3 = smov 48 }
  0x3f   :  { %v836_v41 = vld [vmem:[%s1498_s0 + $0x9] ss:$16 sm:%s631_s8]   ;;  %v576_v42 = vsel %vm75_vm2, %v824_v37, %v571_v39  ;;  %v831_v47 = vld [vmem:[%s1498_s0 + $0x1] ss:$16 sm:%s606_s16]   ;;  %s651_s16 = smov 3 }
  0x40   :  { %v634_v43 = vsel %vm65_vm0, %v836_v41, %v835_v40  ;;  %v837_v44 = vld [vmem:[%s1498_s0 + $0x9] ss:$16 sm:%s636_s12]   ;;  %577 = vrot.lane.b32.xlu0 %v576_v42, %s862_s17  ;;  %s687_s12 = smov 192  ;;  %698 = vst.msk [vmem:[%s1499_s1 - $0x2d] ss:$8 sm:$0xc0] %vm6_vm4, %v5_v52  }
  0x41   :  { %v838_v45 = vld [vmem:[%s1498_s0 + $0x9] ss:$16 sm:%s641_s13]   ;;  %v639_v46 = vsel %vm70_vm1, %v837_v44, %v634_v43  ;;  %v832_v50 = vld [vmem:[%s1498_s0 + $0x1] ss:$16 sm:%s609_s24]   ;;  %s863_s13 = smov 16   ;;  %s654_s17 = smov 12 }
  0x42   :  { %v644_v49 = vsel %vm75_vm2, %v838_v45, %v639_v46  ;;  %v833_v51 = vld [vmem:[%s1498_s0 + $0x1] ss:$16 sm:%s614_s25]   ;;  %v612_v53 = vsel %vm65_vm0, %v832_v50, %v831_v47  ;;  %v699_v55 = vld [vmem:[%s1498_s0 + $0x40] ss:$8 sm:$0xf]  }
  0x43   :  { %645 = vrot.lane.b32.xlu1 %v644_v49, %s863_s13  ;;  %v834_v54 = vld [vmem:[%s1498_s0 + $0x1] ss:$16 sm:%s619_s30]   ;;  %v617_v56 = vsel %vm70_vm1, %v833_v51, %v612_v53  ;;  %v700_v1 = vld [vmem:[%s1498_s0 + $0x40] ss:$8 sm:$0xf0]  }
  0x44   :  { %v845_v57 = vld [vmem:[%s1498_s0 + $0x89] ss:$16 sm:%s674_s2]   ;;  %v622_v59 = vsel %vm75_vm2, %v834_v54, %v617_v56  ;;  %v840_v0 = vld [vmem:[%s1498_s0 + $0x81] ss:$16 sm:%s651_s16]   ;;  %v19_v5 = vsel %vm4_vm3, %v700_v1, %v699_v55 }
  0x45   :  { %v846_v58 = vld [vmem:[%s1498_s0 + $0x89] ss:$16 sm:%s677_s4]   ;;  %623 = vrot.lane.b32.xlu0 %v622_v59, %s863_s13  ;;  %701 = vst.msk [vmem:[%s1499_s1 + $0x4] ss:$8 sm:$0x3] %vm6_vm4, %v19_v5  }
  0x46   :  { %v680_v60 = vsel %vm65_vm0, %v846_v58, %v845_v57  ;;  %v847_v61 = vld [vmem:[%s1498_s0 + $0x89] ss:$16 sm:%s682_s11]   ;;  %v841_v3 = vld [vmem:[%s1498_s0 + $0x81] ss:$16 sm:%s654_s17]  }
  0x47   :  { %v848_v62 = vld [vmem:[%s1498_s0 + $0x89] ss:$16 sm:%s687_s12]   ;;  %v685_v63 = vsel %vm70_vm1, %v847_v61, %v680_v60  ;;  %v842_v4 = vld [vmem:[%s1498_s0 + $0x81] ss:$16 sm:%s659_s3]   ;;  %v657_v6 = vsel %vm65_vm0, %v841_v3, %v840_v0 }
  0x48   :  { %v690_v2 = vsel %vm75_vm2, %v848_v62, %v685_v63  ;;  %v843_v7 = vld [vmem:[%s1498_s0 + $0x81] ss:$16 sm:%s664_s26]   ;;  %702 = vst.msk [vmem:[%s1499_s1 - $0xb] ss:$8 sm:$0xc] %vm6_vm4, %v19_v5   ;;  %v662_v9 = vsel %vm70_vm1, %v842_v4, %v657_v6 }
  0x49   :  { %691 = vrot.lane.b32.xlu1 %v690_v2, %s863_s13  ;;  %703 = vst.msk [vmem:[%s1499_s1 - $0x1a] ss:$8 sm:$0x30] %vm6_vm4, %v19_v5   ;;  %704 = vst.msk [vmem:[%s1499_s1 - $0x29] ss:$8 sm:$0xc0] %vm6_vm4, %v19_v5   ;;  %v667_v12 = vsel %vm75_vm2, %v843_v7, %v662_v9 }
  0x4a   :  { %v705_v8 = vld [vmem:[%s1498_s0 + $0x80] ss:$8 sm:$0xf]   ;;  %668 = vrot.lane.b32.xlu0 %v667_v12, %s863_s13 }
  0x4b   :  { %v706_v10 = vld [vmem:[%s1498_s0 + $0x80] ss:$8 sm:$0xf0]  }
  0x4c   :  { %v711_v11 = vld [vmem:[%s1498_s0 + $0xc0] ss:$8 sm:$0xf]   ;;  %v34_v13 = vsel %vm4_vm3, %v706_v10, %v705_v8 }
  0x4d   :  { %v712_v14 = vld [vmem:[%s1498_s0 + $0xc0] ss:$8 sm:$0xf0]   ;;  %707 = vst.msk [vmem:[%s1499_s1 + $0x10] ss:$8 sm:$0x3] %vm6_vm4, %v34_v13  }
  0x4e   :  { %708 = vst.msk [vmem:[%s1499_s1 + $0x1] ss:$8 sm:$0xc] %vm6_vm4, %v34_v13   ;;  %709 = vst.msk [vmem:[%s1499_s1 - $0xe] ss:$8 sm:$0x30] %vm6_vm4, %v34_v13   ;;  %v49_v15 = vsel %vm4_vm3, %v712_v14, %v711_v11 }
  0x4f   :  { %710 = vst.msk [vmem:[%s1499_s1 - $0x1d] ss:$8 sm:$0xc0] %vm6_vm4, %v34_v13   ;;  %713 = vst.msk [vmem:[%s1499_s1 + $0x14] ss:$8 sm:$0x3] %vm6_vm4, %v49_v15  }
  0x50   :  { %714 = vst.msk [vmem:[%s1499_s1 + $0x5] ss:$8 sm:$0xc] %vm6_vm4, %v49_v15   ;;  %715 = vst.msk [vmem:[%s1499_s1 - $0xa] ss:$8 sm:$0x30] %vm6_vm4, %v49_v15  }
  0x51   :  { %716 = vst.msk [vmem:[%s1499_s1 - $0x19] ss:$8 sm:$0xc0] %vm6_vm4, %v49_v15  }
  0x78   :  { %v123_v16 = vpop.permute.xlu1 %122  }
  0x79   :  { %730 = vst.msk [vmem:[%s1499_s1 + $0x10] sm:$0xff] %vm79_vm5, %v123_v16  }
  0x7c   :  { %v78_v17 = vpop.permute.xlu0 %77  }
  0x7d   :  { %80 = vst.msk [vmem:[%s1499_s1] sm:$0xff] %vm79_vm5, %v78_v17   ;;  %v146_v18 = vpop.permute.xlu1 %145  }
  0x7e   :  { %735 = vst.msk [vmem:[%s1499_s1 + $0x18] sm:$0xff] %vm79_vm5, %v146_v18  }
  0x81   :  { %v100_v19 = vpop.permute.xlu0 %99  }
  0x82   :  { %725 = vst.msk [vmem:[%s1499_s1 + $0x8] sm:$0xff] %vm79_vm5, %v100_v19   ;;  %v191_v20 = vpop.permute.xlu1 %190  }
  0x83   :  { %744 = vst.msk [vmem:[%s1499_s1 + $0x8] sm:$0xff] %vm170_vm6, %v191_v20  }
  0x85   :  { %v169_v21 = vpop.permute.xlu0 %168  }
  0x86   :  { %171 = vst.msk [vmem:[%s1499_s1] sm:$0xff] %vm170_vm6, %v169_v21  }
  0x88   :  { %v237_v22 = vpop.permute.xlu1 %236  }
  0x89   :  { %754 = vst.msk [vmem:[%s1499_s1 + $0x18] sm:$0xff] %vm170_vm6, %v237_v22  }
  0x8a   :  { %v214_v23 = vpop.permute.xlu0 %213  }
  0x8b   :  { %749 = vst.msk [vmem:[%s1499_s1 + $0x10] sm:$0xff] %vm170_vm6, %v214_v23  }
  0x8d   :  { %v282_v24 = vpop.permute.xlu1 %281  }
  0x8e   :  { %763 = vst.msk [vmem:[%s1499_s1 + $0x8] sm:$0xff] %vm261_vm7, %v282_v24  }
  0x8f   :  { %v260_v25 = vpop.permute.xlu0 %259  }
  0x90   :  { %262 = vst.msk [vmem:[%s1499_s1] sm:$0xff] %vm261_vm7, %v260_v25  }
  0x92   :  { %v328_v26 = vpop.permute.xlu1 %327  }
  0x93   :  { %773 = vst.msk [vmem:[%s1499_s1 + $0x18] sm:$0xff] %vm261_vm7, %v328_v26  }
  0x94   :  { %v305_v27 = vpop.permute.xlu0 %304  }
  0x95   :  { %768 = vst.msk [vmem:[%s1499_s1 + $0x10] sm:$0xff] %vm261_vm7, %v305_v27  }
  0x97   :  { %v373_v28 = vpop.permute.xlu1 %372  }
  0x98   :  { %782 = vst.msk [vmem:[%s1499_s1 + $0x8] sm:$0xff] %vm352_vm8, %v373_v28  }
  0x99   :  { %v351_v29 = vpop.permute.xlu0 %350  }
  0x9a   :  { %353 = vst.msk [vmem:[%s1499_s1] sm:$0xff] %vm352_vm8, %v351_v29  }
  0x9c   :  { %v419_v30 = vpop.permute.xlu1 %418  }
  0x9d   :  { %792 = vst.msk [vmem:[%s1499_s1 + $0x18] sm:$0xff] %vm352_vm8, %v419_v30  }
  0x9e   :  { %v396_v31 = vpop.permute.xlu0 %395  }
  0x9f   :  { %787 = vst.msk [vmem:[%s1499_s1 + $0x10] sm:$0xff] %vm352_vm8, %v396_v31  }
  0xa1   :  { %v464_v32 = vpop.permute.xlu1 %463  }
  0xa2   :  { %801 = vst.msk [vmem:[%s1499_s1 + $0x8] sm:$0xff] %vm443_vm9, %v464_v32  }
  0xa3   :  { %v442_v33 = vpop.permute.xlu0 %441  }
  0xa4   :  { %444 = vst.msk [vmem:[%s1499_s1] sm:$0xff] %vm443_vm9, %v442_v33  }
  0xa6   :  { %v510_v34 = vpop.permute.xlu1 %509  }
  0xa7   :  { %811 = vst.msk [vmem:[%s1499_s1 + $0x18] sm:$0xff] %vm443_vm9, %v510_v34  }
  0xa8   :  { %v487_v35 = vpop.permute.xlu0 %486  }
  0xa9   :  { %806 = vst.msk [vmem:[%s1499_s1 + $0x10] sm:$0xff] %vm443_vm9, %v487_v35  }
  0xab   :  { %v555_v36 = vpop.permute.xlu1 %554  }
  0xac   :  { %820 = vst.msk [vmem:[%s1499_s1 + $0x8] sm:$0xff] %vm534_vm10, %v555_v36  }
  0xad   :  { %v533_v37 = vpop.permute.xlu0 %532  }
  0xae   :  { %535 = vst.msk [vmem:[%s1499_s1] sm:$0xff] %vm534_vm10, %v533_v37  }
  0xb0   :  { %v601_v38 = vpop.permute.xlu1 %600  }
  0xb1   :  { %830 = vst.msk [vmem:[%s1499_s1 + $0x18] sm:$0xff] %vm534_vm10, %v601_v38  }
  0xb2   :  { %v578_v39 = vpop.permute.xlu0 %577  }
  0xb3   :  { %825 = vst.msk [vmem:[%s1499_s1 + $0x10] sm:$0xff] %vm534_vm10, %v578_v39  }
  0xb5   :  { %v646_v40 = vpop.permute.xlu1 %645  }
  0xb6   :  { %839 = vst.msk [vmem:[%s1499_s1 + $0x8] sm:$0xff] %vm625_vm11, %v646_v40  }
  0xb7   :  { %v624_v41 = vpop.permute.xlu0 %623  }
  0xb8   :  { %626 = vst.msk [vmem:[%s1499_s1] sm:$0xff] %vm625_vm11, %v624_v41  }
  0xbb   :  { %v692_v42 = vpop.permute.xlu1 %691  }
  0xbc   :  { %849 = vst.msk [vmem:[%s1499_s1 + $0x18] sm:$0xff] %vm625_vm11, %v692_v42   ;;  %v669_v43 = vpop.permute.xlu0 %668  }
  0xbd   :  { %844 = vst.msk [vmem:[%s1499_s1 + $0x10] sm:$0xff] %vm625_vm11, %v669_v43  }

// kernel: up_forward.7
= control target key start
LH: loop header
LB: loop body
LE: loop exit
PB: predicated region body
PF: predicated region fallthrough
CT: control target
= control target key end

     0   :  { %s487_s15 = smov 0   ;;  %s537_s0 = inlined_call_operand.vmem [shape: bf16[32,256], index: 0, kind: input, shape index: {}]   ;;  %s538_s1 = inlined_call_operand.vmem [shape: f32[2,2,16], index: 1, kind: input, shape index: {}]   ;;  %s539_s2 = inlined_call_operand.vmem [shape: f32[2,16], index: 2, kind: input, shape index: {}]   ;;  %s540_s3 = inlined_call_operand.vmem [shape: f32[16,256], index: 3, kind: input, shape index: {}]   ;;  %s541_s4 = inlined_call_operand.vmem [shape: bf16[32,256], index: 4, kind: output, shape index: {}]  }
   0x1 LB: > { %s422_s16 = sadd.s32 4294967295, %s459_s15   ;;  %p426_p0 = scmp.ge.s32.totalorder %s459_s15, 1  ;;  %s459_s15 = sphi %s487_s15, %s14_s15  }
   0x2   : > { %p164_p1 = scmp.lt.s32.totalorder %s459_s15, 3 }
   0x4   : > { %p165_p2 = pnand %p426_p0, %p164_p1 }
   0x5   : > { %s427_s7 = sshll.u32 (!%p165_p2), %s422_s16, 1 }
   0x6   : > { %168 = sbr.rel (%p165_p2) target bundleno = 260 (0x104), region = 36  ;;  %p193_p3 = scmp.lt.s32.totalorder (!%p165_p2), %s427_s7, 3 }
   0xb   : > { %v213_v0 = vld [vmem:[%s540_s3 + $0x18] sm:$0xff]  ;;  %v212_v1 = vld [vmem:[%s540_s3 + $0x10] sm:$0xff]  ;;  %v211_v2 = vld [vmem:[%s540_s3 + $0x8] sm:$0xff]  ;;  %vm214_vm0 = vcmask 123904   ;;  %v461_v4 = vmov 0.0   ;;  %vm239_vm1 = vcmask 1040384   ;;  %v322_v26 = vlaneseq }
   0xc   : > { %273 = vmatprep.subr.mxu0 %v213_v0  ;;  %v210_v3 = vld [vmem:[%s540_s3] sm:$0xff]  ;;  %309 = vmatprep.mubr.f32.mxu0 %v461_v4  ;;  %vm241_vm2 = vcmask 130048   ;;  %s543_s7 = smov (!%p193_p3, %s427_s7), 3 }
   0xd   : > { %v206_v5 = vld [vmem:[%s538_s1] sm:$0x3]  ;;  %v207_v6 = vld [vmem:[%s538_s1 + $0x2] sm:$0x3]  ;;  %274 = vmatpush1.msra.mxu0 %v212_v1  ;;  %s438_s8 = sshll.u32 %s543_s7, 3  ;;  %v323_v27 = vshrl.u32 %v322_v26, 7 }
   0xe   : > { %v215_v7 = vsel %vm214_vm0, %v206_v5, 0.0  ;;  %v216_v8 = vsel %vm214_vm0, %v207_v6, 0.0  ;;  %275 = vmatprep.subr.mxu0 %v211_v2  ;;  %v208_v16 = vld [vmem:[%s539_s2] sm:$0x1]  ;;  %v209_v21 = vld [vmem:[%s539_s2 + $0x1] sm:$0x1]  ;;  %s197_s11 = scalar_lea.vmem %s537_s0, %s438_s8  ;;  %s204_s14 = scalar_lea.vmem %s541_s4, %s438_s8 }
   0xf   : > { %v217_v9 = vadd.f32 %v216_v8, %v215_v7  ;;  %276 = vmatpush1.msra.mxu0 %v210_v3  ;;  %v228_v17 = vrot.slane %v208_v16, 7  ;;  %v316_v28 = vld [vmem:[%s197_s11] sm:$0xff]  ;;  %v317_v29 = vld [vmem:[%s197_s11 + $0x8] sm:$0xff]  ;;  %v324_v30 = vsub.s32 0, %v323_v27  ;;  %v336_v33 = vsub.s32 1, %v323_v27 }
  0x10   : > { %v318_v31 = vunpack.c.l.bf16 %v316_v28  ;;  %v320_v32 = vunpack.c.l.bf16 %v317_v29  ;;  %v319_v36 = vunpack.c.h.bf16 %v316_v28  ;;  %v321_v37 = vunpack.c.h.bf16 %v317_v29 }
  0x11   : > { %v218_v10 = vmul.f32 0.001953125, %v217_v9 }
  0x13   : > { %v219_v11 = vmul.f32 %v218_v10, %v218_v10 }
  0x15   : > { %v221_v12 = vrot.slane %v219_v11, 7 }
  0x17   : > { %v223_v13 = vsub.f32 %v218_v10, %v221_v12 }
  0x19   : > { %v224_v14 = vmax.f32 %v223_v13, 0.0 }
  0x1b   : > { %v225_v15 = vadd.f32 1e-05, %v224_v14 }
  0x1d   : > { %451 = vrsqrt.f32 %v225_v15 }
  0x2a   : > { %v452_v18 = vpop.eup %451 }
  0x2b   : > { %v230_v19 = vmul.f32 %v452_v18, %v228_v17 }
  0x2d   : > { %v232_v20 = vrot.slane %v230_v19, 1 }
  0x2f   : > { %v234_v22 = vmul.f32 %v232_v20, %v218_v10 }
  0x31   : > { %v235_v23 = vsub.f32 %v209_v21, %v234_v22 }
  0x33   : > { %v237_v24 = vrot.slane %v235_v23, 7 }
  0x35   : > { %v240_v25 = vsel %vm239_vm1, %v232_v20, %v237_v24 }
  0x36   : > { %433 = vmatmul.mubr.msk.f32.vlgmr.msra.gmra.mxu0 %vm241_vm2, %v240_v25 }
  0xf6   : > { %v311_v34 = vpop.f32.mrf.mxu0 }
  0xf7   : > { %v325_v35 = vrot.slane %v311_v34, %v324_v30  ;;  %v337_v41 = vrot.slane %v311_v34, %v336_v33 }
  0xf8   : > { %v313_v38 = vpop.f32.mrf.mxu0 }
  0xf9   : > { %v330_v39 = vmul.f32 %v325_v35, %v318_v31  ;;  %v332_v40 = vmul.f32 %v325_v35, %v320_v32  ;;  %v329_v42 = vrot.slane %v313_v38, %v324_v30  ;;  %v341_v43 = vrot.slane %v313_v38, %v336_v33 }
  0xfb   : > { %v342_v44 = vadd.f32 %v337_v41, %v330_v39  ;;  %v344_v45 = vadd.f32 %v337_v41, %v332_v40  ;;  %v331_v46 = vmul.f32 %v329_v42, %v319_v36  ;;  %v333_v47 = vmul.f32 %v329_v42, %v321_v37 }
  0xfd   : > { %v343_v48 = vadd.f32 %v341_v43, %v331_v46  ;;  %v345_v49 = vadd.f32 %v341_v43, %v333_v47  ;;  %v346_v50 = vmax.f32 %v342_v44, 0.0  ;;  %v348_v51 = vmax.f32 %v344_v45, 0.0 }
  0xff   : > { %v347_v52 = vmax.f32 %v343_v48, 0.0  ;;  %v349_v53 = vmax.f32 %v345_v49, 0.0 }
 0x101   : > { %v440_v54 = vpack.c.bf16 %v347_v52, %v346_v50  ;;  %v441_v55 = vpack.c.bf16 %v349_v53, %v348_v51 }
 0x103   : > { %362 = vst [vmem:[%s204_s14] sm:$0xff] %v440_v54  ;;  %363 = vst [vmem:[%s204_s14 + $0x8] sm:$0xff] %v441_v55 }
 0x104 PF: > { %s14_s15 = sadd.s32 1, %s459_s15  }
 0x105   : > { %p11_p4 = scmp.ge.s32.totalorder %s14_s15, 4  }
 0x107   :  { %13 = sbr.rel (!%p11_p4) target bundleno = 1 (0x1), region = 66 }

// kernel: up_forward.6
= control target key start
LH: loop header
LB: loop body
LE: loop exit
PB: predicated region body
PF: predicated region fallthrough
CT: control target
= control target key end

     0   :  { %s3083_s21 = smov 0   ;;  %s4011_s0 = inlined_call_operand.vmem [shape: bf16[2,16,256], index: 0, kind: input, shape index: {}]   ;;  %s4012_s1 = inlined_call_operand.vmem [shape: bf16[2,16,256], index: 1, kind: input, shape index: {}]   ;;  %s4013_s2 = inlined_call_operand.vmem [shape: bf16[1728,256], index: 2, kind: input, shape index: {}]   ;;  %s4014_s3 = inlined_call_operand.vmem [shape: f32[1,256], index: 3, kind: input, shape index: {}]   ;;  %s4015_s4 = inlined_call_operand.vmem [shape: f32[256,16], index: 4, kind: input, shape index: {}]   ;;  %s4016_s5 = inlined_call_operand.vmem [shape: bf16[2,16,256], index: 5, kind: output, shape index: {0}]   ;;  %s4017_s6 = inlined_call_operand.vmem [shape: f32[2,2,16], index: 6, kind: output, shape index: {1}]  }
   0x1 LB: > { %s2417_s22 = sadd.s32 4294967295, %s3042_s21   ;;  %p2421_p0 = scmp.ge.s32.totalorder %s3042_s21, 1  ;;  %s3042_s21 = sphi %s3083_s21, %s17_s21  }
   0x2   : > { %p225_p1 = scmp.lt.s32.totalorder %s3042_s21, 3 }
   0x4   : > { %p226_p2 = pnand %p2421_p0, %p225_p1 }
   0x5   : > { %p264_p3 = scmp.lt.s32.totalorder (!%p226_p2), %s2417_s22, 1  ;;  %s3044_s18 = smov (!%p226_p2), 16  }
   0x6   : > { %229 = sbr.rel (%p226_p2) target bundleno = 814 (0x32e), region = 40  ;;  %s3045_s19 = smov (!%p226_p2), 32  }
   0x7   : > { %s3046_s30 = smov (!%p226_p2), 64   ;;  %s3047_s14 = smov (!%p226_p2), 96  }
   0xb   : > { %v2712_v0 = vld [vmem:[%s4013_s2 + $0x74] ss:$8 sps:$4 sm:$0xff]   ;;  %v2714_v1 = vld [vmem:[%s4013_s2 + $0x70] ss:$8 sps:$4 sm:$0xff]   ;;  %s4021_s22 = smov (!%p264_p3, %s2417_s22), 1  ;;  %vm298_vm0 = vcmask 130048  }
   0xc   : > { %1865 = vmatprep.subr.bf16.mxu0 %v2712_v0  ;;  %v2715_v2 = vld [vmem:[%s4013_s2 + $0x64] ss:$8 sps:$4 sm:$0xff]   ;;  %v2717_v3 = vld [vmem:[%s4013_s2 + $0x60] ss:$8 sps:$4 sm:$0xff]   ;;  %s3106_s7 = sshll.u32 %s4021_s22, 4  ;;  %vm331_vm1 = vcmask 1040384  }
   0xd   : > { %1866 = vmatpush1.bf16.msra.mxu0 %v2714_v1  ;;  %v2718_v4 = vld [vmem:[%s4013_s2 + $0x54] ss:$8 sps:$4 sm:$0xff]   ;;  %s268_s12 = scalar_lea.vmem %s4011_s0, %s3106_s7  ;;  %s273_s15 = scalar_lea.vmem %s4012_s1, %s3106_s7  ;;  %v2720_v6 = vld [vmem:[%s4013_s2 + $0x50] ss:$8 sps:$4 sm:$0xff]   ;;  %v2721_v9 = vld [vmem:[%s4013_s2 + $0x44] ss:$8 sps:$4 sm:$0xff]  }
   0xe   : > { %1867 = vmatprep.subr.bf16.mxu0 %v2715_v2  ;;  %v2706_v5 = vld [vmem:[%s268_s12] ss:$8 sps:$4 sm:$0xff]   ;;  %v2708_v7 = vld [vmem:[%s268_s12 + $0x4] ss:$8 sps:$4 sm:$0xff]   ;;  %v2724_v12 = vld [vmem:[%s4013_s2 + $0x34] ss:$8 sps:$4 sm:$0xff]  }
   0xf   : > { %294 = vrot.lane.b32.xlu0 %v2706_v5, %s3044_s18  ;;  %v2709_v8 = vld [vmem:[%s273_s15] ss:$8 sps:$4 sm:$0xff]   ;;  %v2711_v10 = vld [vmem:[%s273_s15 + $0x4] ss:$8 sps:$4 sm:$0xff]   ;;  %v2726_v13 = vld [vmem:[%s4013_s2 + $0x30] ss:$8 sps:$4 sm:$0xff]  }
  0x10   : > { %350 = vrot.lane.b32.xlu1 %v2709_v8, %s3044_s18  ;;  %v2723_v11 = vld [vmem:[%s4013_s2 + $0x40] ss:$8 sps:$4 sm:$0xff]   ;;  %v2727_v14 = vld [vmem:[%s4013_s2 + $0x24] ss:$8 sps:$4 sm:$0xff]   ;;  %v2730_v16 = vld [vmem:[%s4013_s2 + $0x14] ss:$8 sps:$4 sm:$0xff]  }
  0x11   : > { %1868 = vmatpush1.bf16.msra.mxu0 %v2717_v3  ;;  %v2729_v15 = vld [vmem:[%s4013_s2 + $0x20] ss:$8 sps:$4 sm:$0xff]   ;;  %v2732_v17 = vld [vmem:[%s4013_s2 + $0x10] ss:$8 sps:$4 sm:$0xff]   ;;  %v2733_v18 = vld [vmem:[%s4013_s2 + $0x4] ss:$8 sps:$4 sm:$0xff]  }
  0x12   : > { %1869 = vmatprep.subr.bf16.mxu0 %v2718_v4  ;;  %v2735_v19 = vld [vmem:[%s4013_s2] ss:$8 sps:$4 sm:$0xff]   ;;  %v2736_v20 = vld [vmem:[%s4013_s2 + $0xf4] ss:$8 sps:$4 sm:$0xff]   ;;  %v2762_v22 = vld [vmem:[%s4013_s2 + $0x170] ss:$8 sps:$4 sm:$0xff]  }
  0x13   : > { %296 = vrot.lane.b32.xlu0 %v2708_v7, %s3044_s18  ;;  %v2760_v21 = vld [vmem:[%s4013_s2 + $0x174] ss:$8 sps:$4 sm:$0xff]   ;;  %v2763_v23 = vld [vmem:[%s4013_s2 + $0x164] ss:$8 sps:$4 sm:$0xff]   ;;  %v2738_v24 = vld [vmem:[%s4013_s2 + $0xf0] ss:$8 sps:$4 sm:$0xff]  }
  0x14   : > { %352 = vrot.lane.b32.xlu1 %v2711_v10, %s3044_s18  ;;  %v2739_v25 = vld [vmem:[%s4013_s2 + $0xe4] ss:$8 sps:$4 sm:$0xff]   ;;  %1908 = vmatprep.subr.bf16.mxu1 %v2760_v21  ;;  %v2768_v26 = vld [vmem:[%s4013_s2 + $0x160] ss:$8 sps:$4 sm:$0xff]   ;;  %v2769_v27 = vld [vmem:[%s4013_s2 + $0x154] ss:$8 sps:$4 sm:$0xff]  }
  0x15   : > { %1870 = vmatpush1.bf16.msra.mxu0 %v2720_v6  ;;  %1909 = vmatpush1.bf16.msra.mxu1 %v2762_v22  ;;  %v2741_v28 = vld [vmem:[%s4013_s2 + $0xe0] ss:$8 sps:$4 sm:$0xff]   ;;  %v2742_v29 = vld [vmem:[%s4013_s2 + $0xd4] ss:$8 sps:$4 sm:$0xff]   ;;  %v2774_v30 = vld [vmem:[%s4013_s2 + $0x150] ss:$8 sps:$4 sm:$0xff]  }
  0x16   : > { %1871 = vmatprep.subr.bf16.mxu0 %v2721_v9  ;;  %1910 = vmatprep.subr.bf16.mxu1 %v2763_v23  ;;  %v2775_v31 = vld [vmem:[%s4013_s2 + $0x144] ss:$8 sps:$4 sm:$0xff]   ;;  %v2744_v32 = vld [vmem:[%s4013_s2 + $0xd0] ss:$8 sps:$4 sm:$0xff]   ;;  %v2780_v34 = vld [vmem:[%s4013_s2 + $0x140] ss:$8 sps:$4 sm:$0xff]  }
  0x17   : > { %v2745_v33 = vld [vmem:[%s4013_s2 + $0xc4] ss:$8 sps:$4 sm:$0xff]   ;;  %v2781_v35 = vld [vmem:[%s4013_s2 + $0x134] ss:$8 sps:$4 sm:$0xff]   ;;  %v2747_v36 = vld [vmem:[%s4013_s2 + $0xc0] ss:$8 sps:$4 sm:$0xff]  }
  0x18   : > { %v2748_v37 = vld [vmem:[%s4013_s2 + $0xb4] ss:$8 sps:$4 sm:$0xff]   ;;  %v2786_v38 = vld [vmem:[%s4013_s2 + $0x130] ss:$8 sps:$4 sm:$0xff]   ;;  %v2787_v39 = vld [vmem:[%s4013_s2 + $0x124] ss:$8 sps:$4 sm:$0xff]  }
  0x19   : > { %1872 = vmatpush1.bf16.msra.mxu0 %v2723_v11  ;;  %1911 = vmatpush1.bf16.msra.mxu1 %v2768_v26  ;;  %v2750_v40 = vld [vmem:[%s4013_s2 + $0xb0] ss:$8 sps:$4 sm:$0xff]   ;;  %v2751_v41 = vld [vmem:[%s4013_s2 + $0xa4] ss:$8 sps:$4 sm:$0xff]   ;;  %v2792_v42 = vld [vmem:[%s4013_s2 + $0x120] ss:$8 sps:$4 sm:$0xff]  }
  0x1a   : > { %1873 = vmatprep.subr.bf16.mxu0 %v2724_v12  ;;  %1912 = vmatprep.subr.bf16.mxu1 %v2769_v27  ;;  %v2793_v43 = vld [vmem:[%s4013_s2 + $0x114] ss:$8 sps:$4 sm:$0xff]   ;;  %v2753_v44 = vld [vmem:[%s4013_s2 + $0xa0] ss:$8 sps:$4 sm:$0xff]   ;;  %v2798_v46 = vld [vmem:[%s4013_s2 + $0x110] ss:$8 sps:$4 sm:$0xff]  }
  0x1b   : > { %v2754_v45 = vld [vmem:[%s4013_s2 + $0x94] ss:$8 sps:$4 sm:$0xff]   ;;  %v2799_v47 = vld [vmem:[%s4013_s2 + $0x104] ss:$8 sps:$4 sm:$0xff]   ;;  %v2756_v48 = vld [vmem:[%s4013_s2 + $0x90] ss:$8 sps:$4 sm:$0xff]  }
  0x1c   : > { %v2757_v49 = vld [vmem:[%s4013_s2 + $0x84] ss:$8 sps:$4 sm:$0xff]   ;;  %v2804_v50 = vld [vmem:[%s4013_s2 + $0x100] ss:$8 sps:$4 sm:$0xff]   ;;  %v2805_v51 = vld [vmem:[%s4013_s2 + $0x1f4] ss:$8 sps:$4 sm:$0xff]  }
  0x1d   : > { %1874 = vmatpush1.bf16.msra.mxu0 %v2726_v13  ;;  %1913 = vmatpush1.bf16.msra.mxu1 %v2774_v30  ;;  %v2759_v52 = vld [vmem:[%s4013_s2 + $0x80] ss:$8 sps:$4 sm:$0xff]   ;;  %v2767_v53 = vld [vmem:[%s4013_s2 + $0x274] ss:$8 sps:$4 sm:$0xff]   ;;  %v2810_v54 = vld [vmem:[%s4013_s2 + $0x1f0] ss:$8 sps:$4 sm:$0xff]  }
  0x1e   : > { %1875 = vmatprep.subr.bf16.mxu0 %v2727_v14  ;;  %1914 = vmatprep.subr.bf16.mxu1 %v2775_v31  ;;  %v2811_v55 = vld [vmem:[%s4013_s2 + $0x1e4] ss:$8 sps:$4 sm:$0xff]   ;;  %v2816_v56 = vld [vmem:[%s4013_s2 + $0x1e0] ss:$8 sps:$4 sm:$0xff]   ;;  %v2817_v57 = vld [vmem:[%s4013_s2 + $0x1d4] ss:$8 sps:$4 sm:$0xff]  }
  0x1f   : > { %v2822_v58 = vld [vmem:[%s4013_s2 + $0x1d0] ss:$8 sps:$4 sm:$0xff]   ;;  %v2823_v59 = vld [vmem:[%s4013_s2 + $0x1c4] ss:$8 sps:$4 sm:$0xff]   ;;  %v2828_v60 = vld [vmem:[%s4013_s2 + $0x1c0] ss:$8 sps:$4 sm:$0xff]  }
  0x20   : > { %v2829_v61 = vld [vmem:[%s4013_s2 + $0x1b4] ss:$8 sps:$4 sm:$0xff]   ;;  %v2834_v62 = vld [vmem:[%s4013_s2 + $0x1b0] ss:$8 sps:$4 sm:$0xff]   ;;  %v2835_v63 = vld [vmem:[%s4013_s2 + $0x1a4] ss:$8 sps:$4 sm:$0xff]  }
  0x21   : > { %1876 = vmatpush1.bf16.msra.mxu0 %v2729_v15  ;;  %1915 = vmatpush1.bf16.msra.mxu1 %v2780_v34  ;;  %v2840_v0 = vld [vmem:[%s4013_s2 + $0x1a0] ss:$8 sps:$4 sm:$0xff]   ;;  %v2841_v1 = vld [vmem:[%s4013_s2 + $0x194] ss:$8 sps:$4 sm:$0xff]   ;;  %v2846_v2 = vld [vmem:[%s4013_s2 + $0x190] ss:$8 sps:$4 sm:$0xff]  }
  0x22   : > { %1877 = vmatprep.subr.bf16.mxu0 %v2730_v16  ;;  %1916 = vmatprep.subr.bf16.mxu1 %v2781_v35  ;;  %vm332_vm2 = vsmask.f32 256  ;;  %v2847_v7 = vld [vmem:[%s4013_s2 + $0x184] ss:$8 sps:$4 sm:$0xff]   ;;  %v2852_v10 = vld [vmem:[%s4013_s2 + $0x180] ss:$8 sps:$4 sm:$0xff]  }
  0x23   : > { %vm3298_vm3 = vmand %vm331_vm1, %vm332_vm2  ;;  %vm390_vm4 = vsmask.f32 7424  ;;  %v2858_v35 = vld [vmem:[%s4013_s2 + $0x374] ss:$8 sps:$4 sm:$0xff]   ;;  %vm443_vm5 = vcmask 1046528   ;;  %vm433_vm6 = vcmask 261120  }
  0x24   : > { %v2789_v8 = vld [vmem:[%s4013_s2 + $0x230] ss:$8 sps:$4 sm:$0xff]   ;;  %vm459_vm7 = vcmask 523264   ;;  %vm472_vm8 = vcmask 785408   ;;  %vm2317_vm9 = vcmask 123904  }
  0x25   : > { %1878 = vmatpush1.bf16.msra.mxu0 %v2732_v17  ;;  %1917 = vmatpush1.bf16.msra.mxu1 %v2786_v38 }
  0x26   : > { %1879 = vmatprep.subr.bf16.mxu0 %v2733_v18  ;;  %1918 = vmatprep.subr.bf16.mxu1 %v2787_v39 }
  0x29   : > { %1880 = vmatpush1.bf16.msra.mxu0 %v2735_v19  ;;  %1919 = vmatpush1.bf16.msra.mxu1 %v2792_v42 }
  0x2a   : > { %1881 = vmatprep.subr.bf16.mxu0 %v2736_v20  ;;  %1920 = vmatprep.subr.bf16.mxu1 %v2793_v43 }
  0x2d   : > { %1882 = vmatpush2.bf16.msra.mxu0 %v2738_v24  ;;  %1921 = vmatpush1.bf16.msra.mxu1 %v2798_v46 }
  0x2e   : > { %1883 = vmatprep.subr.bf16.mxu0 %v2739_v25  ;;  %1922 = vmatprep.subr.bf16.mxu1 %v2799_v47 }
  0x31   : > { %1884 = vmatpush2.bf16.msra.mxu0 %v2741_v28  ;;  %1923 = vmatpush1.bf16.msra.mxu1 %v2804_v50 }
  0x32   : > { %1885 = vmatprep.subr.bf16.mxu0 %v2742_v29  ;;  %1924 = vmatprep.subr.bf16.mxu1 %v2805_v51 }
  0x35   : > { %1886 = vmatpush2.bf16.msra.mxu0 %v2744_v32  ;;  %1925 = vmatpush2.bf16.msra.mxu1 %v2810_v54 }
  0x36   : > { %1887 = vmatprep.subr.bf16.mxu0 %v2745_v33  ;;  %1926 = vmatprep.subr.bf16.mxu1 %v2811_v55 }
  0x39   : > { %1888 = vmatpush2.bf16.msra.mxu0 %v2747_v36  ;;  %1927 = vmatpush2.bf16.msra.mxu1 %v2816_v56  ;;  %v2771_v56 = vld [vmem:[%s4013_s2 + $0x260] ss:$8 sps:$4 sm:$0xff]  }
  0x3a   : > { %1889 = vmatprep.subr.bf16.mxu0 %v2748_v37  ;;  %1928 = vmatprep.subr.bf16.mxu1 %v2817_v57 }
  0x3d   : > { %1890 = vmatpush2.bf16.msra.mxu0 %v2750_v40  ;;  %1929 = vmatpush2.bf16.msra.mxu1 %v2822_v58  ;;  %v2765_v40 = vld [vmem:[%s4013_s2 + $0x270] ss:$8 sps:$4 sm:$0xff]  }
  0x3e   : > { %1891 = vmatprep.subr.bf16.mxu0 %v2751_v41  ;;  %1930 = vmatprep.subr.bf16.mxu1 %v2823_v59 }
  0x41   : > { %1892 = vmatpush2.bf16.msra.mxu0 %v2753_v44  ;;  %1931 = vmatpush2.bf16.msra.mxu1 %v2828_v60 }
  0x42   : > { %1893 = vmatprep.subr.bf16.mxu0 %v2754_v45  ;;  %1932 = vmatprep.subr.bf16.mxu1 %v2829_v61  ;;  %v2773_v45 = vld [vmem:[%s4013_s2 + $0x264] ss:$8 sps:$4 sm:$0xff]   ;;  %v2779_v61 = vld [vmem:[%s4013_s2 + $0x254] ss:$8 sps:$4 sm:$0xff]  }
  0x45   : > { %1894 = vmatpush2.bf16.msra.mxu0 %v2756_v48  ;;  %1933 = vmatpush2.bf16.msra.mxu1 %v2834_v62 }
  0x46   : > { %1895 = vmatprep.subr.bf16.mxu0 %v2757_v49  ;;  %1934 = vmatprep.subr.bf16.mxu1 %v2835_v63 }
  0x49   : > { %1896 = vmatpush2.bf16.msra.mxu0 %v2759_v52  ;;  %1935 = vmatpush2.bf16.msra.mxu1 %v2840_v0 }
  0x4a   : > { %1951 = vmatprep.subr.bf16.mxu0 %v2767_v53  ;;  %1936 = vmatprep.subr.bf16.mxu1 %v2841_v1 }
  0x4d   : > { %1937 = vmatpush2.bf16.msra.mxu1 %v2846_v2 }
  0x4e   : > { %1938 = vmatprep.subr.bf16.mxu1 %v2847_v7 }
  0x51   : > { %1939 = vmatpush2.bf16.msra.mxu1 %v2852_v10  ;;  %v2777_v10 = vld [vmem:[%s4013_s2 + $0x250] ss:$8 sps:$4 sm:$0xff]  }
  0x52   : > { %1994 = vmatprep.subr.bf16.mxu1 %v2858_v35 }
  0x81   : > { %v295_v3 = vpop.permute.xlu0 %294 }
  0x82   : > { %v303_v4 = vsel %vm298_vm0, 0, %v295_v3  ;;  %v351_v6 = vpop.permute.xlu1 %350 }
  0x83   : > { %v306_v5 = vshrl.u32 %v303_v4, 16  ;;  %v3303_v9 = vsel %vm298_vm0, 0, %v351_v6  ;;  %v309_v12 = vshll.u32 %v303_v4, 16 }
  0x84   : > { %v359_v19 = vshrl.u32 %v3303_v9, 16  ;;  %v362_v22 = vshll.u32 %v3303_v9, 16 }
  0x85   : > { %v308_v11 = vrot.slane %v306_v5, 7  ;;  %v297_v13 = vpop.permute.xlu0 %296 }
  0x86   : > { %v299_v14 = vsel %vm298_vm0, %v295_v3, %v297_v13  ;;  %v305_v15 = vsel %vm298_vm0, %v297_v13, 0  ;;  %v353_v20 = vpop.permute.xlu1 %352  ;;  %v361_v33 = vrot.slane %v359_v19, 7 }
  0x87   : > { %v311_v16 = vor.u32 %v309_v12, %v308_v11  ;;  %v3312_v17 = vsel %vm3298_vm3, %v308_v11, 0  ;;  %v313_v18 = vshrl.u32 %v299_v14, 16  ;;  %v319_v21 = vshrl.u32 %v305_v15, 16 }
  0x88   : > { %v399_v23 = vshll.u32 %v3312_v17, 16  ;;  %v316_v25 = vshll.u32 %v299_v14, 16  ;;  %v322_v28 = vshll.u32 %v305_v15, 16  ;;  %v354_v30 = vsel %vm298_vm0, %v351_v6, %v353_v20  ;;  %v2785_v15 = vld [vmem:[%s4013_s2 + $0x244] ss:$8 sps:$4 sm:$0xff]  }
  0x89   : > { %v315_v24 = vrot.slane %v313_v18, 7  ;;  %v3319_v26 = vsel %vm3298_vm3, 0, %v311_v16  ;;  %v321_v27 = vrot.slane %v319_v21, 7  ;;  %v358_v34 = vsel %vm298_vm0, %v353_v20, 0 }
  0x8a   : > { %v394_v29 = vshll.u32 %v3319_v26, 16  ;;  %v392_v38 = vshrl.u32 %v3319_v26, 16  ;;  %v401_v43 = vrot.slane %v399_v23, 1  ;;  %v366_v44 = vshrl.u32 %v354_v30, 16 }
  0x8b   : > { %v318_v31 = vor.u32 %v316_v25, %v315_v24  ;;  %v3325_v32 = vsel %vm3298_vm3, %v315_v24, 0  ;;  %v324_v36 = vor.u32 %v322_v28, %v321_v27  ;;  %v3333_v37 = vsel %vm3298_vm3, %v321_v27, 0 }
  0x8c   : > { %v396_v39 = vrot.slane %v394_v29, 1  ;;  %v411_v41 = vshll.u32 %v3325_v32, 16  ;;  %v423_v47 = vshll.u32 %v3333_v37, 16  ;;  %v368_v54 = vrot.slane %v366_v44, 7 }
  0x8d   : > { %v3342_v42 = vsel %vm3298_vm3, 0, %v318_v31  ;;  %v3349_v46 = vsel %vm3298_vm3, 0, %v324_v36  ;;  %v369_v55 = vshll.u32 %v354_v30, 16  ;;  %v372_v59 = vshrl.u32 %v358_v34, 16 }
  0x8e   : > { %v406_v48 = vshll.u32 %v3342_v42, 16  ;;  %1897 = vmatprep.mubr.bf16.mxu0 %v3342_v42  ;;  %v397_v49 = vor.u32 %v396_v39, %v392_v38  ;;  %v404_v50 = vshrl.u32 %v3342_v42, 16  ;;  %v418_v51 = vshll.u32 %v3349_v46, 16 }
  0x8f   : > { %1898 = vmatmul.mubr.bf16.vlgmr.msra.gmra.mxu0 %v3319_v26  ;;  %v416_v57 = vshrl.u32 %v3349_v46, 16  ;;  %v375_v60 = vshll.u32 %v358_v34, 16  ;;  %v364_v62 = vor.u32 %v362_v22, %v361_v33  ;;  %v425_v63 = vrot.slane %v423_v47, 1 }
  0x90   : > { %v408_v52 = vrot.slane %v406_v48, 1  ;;  %v402_v53 = vsel %vm390_vm4, %v397_v49, %v401_v43  ;;  %1952 = vmatpush1.bf16.msra.mxu0 %v2765_v40  ;;  %v420_v58 = vrot.slane %v418_v51, 1  ;;  %v413_v1 = vrot.slane %v411_v41, 1 }
  0x91   : > { %427 = vrot.lane.b32.xlu0 %v402_v53, %s3045_s19  ;;  %1953 = vmatprep.subr.bf16.mxu0 %v2773_v45  ;;  %v371_v3 = vor.u32 %v369_v55, %v368_v54  ;;  %v374_v4 = vrot.slane %v372_v59, 7  ;;  %v3368_v5 = vsel %vm3298_vm3, %v368_v54, 0  ;;  %v3372_v6 = vsel %vm3298_vm3, %v361_v33, 0  ;;  %v2791_v33 = vld [vmem:[%s4013_s2 + $0x234] ss:$8 sps:$4 sm:$0xff]  }
  0x92   : > { %v409_v0 = vor.u32 %v408_v52, %v404_v50  ;;  %v421_v2 = vor.u32 %v420_v58, %v416_v57  ;;  %v444_v9 = vrot.slane %v3319_v26, 1  ;;  %v485_v11 = vshll.u32 %v3372_v6, 16  ;;  %v2795_v54 = vld [vmem:[%s4013_s2 + $0x220] ss:$8 sps:$4 sm:$0xff]  }
  0x93   : > { %v377_v13 = vor.u32 %v375_v60, %v374_v4  ;;  %v447_v14 = vrot.slane %v3342_v42, 1  ;;  %v497_v16 = vshll.u32 %v3368_v5, 16  ;;  %v448_v18 = vrot.slane %v3325_v32, 1 }
  0x94   : > { %v414_v7 = vsel %vm390_vm4, %v409_v0, %v413_v1  ;;  %1954 = vmatpush1.bf16.msra.mxu0 %v2771_v56  ;;  %v426_v12 = vsel %vm390_vm4, %v421_v2, %v425_v63  ;;  %v445_v19 = vrot.slane %v3312_v17, 1  ;;  %v384_v20 = vsel %vm3298_vm3, 0, %v364_v62  ;;  %v2783_v17 = vld [vmem:[%s4013_s2 + $0x240] ss:$8 sps:$4 sm:$0xff]   ;;  %v2803_v56 = vld [vmem:[%s4013_s2 + $0x214] ss:$8 sps:$4 sm:$0xff]  }
  0x95   : > { %429 = vrot.lane.b32.xlu1 %v414_v7, %s3045_s19  ;;  %1955 = vmatprep.subr.bf16.mxu0 %v2779_v61  ;;  %v3394_v21 = vsel %vm3298_vm3, %v374_v4, 0  ;;  %v450_v22 = vrot.slane %v3349_v46, 1  ;;  %v480_v23 = vshll.u32 %v384_v20, 16  ;;  %v385_v24 = vsel %vm3298_vm3, 0, %v371_v3  ;;  %v2801_v61 = vld [vmem:[%s4013_s2 + $0x210] ss:$8 sps:$4 sm:$0xff]  }
  0x96   : > { %431 = vrot.lane.b32.xlu0 %v426_v12, %s3045_s19  ;;  %v509_v25 = vshll.u32 %v3394_v21, 16  ;;  %v446_v26 = vsel %vm443_vm5, %v444_v9, %v445_v19  ;;  %v478_v27 = vshrl.u32 %v384_v20, 16  ;;  %v492_v28 = vshll.u32 %v385_v24, 16  ;;  %v2809_v62 = vld [vmem:[%s4013_s2 + $0x204] ss:$8 sps:$4 sm:$0xff]  }
  0x97   : > { %v449_v29 = vsel %vm443_vm5, %v447_v14, %v448_v18  ;;  %v482_v30 = vrot.slane %v480_v23, 1  ;;  %v490_v31 = vshrl.u32 %v385_v24, 16  ;;  %v386_v32 = vsel %vm3298_vm3, 0, %v377_v13  ;;  %v2807_v0 = vld [vmem:[%s4013_s2 + $0x200] ss:$8 sps:$4 sm:$0xff]  }
  0x98   : > { %1956 = vmatpush1.bf16.msra.mxu0 %v2777_v10  ;;  %v451_v34 = vrot.slane %v3333_v37, 1  ;;  %v494_v35 = vrot.slane %v492_v28, 1  ;;  %v502_v36 = vshrl.u32 %v386_v32, 16  ;;  %v504_v38 = vshll.u32 %v386_v32, 16  ;;  %v2797_v37 = vld [vmem:[%s4013_s2 + $0x224] ss:$8 sps:$4 sm:$0xff]  }
  0x99   : > { %453 = vrot.lane.b32.xlu1 %v446_v26, %s3046_s30  ;;  %1957 = vmatprep.subr.bf16.mxu0 %v2785_v15  ;;  %v499_v39 = vrot.slane %v497_v16, 1  ;;  %v511_v40 = vrot.slane %v509_v25, 1  ;;  %v483_v43 = vor.u32 %v482_v30, %v478_v27  ;;  %v487_v44 = vrot.slane %v485_v11, 1  ;;  %v2815_v1 = vld [vmem:[%s4013_s2 + $0x2f4] ss:$8 sps:$4 sm:$0xff]  }
  0x9a   : > { %455 = vrot.lane.b32.xlu0 %v449_v29, %s3046_s30  ;;  %v452_v41 = vsel %vm443_vm5, %v450_v22, %v451_v34  ;;  %v506_v42 = vrot.slane %v504_v38, 1  ;;  %v495_v45 = vor.u32 %v494_v35, %v490_v31  ;;  %v518_v47 = vrot.slane %v384_v20, 1  ;;  %v2813_v2 = vld [vmem:[%s4013_s2 + $0x2f0] ss:$8 sps:$4 sm:$0xff]   ;;  %v2821_v3 = vld [vmem:[%s4013_s2 + $0x2e4] ss:$8 sps:$4 sm:$0xff]  }
  0x9b   : > { %v519_v48 = vrot.slane %v3372_v6, 1  ;;  %v521_v50 = vrot.slane %v385_v24, 1  ;;  %v522_v51 = vrot.slane %v3368_v5, 1  ;;  %v3421_v52 = vsel %vm390_vm4, %v483_v43, %v487_v44  ;;  %v2819_v4 = vld [vmem:[%s4013_s2 + $0x2e0] ss:$8 sps:$4 sm:$0xff]  }
  0x9c   : > { %1958 = vmatpush1.bf16.msra.mxu0 %v2783_v17  ;;  %v507_v49 = vor.u32 %v506_v42, %v502_v36  ;;  %v3424_v53 = vsel %vm390_vm4, %v495_v45, %v499_v39  ;;  %v524_v58 = vrot.slane %v386_v32, 1  ;;  %v525_v59 = vrot.slane %v3394_v21, 1  ;;  %v2827_v5 = vld [vmem:[%s4013_s2 + $0x2d4] ss:$8 sps:$4 sm:$0xff]   ;;  %v2825_v6 = vld [vmem:[%s4013_s2 + $0x2d0] ss:$8 sps:$4 sm:$0xff]  }
  0x9d   : > { %457 = vrot.lane.b32.xlu1 %v452_v41, %s3046_s30  ;;  %1959 = vmatprep.subr.bf16.mxu0 %v2791_v33  ;;  %v520_v57 = vsel %vm443_vm5, %v518_v47, %v519_v48  ;;  %v523_v60 = vsel %vm443_vm5, %v521_v50, %v522_v51  ;;  %v2833_v7 = vld [vmem:[%s4013_s2 + $0x2c4] ss:$8 sps:$4 sm:$0xff]   ;;  %v2831_v9 = vld [vmem:[%s4013_s2 + $0x2c0] ss:$8 sps:$4 sm:$0xff]   ;;  %v2839_v10 = vld [vmem:[%s4013_s2 + $0x2b4] ss:$8 sps:$4 sm:$0xff]   ;;  %s278_s30 = scalar_lea.vmem %s4016_s5, %s3106_s7 }
  0x9e   : > { %466 = vrot.lane.b32.xlu0 %v384_v20, %s3047_s14  ;;  %v3430_v55 = vsel %vm390_vm4, %v507_v49, %v511_v40  ;;  %v526_v63 = vsel %vm443_vm5, %v524_v58, %v525_v59  ;;  %v2837_v11 = vld [vmem:[%s4013_s2 + $0x2b0] ss:$8 sps:$4 sm:$0xff]   ;;  %v2845_v12 = vld [vmem:[%s4013_s2 + $0x2a4] ss:$8 sps:$4 sm:$0xff]   ;;  %v2843_v13 = vld [vmem:[%s4013_s2 + $0x2a0] ss:$8 sps:$4 sm:$0xff]  }
  0x9f   : > { %v2851_v14 = vld [vmem:[%s4013_s2 + $0x294] ss:$8 sps:$4 sm:$0xff]   ;;  %v2849_v15 = vld [vmem:[%s4013_s2 + $0x290] ss:$8 sps:$4 sm:$0xff]   ;;  %v2855_v16 = vld [vmem:[%s4013_s2 + $0x284] ss:$8 sps:$4 sm:$0xff]  }
  0xa0   : > { %1960 = vmatpush1.bf16.msra.mxu0 %v2789_v8  ;;  %v2853_v18 = vld [vmem:[%s4013_s2 + $0x280] ss:$8 sps:$4 sm:$0xff]   ;;  %v2864_v19 = vld [vmem:[%s4013_s2 + $0x474] ss:$8 sps:$4 sm:$0xff]   ;;  %v2856_v22 = vld [vmem:[%s4013_s2 + $0x370] ss:$8 sps:$4 sm:$0xff]  }
  0xa1   : > { %468 = vrot.lane.b32.xlu1 %v385_v24, %s3047_s14  ;;  %1961 = vmatprep.subr.bf16.mxu0 %v2797_v37  ;;  %v2861_v25 = vld [vmem:[%s4013_s2 + $0x364] ss:$8 sps:$4 sm:$0xff]   ;;  %v2859_v17 = vld [vmem:[%s4013_s2 + $0x360] ss:$8 sps:$4 sm:$0xff]   ;;  %v2862_v31 = vld [vmem:[%s4013_s2 + $0x470] ss:$8 sps:$4 sm:$0xff]  }
  0xa2   : > { %470 = vrot.lane.b32.xlu0 %v386_v32, %s3047_s14  ;;  %v2867_v32 = vld [vmem:[%s4013_s2 + $0x354] ss:$8 sps:$4 sm:$0xff]   ;;  %v2870_v33 = vld [vmem:[%s4013_s2 + $0x464] ss:$8 sps:$4 sm:$0xff]   ;;  %v2865_v35 = vld [vmem:[%s4013_s2 + $0x350] ss:$8 sps:$4 sm:$0xff]  }
  0xa3   : > { %v2868_v36 = vld [vmem:[%s4013_s2 + $0x460] ss:$8 sps:$4 sm:$0xff]   ;;  %v2873_v38 = vld [vmem:[%s4013_s2 + $0x344] ss:$8 sps:$4 sm:$0xff]   ;;  %v2876_v39 = vld [vmem:[%s4013_s2 + $0x454] ss:$8 sps:$4 sm:$0xff]  }
  0xa4   : > { %1962 = vmatpush1.bf16.msra.mxu0 %v2795_v54  ;;  %v2871_v42 = vld [vmem:[%s4013_s2 + $0x340] ss:$8 sps:$4 sm:$0xff]   ;;  %v2874_v8 = vld [vmem:[%s4013_s2 + $0x450] ss:$8 sps:$4 sm:$0xff]   ;;  %v2879_v43 = vld [vmem:[%s4013_s2 + $0x334] ss:$8 sps:$4 sm:$0xff]  }
  0xa5   : > { %527 = vrot.lane.b32.xlu1 %v520_v57, %s3045_s19  ;;  %1963 = vmatprep.subr.bf16.mxu0 %v2803_v56  ;;  %v2882_v44 = vld [vmem:[%s4013_s2 + $0x444] ss:$8 sps:$4 sm:$0xff]   ;;  %v2877_v47 = vld [vmem:[%s4013_s2 + $0x330] ss:$8 sps:$4 sm:$0xff]   ;;  %v2880_v48 = vld [vmem:[%s4013_s2 + $0x440] ss:$8 sps:$4 sm:$0xff]  }
  0xa6   : > { %529 = vrot.lane.b32.xlu0 %v523_v60, %s3045_s19  ;;  %v2885_v49 = vld [vmem:[%s4013_s2 + $0x324] ss:$8 sps:$4 sm:$0xff]   ;;  %v2888_v51 = vld [vmem:[%s4013_s2 + $0x434] ss:$8 sps:$4 sm:$0xff]   ;;  %v2886_v54 = vld [vmem:[%s4013_s2 + $0x430] ss:$8 sps:$4 sm:$0xff]  }
  0xa7   : > { %v2894_v56 = vld [vmem:[%s4013_s2 + $0x424] ss:$8 sps:$4 sm:$0xff]   ;;  %v2889_v57 = vld [vmem:[%s4013_s2 + $0x310] ss:$8 sps:$4 sm:$0xff]   ;;  %v2892_v58 = vld [vmem:[%s4013_s2 + $0x420] ss:$8 sps:$4 sm:$0xff]  }
  0xa8   : > { %1964 = vmatpush1.bf16.msra.mxu0 %v2801_v61  ;;  %v2897_v59 = vld [vmem:[%s4013_s2 + $0x304] ss:$8 sps:$4 sm:$0xff]   ;;  %v2900_v60 = vld [vmem:[%s4013_s2 + $0x414] ss:$8 sps:$4 sm:$0xff]   ;;  %v2895_v61 = vld [vmem:[%s4013_s2 + $0x300] ss:$8 sps:$4 sm:$0xff]  }
  0xa9   : > { %531 = vrot.lane.b32.xlu1 %v526_v63, %s3045_s19  ;;  %1965 = vmatprep.subr.bf16.mxu0 %v2809_v62  ;;  %v2898_v62 = vld [vmem:[%s4013_s2 + $0x410] ss:$8 sps:$4 sm:$0xff]   ;;  %v2903_v63 = vld [vmem:[%s4013_s2 + $0x3f4] ss:$8 sps:$4 sm:$0xff]   ;;  %s2428_s7 = sshll.u32 %s4021_s22, 1 }
  0xaa   : > { %s282_s10 = scalar_lea.vmem %s4017_s6, %s2428_s7 }
  0xac   : > { %1966 = vmatpush1.bf16.msra.mxu0 %v2807_v0  ;;  %v2906_v0 = vld [vmem:[%s4013_s2 + $0x404] ss:$8 sps:$4 sm:$0xff]  }
  0xad   : > { %1967 = vmatprep.subr.bf16.mxu0 %v2815_v1  ;;  %v2901_v1 = vld [vmem:[%s4013_s2 + $0x3f0] ss:$8 sps:$4 sm:$0xff]  }
  0xb0   : > { %1968 = vmatpush2.bf16.msra.mxu0 %v2813_v2  ;;  %v2904_v2 = vld [vmem:[%s4013_s2 + $0x400] ss:$8 sps:$4 sm:$0xff]  }
  0xb1   : > { %1969 = vmatprep.subr.bf16.mxu0 %v2821_v3  ;;  %v2909_v3 = vld [vmem:[%s4013_s2 + $0x3e4] ss:$8 sps:$4 sm:$0xff]  }
  0xb4   : > { %1970 = vmatpush2.bf16.msra.mxu0 %v2819_v4  ;;  %v2912_v4 = vld [vmem:[%s4013_s2 + $0x4f4] ss:$8 sps:$4 sm:$0xff]  }
  0xb5   : > { %1971 = vmatprep.subr.bf16.mxu0 %v2827_v5  ;;  %v2907_v5 = vld [vmem:[%s4013_s2 + $0x3e0] ss:$8 sps:$4 sm:$0xff]  }
  0xb8   : > { %1972 = vmatpush2.bf16.msra.mxu0 %v2825_v6  ;;  %v2910_v6 = vld [vmem:[%s4013_s2 + $0x4f0] ss:$8 sps:$4 sm:$0xff]  }
  0xb9   : > { %1973 = vmatprep.subr.bf16.mxu0 %v2833_v7  ;;  %v2915_v7 = vld [vmem:[%s4013_s2 + $0x3d4] ss:$8 sps:$4 sm:$0xff]  }
  0xbc   : > { %1974 = vmatpush2.bf16.msra.mxu0 %v2831_v9  ;;  %v2918_v9 = vld [vmem:[%s4013_s2 + $0x4e4] ss:$8 sps:$4 sm:$0xff]  }
  0xbd   : > { %1975 = vmatprep.subr.bf16.mxu0 %v2839_v10  ;;  %v2913_v10 = vld [vmem:[%s4013_s2 + $0x3d0] ss:$8 sps:$4 sm:$0xff]  }
  0xc0   : > { %1976 = vmatpush2.bf16.msra.mxu0 %v2837_v11  ;;  %v2916_v11 = vld [vmem:[%s4013_s2 + $0x4e0] ss:$8 sps:$4 sm:$0xff]  }
  0xc1   : > { %1977 = vmatprep.subr.bf16.mxu0 %v2845_v12  ;;  %v2921_v12 = vld [vmem:[%s4013_s2 + $0x3c4] ss:$8 sps:$4 sm:$0xff]  }
  0xc4   : > { %1978 = vmatpush2.bf16.msra.mxu0 %v2843_v13  ;;  %v2924_v13 = vld [vmem:[%s4013_s2 + $0x4d4] ss:$8 sps:$4 sm:$0xff]  }
  0xc5   : > { %1979 = vmatprep.subr.bf16.mxu0 %v2851_v14  ;;  %v2919_v14 = vld [vmem:[%s4013_s2 + $0x3c0] ss:$8 sps:$4 sm:$0xff]  }
  0xc8   : > { %1980 = vmatpush2.bf16.msra.mxu0 %v2849_v15  ;;  %v2922_v15 = vld [vmem:[%s4013_s2 + $0x4d0] ss:$8 sps:$4 sm:$0xff]  }
  0xc9   : > { %1981 = vmatprep.subr.bf16.mxu0 %v2855_v16  ;;  %v2927_v16 = vld [vmem:[%s4013_s2 + $0x3b4] ss:$8 sps:$4 sm:$0xff]  }
  0xcc   : > { %1982 = vmatpush2.bf16.msra.mxu0 %v2853_v18  ;;  %v2930_v18 = vld [vmem:[%s4013_s2 + $0x4c4] ss:$8 sps:$4 sm:$0xff]  }
  0xcd   : > { %2037 = vmatprep.subr.bf16.mxu0 %v2864_v19  ;;  %v2925_v19 = vld [vmem:[%s4013_s2 + $0x3b0] ss:$8 sps:$4 sm:$0xff]  }
 0x103   : > { %v428_v20 = vpop.permute.xlu0 %427 }
 0x104   : > { %v538_v26 = vsel %vm433_vm6, %v3349_v46, %v428_v20 }
 0x107   : > { %v430_v21 = vpop.permute.xlu1 %429 }
 0x108   : > { %v432_v23 = vpop.permute.xlu0 %431  ;;  %v434_v24 = vsel %vm433_vm6, %v428_v20, %v430_v21  ;;  %v2928_v20 = vld [vmem:[%s4013_s2 + $0x4c0] ss:$8 sps:$4 sm:$0xff]  }
 0x109   : > { %1940 = vmatprep.mubr.bf16.mxu1 %v434_v24  ;;  %v435_v27 = vsel %vm433_vm6, %v430_v21, %v432_v23  ;;  %v2933_v21 = vld [vmem:[%s4013_s2 + $0x3a4] ss:$8 sps:$4 sm:$0xff]   ;;  %v2931_v23 = vld [vmem:[%s4013_s2 + $0x3a0] ss:$8 sps:$4 sm:$0xff]   ;;  %v2934_v24 = vld [vmem:[%s4013_s2 + $0x4b0] ss:$8 sps:$4 sm:$0xff]  }
 0x10a   : > { %1941 = vmatmul.mubr.bf16.vlgmr.msra.gmra.mxu1 %v538_v26  ;;  %v2942_v26 = vld [vmem:[%s4013_s2 + $0x4a4] ss:$8 sps:$4 sm:$0xff]  }
 0x10b   : > { %1995 = vmatpush1.bf16.msra.mxu1 %v2856_v22  ;;  %v454_v28 = vpop.permute.xlu1 %453  ;;  %v2936_v22 = vld [vmem:[%s4013_s2 + $0x4b4] ss:$8 sps:$4 sm:$0xff]  }
 0x10c   : > { %v543_v29 = vsel %vm459_vm7, %v435_v27, %v454_v28  ;;  %v3516_v30 = vpop.permute.xlu0 %455  ;;  %1996 = vmatprep.subr.bf16.mxu1 %v2861_v25  ;;  %v2939_v25 = vld [vmem:[%s4013_s2 + $0x394] ss:$8 sps:$4 sm:$0xff]   ;;  %v2937_v27 = vld [vmem:[%s4013_s2 + $0x390] ss:$8 sps:$4 sm:$0xff]  }
 0x10d   : > { %v460_v46 = vsel %vm459_vm7, %v454_v28, %v3516_v30  ;;  %v2940_v28 = vld [vmem:[%s4013_s2 + $0x4a0] ss:$8 sps:$4 sm:$0xff]  }
 0x10e   : > { %1983 = vmatprep.mubr.bf16.mxu0 %v460_v46  ;;  %v2946_v46 = vld [vmem:[%s4013_s2 + $0x490] ss:$8 sps:$4 sm:$0xff]  }
 0x10f   : > { %1984 = vmatmul.mubr.bf16.vlgmr.msra.gmra.mxu0 %v543_v29  ;;  %1997 = vmatpush1.bf16.msra.mxu1 %v2859_v17  ;;  %v3529_v34 = vpop.permute.xlu1 %457  ;;  %v2945_v17 = vld [vmem:[%s4013_s2 + $0x384] ss:$8 sps:$4 sm:$0xff]   ;;  %v2948_v29 = vld [vmem:[%s4013_s2 + $0x494] ss:$8 sps:$4 sm:$0xff]  }
 0x110   : > { %2038 = vmatpush1.bf16.msra.mxu0 %v2862_v31  ;;  %2069 = vmatprep.mubr.bf16.mxu0 %v3421_v52  ;;  %v3544_v40 = vpop.permute.xlu0 %466  ;;  %v2883_v52 = vld [vmem:[%s4013_s2 + $0x320] ss:$8 sps:$4 sm:$0xff]  }
 0x111   : > { %1998 = vmatprep.subr.bf16.mxu1 %v2867_v32  ;;  %2039 = vmatprep.subr.bf16.mxu0 %v2870_v33  ;;  %v2943_v31 = vld [vmem:[%s4013_s2 + $0x380] ss:$8 sps:$4 sm:$0xff]   ;;  %v2954_v32 = vld [vmem:[%s4013_s2 + $0x574] ss:$8 sps:$4 sm:$0xff]   ;;  %v2951_v33 = vld [vmem:[%s4013_s2 + $0x484] ss:$8 sps:$4 sm:$0xff]  }
 0x113   : > { %1999 = vmatpush1.bf16.msra.mxu1 %v2865_v35  ;;  %v3546_v41 = vpop.permute.xlu1 %468  ;;  %v461_v35 = vsel %vm459_vm7, %v3516_v30, %v3529_v34  ;;  %v2960_v30 = vld [vmem:[%s4013_s2 + $0x674] ss:$8 sps:$4 sm:$0xff]   ;;  %v2955_v34 = vld [vmem:[%s4013_s2 + $0x560] ss:$8 sps:$4 sm:$0xff]  }
 0x114   : > { %2040 = vmatpush1.bf16.msra.mxu0 %v2868_v36  ;;  %2000 = vmatprep.subr.bf16.mxu1 %v2873_v38  ;;  %v473_v37 = vsel %vm472_vm8, %v3544_v40, %v3546_v41  ;;  %v471_v36 = vpop.permute.xlu0 %470  ;;  %v2952_v38 = vld [vmem:[%s4013_s2 + $0x570] ss:$8 sps:$4 sm:$0xff]  }
 0x115   : > { %2041 = vmatprep.subr.bf16.mxu0 %v2876_v39  ;;  %2026 = vmatprep.mubr.bf16.mxu1 %v473_v37  ;;  %v2949_v39 = vld [vmem:[%s4013_s2 + $0x480] ss:$8 sps:$4 sm:$0xff]  }
 0x117   : > { %2001 = vmatpush1.bf16.msra.mxu1 %v2871_v42  ;;  %v3563_v45 = vpop.permute.xlu1 %527  ;;  %v2957_v42 = vld [vmem:[%s4013_s2 + $0x564] ss:$8 sps:$4 sm:$0xff]  }
 0x118   : > { %2042 = vmatpush1.bf16.msra.mxu0 %v2874_v8  ;;  %2002 = vmatprep.subr.bf16.mxu1 %v2879_v43  ;;  %v3577_v50 = vsel %vm433_vm6, %v3430_v55, %v3563_v45  ;;  %v2891_v55 = vld [vmem:[%s4013_s2 + $0x314] ss:$8 sps:$4 sm:$0xff]   ;;  %v548_v8 = vsel %vm472_vm8, %v461_v35, %v3544_v40  ;;  %v3735_v37 = vpop.permute.xlu0 %529  ;;  %v2958_v40 = vld [vmem:[%s4013_s2 + $0x670] ss:$8 sps:$4 sm:$0xff]   ;;  %v3035_v35 = vld [vmem:[%s4013_s2 + $0x584] ss:$8 sps:$4 sm:$0xff]  }
 0x119   : > { %2043 = vmatprep.subr.bf16.mxu0 %v2882_v44  ;;  %v2963_v44 = vld [vmem:[%s4013_s2 + $0x554] ss:$8 sps:$4 sm:$0xff]  }
 0x11b   : > { %2003 = vmatpush1.bf16.msra.mxu1 %v2877_v47  ;;  %v532_v43 = vpop.permute.xlu1 %531  ;;  %v2966_v47 = vld [vmem:[%s4013_s2 + $0x664] ss:$8 sps:$4 sm:$0xff]  }
 0x11c   : > { %2044 = vmatpush1.bf16.msra.mxu0 %v2880_v48  ;;  %2004 = vmatprep.subr.bf16.mxu1 %v2885_v49  ;;  %v474_v48 = vsel %vm472_vm8, %v3546_v41, %v471_v36  ;;  %v534_v49 = vsel %vm433_vm6, %v3735_v37, %v532_v43  ;;  %v2969_v41 = vld [vmem:[%s4013_s2 + $0x544] ss:$8 sps:$4 sm:$0xff]   ;;  %v3033_v36 = vld [vmem:[%s4013_s2 + $0x580] ss:$8 sps:$4 sm:$0xff]   ;;  %v2242_v43 = vld [vmem:[%s4015_s4 + $0xd8] sm:$0xff] }
 0x11d   : > { %2045 = vmatprep.subr.bf16.mxu0 %v2888_v51  ;;  %v2964_v51 = vld [vmem:[%s4013_s2 + $0x660] ss:$8 sps:$4 sm:$0xff]  }
 0x11f   : > { %2005 = vmatpush1.bf16.msra.mxu1 %v2883_v52  ;;  %v2972_v52 = vld [vmem:[%s4013_s2 + $0x654] ss:$8 sps:$4 sm:$0xff]  }
 0x120   : > { %2046 = vmatpush1.bf16.msra.mxu0 %v2886_v54  ;;  %2006 = vmatprep.subr.bf16.mxu1 %v2891_v55  ;;  %v2967_v54 = vld [vmem:[%s4013_s2 + $0x540] ss:$8 sps:$4 sm:$0xff]   ;;  %v2970_v55 = vld [vmem:[%s4013_s2 + $0x650] ss:$8 sps:$4 sm:$0xff]  }
 0x121   : > { %2047 = vmatprep.subr.bf16.mxu0 %v2894_v56  ;;  %v2975_v56 = vld [vmem:[%s4013_s2 + $0x534] ss:$8 sps:$4 sm:$0xff]  }
 0x123   : > { %2007 = vmatpush1.bf16.msra.mxu1 %v2889_v57  ;;  %v2978_v57 = vld [vmem:[%s4013_s2 + $0x644] ss:$8 sps:$4 sm:$0xff]  }
 0x124   : > { %2048 = vmatpush1.bf16.msra.mxu0 %v2892_v58  ;;  %2008 = vmatprep.subr.bf16.mxu1 %v2897_v59  ;;  %v2973_v58 = vld [vmem:[%s4013_s2 + $0x530] ss:$8 sps:$4 sm:$0xff]   ;;  %v2976_v59 = vld [vmem:[%s4013_s2 + $0x640] ss:$8 sps:$4 sm:$0xff]  }
 0x125   : > { %2049 = vmatprep.subr.bf16.mxu0 %v2900_v60  ;;  %v2981_v60 = vld [vmem:[%s4013_s2 + $0x524] ss:$8 sps:$4 sm:$0xff]  }
 0x127   : > { %2009 = vmatpush1.bf16.msra.mxu1 %v2895_v61  ;;  %v2984_v61 = vld [vmem:[%s4013_s2 + $0x634] ss:$8 sps:$4 sm:$0xff]  }
 0x128   : > { %2050 = vmatpush1.bf16.msra.mxu0 %v2898_v62  ;;  %2010 = vmatprep.subr.bf16.mxu1 %v2903_v63  ;;  %v2979_v62 = vld [vmem:[%s4013_s2 + $0x520] ss:$8 sps:$4 sm:$0xff]   ;;  %v2982_v63 = vld [vmem:[%s4013_s2 + $0x630] ss:$8 sps:$4 sm:$0xff]  }
 0x129   : > { %2051 = vmatprep.subr.bf16.mxu0 %v2906_v0  ;;  %v2987_v0 = vld [vmem:[%s4013_s2 + $0x514] ss:$8 sps:$4 sm:$0xff]  }
 0x12b   : > { %2011 = vmatpush2.bf16.msra.mxu1 %v2901_v1  ;;  %v2990_v1 = vld [vmem:[%s4013_s2 + $0x624] ss:$8 sps:$4 sm:$0xff]  }
 0x12c   : > { %2052 = vmatpush1.bf16.msra.mxu0 %v2904_v2  ;;  %2012 = vmatprep.subr.bf16.mxu1 %v2909_v3  ;;  %v2985_v2 = vld [vmem:[%s4013_s2 + $0x510] ss:$8 sps:$4 sm:$0xff]   ;;  %v2988_v3 = vld [vmem:[%s4013_s2 + $0x620] ss:$8 sps:$4 sm:$0xff]  }
 0x12d   : > { %2053 = vmatprep.subr.bf16.mxu0 %v2912_v4  ;;  %v2993_v4 = vld [vmem:[%s4013_s2 + $0x504] ss:$8 sps:$4 sm:$0xff]  }
 0x12f   : > { %2013 = vmatpush2.bf16.msra.mxu1 %v2907_v5  ;;  %v2996_v5 = vld [vmem:[%s4013_s2 + $0x614] ss:$8 sps:$4 sm:$0xff]  }
 0x130   : > { %2054 = vmatpush2.bf16.msra.mxu0 %v2910_v6  ;;  %2014 = vmatprep.subr.bf16.mxu1 %v2915_v7  ;;  %v2991_v6 = vld [vmem:[%s4013_s2 + $0x500] ss:$8 sps:$4 sm:$0xff]   ;;  %v2994_v7 = vld [vmem:[%s4013_s2 + $0x610] ss:$8 sps:$4 sm:$0xff]  }
 0x131   : > { %2055 = vmatprep.subr.bf16.mxu0 %v2918_v9  ;;  %v2999_v9 = vld [vmem:[%s4013_s2 + $0x5f4] ss:$8 sps:$4 sm:$0xff]  }
 0x133   : > { %2015 = vmatpush2.bf16.msra.mxu1 %v2913_v10  ;;  %v3002_v10 = vld [vmem:[%s4013_s2 + $0x604] ss:$8 sps:$4 sm:$0xff]  }
 0x134   : > { %2056 = vmatpush2.bf16.msra.mxu0 %v2916_v11  ;;  %2016 = vmatprep.subr.bf16.mxu1 %v2921_v12  ;;  %v2997_v11 = vld [vmem:[%s4013_s2 + $0x5f0] ss:$8 sps:$4 sm:$0xff]   ;;  %v3000_v12 = vld [vmem:[%s4013_s2 + $0x600] ss:$8 sps:$4 sm:$0xff]  }
 0x135   : > { %2057 = vmatprep.subr.bf16.mxu0 %v2924_v13  ;;  %v3005_v13 = vld [vmem:[%s4013_s2 + $0x5e4] ss:$8 sps:$4 sm:$0xff]  }
 0x137   : > { %2017 = vmatpush2.bf16.msra.mxu1 %v2919_v14  ;;  %v3008_v14 = vld [vmem:[%s4013_s2 + $0x6b4] ss:$8 sps:$4 sm:$0xff]  }
 0x138   : > { %2058 = vmatpush2.bf16.msra.mxu0 %v2922_v15  ;;  %2018 = vmatprep.subr.bf16.mxu1 %v2927_v16  ;;  %v3003_v15 = vld [vmem:[%s4013_s2 + $0x5e0] ss:$8 sps:$4 sm:$0xff]   ;;  %v3006_v16 = vld [vmem:[%s4013_s2 + $0x6b0] ss:$8 sps:$4 sm:$0xff]  }
 0x139   : > { %2059 = vmatprep.subr.bf16.mxu0 %v2930_v18  ;;  %v3011_v18 = vld [vmem:[%s4013_s2 + $0x5d4] ss:$8 sps:$4 sm:$0xff]  }
 0x13b   : > { %2019 = vmatpush2.bf16.msra.mxu1 %v2925_v19  ;;  %v3014_v19 = vld [vmem:[%s4013_s2 + $0x6a4] ss:$8 sps:$4 sm:$0xff]  }
 0x13c   : > { %2060 = vmatpush2.bf16.msra.mxu0 %v2928_v20  ;;  %2020 = vmatprep.subr.bf16.mxu1 %v2933_v21  ;;  %v3009_v20 = vld [vmem:[%s4013_s2 + $0x5d0] ss:$8 sps:$4 sm:$0xff]   ;;  %v3012_v21 = vld [vmem:[%s4013_s2 + $0x6a0] ss:$8 sps:$4 sm:$0xff]  }
 0x13d   : > { %2061 = vmatprep.subr.bf16.mxu0 %v2936_v22  ;;  %v3017_v22 = vld [vmem:[%s4013_s2 + $0x5c4] ss:$8 sps:$4 sm:$0xff]  }
 0x13f   : > { %2021 = vmatpush2.bf16.msra.mxu1 %v2931_v23  ;;  %v3020_v23 = vld [vmem:[%s4013_s2 + $0x694] ss:$8 sps:$4 sm:$0xff]  }
 0x140   : > { %2062 = vmatpush2.bf16.msra.mxu0 %v2934_v24  ;;  %2022 = vmatprep.subr.bf16.mxu1 %v2939_v25  ;;  %v3015_v24 = vld [vmem:[%s4013_s2 + $0x5c0] ss:$8 sps:$4 sm:$0xff]   ;;  %v3018_v25 = vld [vmem:[%s4013_s2 + $0x690] ss:$8 sps:$4 sm:$0xff]  }
 0x141   : > { %2063 = vmatprep.subr.bf16.mxu0 %v2942_v26  ;;  %v3023_v26 = vld [vmem:[%s4013_s2 + $0x5b4] ss:$8 sps:$4 sm:$0xff]  }
 0x143   : > { %2023 = vmatpush2.bf16.msra.mxu1 %v2937_v27  ;;  %v3026_v27 = vld [vmem:[%s4013_s2 + $0x684] ss:$8 sps:$4 sm:$0xff]  }
 0x144   : > { %2064 = vmatpush2.bf16.msra.mxu0 %v2940_v28  ;;  %2024 = vmatprep.subr.bf16.mxu1 %v2945_v17  ;;  %v3021_v28 = vld [vmem:[%s4013_s2 + $0x5b0] ss:$8 sps:$4 sm:$0xff]   ;;  %v3024_v17 = vld [vmem:[%s4013_s2 + $0x680] ss:$8 sps:$4 sm:$0xff]  }
 0x145   : > { %2065 = vmatprep.subr.bf16.mxu0 %v2948_v29  ;;  %v3029_v29 = vld [vmem:[%s4013_s2 + $0x5a4] ss:$8 sps:$4 sm:$0xff]  }
 0x147   : > { %2025 = vmatpush2.bf16.msra.mxu1 %v2943_v31  ;;  %v3027_v31 = vld [vmem:[%s4013_s2 + $0x5a0] ss:$8 sps:$4 sm:$0xff]  }
 0x148   : > { %2066 = vmatpush2.bf16.msra.mxu0 %v2946_v46  ;;  %2080 = vmatprep.subr.bf16.mxu1 %v2954_v32  ;;  %v3032_v46 = vld [vmem:[%s4013_s2 + $0x594] ss:$8 sps:$4 sm:$0xff]   ;;  %v533_v32 = vsel %vm433_vm6, %v3563_v45, %v3735_v37 }
 0x149   : > { %2067 = vmatprep.subr.bf16.mxu0 %v2951_v33  ;;  %v3030_v33 = vld [vmem:[%s4013_s2 + $0x590] ss:$8 sps:$4 sm:$0xff]  }
 0x14a   : > { %2027 = vmatmul.mubr.bf16.vlgmr.msra.gmra.mxu1 %v548_v8  ;;  %v2246_v45 = vld [vmem:[%s4015_s4 + $0xf8] sm:$0xff]  ;;  %v2228_v8 = vld [vmem:[%s4015_s4 + $0x68] sm:$0xff] }
 0x14b   : > { %2081 = vmatpush1.bf16.msra.mxu1 %v2952_v38  ;;  %2112 = vmatprep.mubr.bf16.mxu1 %v3577_v50  ;;  %v2961_v50 = vld [vmem:[%s4013_s2 + $0x550] ss:$8 sps:$4 sm:$0xff]  }
 0x14c   : > { %2068 = vmatpush2.bf16.msra.mxu0 %v2949_v39  ;;  %2082 = vmatprep.subr.bf16.mxu1 %v2957_v42  ;;  %v2230_v38 = vld [vmem:[%s4015_s4 + $0x78] sm:$0xff]  ;;  %v2245_v39 = vld [vmem:[%s4015_s4 + $0xf0] sm:$0xff] }
 0x14d   : > { %2123 = vmatprep.subr.bf16.mxu0 %v2960_v30  ;;  %v2229_v42 = vld [vmem:[%s4015_s4 + $0x70] sm:$0xff]  ;;  %v2243_v30 = vld [vmem:[%s4015_s4 + $0xe0] sm:$0xff]  ;;  %v2226_v37 = vld [vmem:[%s4015_s4 + $0x58] sm:$0xff] }
 0x14f   : > { %2070 = vmatmul.mubr.bf16.vlgmr.msra.gmra.mxu0 %v474_v48  ;;  %2083 = vmatpush1.bf16.msra.mxu1 %v2955_v34  ;;  %v2227_v34 = vld [vmem:[%s4015_s4 + $0x60] sm:$0xff]  ;;  %v2224_v48 = vld [vmem:[%s4015_s4 + $0x48] sm:$0xff] }
 0x150   : > { %2124 = vmatpush1.bf16.msra.mxu0 %v2958_v40  ;;  %2649 = vmatprep.mubr.msk.bf16.mxu0 %vm459_vm7, %v534_v49  ;;  %v2241_v40 = vld [vmem:[%s4015_s4 + $0xd0] sm:$0xff]  ;;  %v2239_v49 = vld [vmem:[%s4015_s4 + $0xc0] sm:$0xff] }
 0x151   : > { %2084 = vmatprep.subr.bf16.mxu1 %v2963_v44  ;;  %2125 = vmatprep.subr.bf16.mxu0 %v2966_v47  ;;  %v2225_v44 = vld [vmem:[%s4015_s4 + $0x50] sm:$0xff]  ;;  %v2240_v47 = vld [vmem:[%s4015_s4 + $0xc8] sm:$0xff] }
 0x153   : > { %2085 = vmatpush1.bf16.msra.mxu1 %v2961_v50  ;;  %v2223_v50 = vld [vmem:[%s4015_s4 + $0x40] sm:$0xff] }
 0x154   : > { %2126 = vmatpush1.bf16.msra.mxu0 %v2964_v51  ;;  %2086 = vmatprep.subr.bf16.mxu1 %v2969_v41  ;;  %v2238_v51 = vld [vmem:[%s4015_s4 + $0xb8] sm:$0xff] }
 0x155   : > { %2127 = vmatprep.subr.bf16.mxu0 %v2972_v52  ;;  %v2222_v41 = vld [vmem:[%s4015_s4 + $0x38] sm:$0xff]  ;;  %v2237_v52 = vld [vmem:[%s4015_s4 + $0xb0] sm:$0xff] }
 0x157   : > { %2087 = vmatpush1.bf16.msra.mxu1 %v2967_v54  ;;  %v2221_v54 = vld [vmem:[%s4015_s4 + $0x30] sm:$0xff] }
 0x158   : > { %2128 = vmatpush1.bf16.msra.mxu0 %v2970_v55  ;;  %2088 = vmatprep.subr.bf16.mxu1 %v2975_v56  ;;  %v2236_v55 = vld [vmem:[%s4015_s4 + $0xa8] sm:$0xff] }
 0x159   : > { %2129 = vmatprep.subr.bf16.mxu0 %v2978_v57  ;;  %v2220_v56 = vld [vmem:[%s4015_s4 + $0x28] sm:$0xff]  ;;  %v2235_v57 = vld [vmem:[%s4015_s4 + $0xa0] sm:$0xff] }
 0x15b   : > { %2089 = vmatpush1.bf16.msra.mxu1 %v2973_v58  ;;  %v2219_v58 = vld [vmem:[%s4015_s4 + $0x20] sm:$0xff] }
 0x15c   : > { %2130 = vmatpush1.bf16.msra.mxu0 %v2976_v59  ;;  %2090 = vmatprep.subr.bf16.mxu1 %v2981_v60  ;;  %v2234_v59 = vld [vmem:[%s4015_s4 + $0x98] sm:$0xff] }
 0x15d   : > { %2131 = vmatprep.subr.bf16.mxu0 %v2984_v61  ;;  %v2218_v60 = vld [vmem:[%s4015_s4 + $0x18] sm:$0xff]  ;;  %v2233_v61 = vld [vmem:[%s4015_s4 + $0x90] sm:$0xff] }
 0x15f   : > { %2091 = vmatpush1.bf16.msra.mxu1 %v2979_v62  ;;  %v2217_v62 = vld [vmem:[%s4015_s4 + $0x10] sm:$0xff] }
 0x160   : > { %2132 = vmatpush1.bf16.msra.mxu0 %v2982_v63  ;;  %2092 = vmatprep.subr.bf16.mxu1 %v2987_v0  ;;  %v2232_v63 = vld [vmem:[%s4015_s4 + $0x88] sm:$0xff] }
 0x161   : > { %2133 = vmatprep.subr.bf16.mxu0 %v2990_v1  ;;  %v2216_v0 = vld [vmem:[%s4015_s4 + $0x8] sm:$0xff]  ;;  %v2231_v1 = vld [vmem:[%s4015_s4 + $0x80] sm:$0xff] }
 0x163   : > { %2093 = vmatpush1.bf16.msra.mxu1 %v2985_v2  ;;  %v2215_v2 = vld [vmem:[%s4015_s4] sm:$0xff] }
 0x164   : > { %2134 = vmatpush1.bf16.msra.mxu0 %v2988_v3  ;;  %2094 = vmatprep.subr.bf16.mxu1 %v2993_v4  ;;  %v1899_v3 = vpop.f32.mrf.mxu0 }
 0x165   : > { %2135 = vmatprep.subr.bf16.mxu0 %v2996_v5 }
 0x166   : > { %v1901_v4 = vpop.f32.mrf.mxu0 }
 0x167   : > { %2095 = vmatpush1.bf16.msra.mxu1 %v2991_v6 }
 0x168   : > { %2136 = vmatpush1.bf16.msra.mxu0 %v2994_v7  ;;  %2096 = vmatprep.subr.bf16.mxu1 %v2999_v9  ;;  %v1903_v5 = vpop.f32.mrf.mxu0 }
 0x169   : > { %2137 = vmatprep.subr.bf16.mxu0 %v3002_v10 }
 0x16a   : > { %v1905_v6 = vpop.f32.mrf.mxu0 }
 0x16b   : > { %2097 = vmatpush2.bf16.msra.mxu1 %v2997_v11  ;;  %v772_v11 = vlaneseq }
 0x16c   : > { %2138 = vmatpush1.bf16.msra.mxu0 %v3000_v12  ;;  %2098 = vmatprep.subr.bf16.mxu1 %v3005_v13 }
 0x16d   : > { %2147 = vmatprep.subr.bf16.mxu0 %v3008_v14  ;;  %v773_v14 = vshrl.u32 %v772_v11, 7 }
 0x16f   : > { %2099 = vmatpush2.bf16.msra.mxu1 %v3003_v15 }
 0x170   : > { %2148 = vmatpush2.bf16.msra.mxu0 %v3006_v16  ;;  %2100 = vmatprep.subr.bf16.mxu1 %v3011_v18 }
 0x171   : > { %2149 = vmatprep.subr.bf16.mxu0 %v3014_v19  ;;  %v774_v19 = vsub.s32 0, %v773_v14 }
 0x173   : > { %2101 = vmatpush2.bf16.msra.mxu1 %v3009_v20  ;;  %v770_v20 = vld [vmem:[%s4014_s3] sm:$0x3] }
 0x174   : > { %2150 = vmatpush2.bf16.msra.mxu0 %v3012_v21  ;;  %2102 = vmatprep.subr.bf16.mxu1 %v3017_v22  ;;  %v778_v22 = vsub.s32 1, %v773_v14 }
 0x175   : > { %2151 = vmatprep.subr.bf16.mxu0 %v3020_v23 }
 0x177   : > { %2103 = vmatpush2.bf16.msra.mxu1 %v3015_v24 }
 0x178   : > { %2152 = vmatpush2.bf16.msra.mxu0 %v3018_v25  ;;  %2104 = vmatprep.subr.bf16.mxu1 %v3023_v26  ;;  %v775_v25 = vrot.slane %v770_v20, %v774_v19  ;;  %v779_v26 = vrot.slane %v770_v20, %v778_v22 }
 0x179   : > { %2153 = vmatprep.subr.bf16.mxu0 %v3026_v27 }
 0x17b   : > { %2105 = vmatpush2.bf16.msra.mxu1 %v3021_v28 }
 0x17c   : > { %2154 = vmatpush2.bf16.msra.mxu0 %v3024_v17  ;;  %2106 = vmatprep.subr.bf16.mxu1 %v3029_v29  ;;  %v1900_v17 = vadd.f32 %v1899_v3, %v775_v25  ;;  %v1902_v29 = vadd.f32 %v1901_v4, %v779_v26 }
 0x17f   : > { %2156 = vmatmul.mubr.bf16.vlgmr.msra.gmra.mxu0 %v533_v32  ;;  %2107 = vmatpush2.bf16.msra.mxu1 %v3027_v31 }
 0x180   : > { %2108 = vmatprep.subr.bf16.mxu1 %v3032_v46 }
 0x183   : > { %2109 = vmatpush2.bf16.msra.mxu1 %v3030_v33  ;;  %v1904_v33 = vadd.f32 %v1903_v5, %v775_v25 }
 0x184   : > { %2110 = vmatprep.subr.bf16.mxu1 %v3035_v35 }
 0x187   : > { %2111 = vmatpush2.bf16.msra.mxu1 %v3033_v36 }
 0x188   : > { %2659 = vmatprep.subr.mxu1 %v2246_v45 }
 0x18a   : > { %2113 = vmatmul.mubr.bf16.vlgmr.msra.gmra.mxu1 %v3424_v53  ;;  %v2244_v53 = vld [vmem:[%s4015_s4 + $0xe8] sm:$0xff] }
 0x18b   : > { %2660 = vmatpush3.msra.mxu1 %v2230_v38  ;;  %v1906_v38 = vadd.f32 %v1905_v6, %v779_v26 }
 0x18c   : > { %2661 = vmatprep.subr.mxu1 %v2245_v39 }
 0x18d   : > { %2662 = vmatpush3.msra.mxu1 %v2229_v42 }
 0x18e   : > { %2663 = vmatprep.subr.mxu1 %v2244_v53 }
 0x18f   : > { %2664 = vmatpush3.msra.mxu1 %v2228_v8 }
 0x190   : > { %2665 = vmatprep.subr.mxu1 %v2243_v30 }
 0x191   : > { %2666 = vmatpush3.msra.mxu1 %v2227_v34 }
 0x192   : > { %2667 = vmatprep.subr.mxu1 %v2242_v43 }
 0x193   : > { %2668 = vmatpush3.msra.mxu1 %v2226_v37 }
 0x194   : > { %2669 = vmatprep.subr.mxu1 %v2241_v40 }
 0x195   : > { %2670 = vmatpush3.msra.mxu1 %v2225_v44 }
 0x196   : > { %2671 = vmatprep.subr.mxu1 %v2240_v47 }
 0x197   : > { %2672 = vmatpush3.msra.mxu1 %v2224_v48 }
 0x198   : > { %2673 = vmatprep.subr.mxu1 %v2239_v49 }
 0x199   : > { %2674 = vmatpush3.msra.mxu1 %v2223_v50 }
 0x19a   : > { %2675 = vmatprep.subr.mxu1 %v2238_v51 }
 0x19b   : > { %2676 = vmatpush3.msra.mxu1 %v2222_v41 }
 0x19c   : > { %2677 = vmatprep.subr.mxu1 %v2237_v52 }
 0x19d   : > { %2678 = vmatpush3.msra.mxu1 %v2221_v54 }
 0x19e   : > { %2679 = vmatprep.subr.mxu1 %v2236_v55 }
 0x19f   : > { %2680 = vmatpush3.msra.mxu1 %v2220_v56 }
 0x1a0   : > { %2681 = vmatprep.subr.mxu1 %v2235_v57 }
 0x1a1   : > { %2682 = vmatpush3.msra.mxu1 %v2219_v58 }
 0x1a2   : > { %2683 = vmatprep.subr.mxu1 %v2234_v59 }
 0x1a3   : > { %2684 = vmatpush3.msra.mxu1 %v2218_v60 }
 0x1a4   : > { %2685 = vmatprep.subr.mxu1 %v2233_v61 }
 0x1a5   : > { %2686 = vmatpush3.msra.mxu1 %v2217_v62 }
 0x1a6   : > { %2687 = vmatprep.subr.mxu1 %v2232_v63 }
 0x1a7   : > { %2688 = vmatpush3.msra.mxu1 %v2216_v0 }
 0x1a8   : > { %2689 = vmatprep.subr.mxu1 %v2231_v1 }
 0x1a9   : > { %2690 = vmatpush3.msra.mxu1 %v2215_v2 }
 0x1ca   : > { %v1942_v9 = vpop.f32.mrf.mxu1 }
 0x1cb   : > { %v1943_v31 = vadd.f32 %v1942_v9, %v1900_v17 }
 0x1cc   : > { %v1944_v12 = vpop.f32.mrf.mxu1 }
 0x1cd   : > { %v1945_v35 = vadd.f32 %v1944_v12, %v1902_v29 }
 0x1ce   : > { %v1946_v15 = vpop.f32.mrf.mxu1 }
 0x1cf   : > { %v1985_v7 = vpop.f32.mrf.mxu0  ;;  %v1947_v39 = vadd.f32 %v1946_v15, %v1904_v33 }
 0x1d0   : > { %v1948_v21 = vpop.f32.mrf.mxu1  ;;  %v1986_v36 = vadd.f32 %v1985_v7, %v1943_v31 }
 0x1d1   : > { %v1987_v10 = vpop.f32.mrf.mxu0  ;;  %v1949_v30 = vadd.f32 %v1948_v21, %v1906_v38 }
 0x1d2   : > { %v1988_v42 = vadd.f32 %v1987_v10, %v1945_v35 }
 0x1d3   : > { %v1989_v13 = vpop.f32.mrf.mxu0 }
 0x1d4   : > { %v1990_v34 = vadd.f32 %v1989_v13, %v1947_v39 }
 0x1d5   : > { %v1991_v16 = vpop.f32.mrf.mxu0 }
 0x1d6   : > { %v1992_v47 = vadd.f32 %v1991_v16, %v1949_v30 }
 0x20a   : > { %v2028_v23 = vpop.f32.mrf.mxu1 }
 0x20b   : > { %v2029_v53 = vadd.f32 %v2028_v23, %v1986_v36 }
 0x20c   : > { %v2030_v27 = vpop.f32.mrf.mxu1 }
 0x20d   : > { %v2031_v43 = vadd.f32 %v2030_v27, %v1988_v42 }
 0x20e   : > { %v2032_v46 = vpop.f32.mrf.mxu1 }
 0x20f   : > { %v2071_v18 = vpop.f32.mrf.mxu0  ;;  %v2033_v48 = vadd.f32 %v2032_v46, %v1990_v34 }
 0x210   : > { %v2034_v8 = vpop.f32.mrf.mxu1  ;;  %v2072_v37 = vadd.f32 %v2071_v18, %v2029_v53 }
 0x211   : > { %v2073_v24 = vpop.f32.mrf.mxu0  ;;  %v2035_v41 = vadd.f32 %v2034_v8, %v1992_v47 }
 0x212   : > { %v2074_v49 = vadd.f32 %v2073_v24, %v2031_v43 }
 0x213   : > { %v2075_v28 = vpop.f32.mrf.mxu0 }
 0x214   : > { %v2076_v52 = vadd.f32 %v2075_v28, %v2033_v48 }
 0x215   : > { %v2077_v32 = vpop.f32.mrf.mxu0 }
 0x216   : > { %v2078_v57 = vadd.f32 %v2077_v32, %v2035_v41 }
 0x23f   : > { %v2157_v45 = vpop.f32.mrf.mxu0 }
 0x241   : > { %v2159_v40 = vpop.f32.mrf.mxu0 }
 0x243   : > { %v2161_v55 = vpop.f32.mrf.mxu0 }
 0x245   : > { %v2163_v1 = vpop.f32.mrf.mxu0 }
 0x24a   : > { %v2114_v44 = vpop.f32.mrf.mxu1 }
 0x24b   : > { %v2115_v50 = vadd.f32 %v2114_v44, %v2072_v37 }
 0x24c   : > { %v2116_v51 = vpop.f32.mrf.mxu1 }
 0x24d   : > { %v2117_v54 = vadd.f32 %v2116_v51, %v2074_v49  ;;  %v2158_v58 = vadd.f32 %v2157_v45, %v2115_v50 }
 0x24e   : > { %v2118_v56 = vpop.f32.mrf.mxu1 }
 0x24f   : > { %v2160_v59 = vadd.f32 %v2159_v40, %v2117_v54  ;;  %v2119_v60 = vadd.f32 %v2118_v56, %v2076_v52  ;;  %v2194_v2 = vmul.f32 %v2158_v58, %v2158_v58 }
 0x250   : > { %v2120_v61 = vpop.f32.mrf.mxu1 }
 0x251   : > { %v2657_v62 = vpack.c.bf16 %v2160_v59, %v2158_v58  ;;  %v2162_v63 = vadd.f32 %v2161_v55, %v2119_v60  ;;  %v2121_v0 = vadd.f32 %v2120_v61, %v2078_v57  ;;  %v2195_v11 = vmul.f32 %v2160_v59, %v2160_v59 }
 0x253   : > { %2178 = vst [vmem:[%s278_s30] sm:$0xff] %v2657_v62  ;;  %v2180_v3 = vadd.f32 %v2162_v63, %v2158_v58  ;;  %v2196_v4 = vmul.f32 %v2162_v63, %v2162_v63  ;;  %v2164_v5 = vadd.f32 %v2163_v1, %v2121_v0 }
 0x255   : > { %v2181_v6 = vrot.slane %v2180_v3, 4  ;;  %v2198_v7 = vadd.f32 %v2196_v4, %v2194_v2  ;;  %v2658_v9 = vpack.c.bf16 %v2164_v5, %v2162_v63  ;;  %v2187_v10 = vadd.f32 %v2164_v5, %v2160_v59 }
 0x256   : > { %v2197_v12 = vmul.f32 %v2164_v5, %v2164_v5 }
 0x257   : > { %v2182_v13 = vadd.f32 %v2181_v6, %v2180_v3  ;;  %v2199_v14 = vrot.slane %v2198_v7, 4  ;;  %2179 = vst [vmem:[%s278_s30 + $0x8] sm:$0xff] %v2658_v9  ;;  %v2188_v15 = vrot.slane %v2187_v10, 4 }
 0x258   : > { %v2205_v16 = vadd.f32 %v2197_v12, %v2195_v11 }
 0x259   : > { %v2183_v18 = vrot.slane %v2182_v13, 2  ;;  %v2200_v19 = vadd.f32 %v2199_v14, %v2198_v7  ;;  %v2189_v20 = vadd.f32 %v2188_v15, %v2187_v10 }
 0x25a   : > { %v2206_v21 = vrot.slane %v2205_v16, 4 }
 0x25b   : > { %v2190_v22 = vrot.slane %v2189_v20, 2  ;;  %v2201_v23 = vrot.slane %v2200_v19, 2  ;;  %v2184_v26 = vadd.f32 %v2183_v18, %v2182_v13 }
 0x25c   : > { %v2207_v24 = vadd.f32 %v2206_v21, %v2205_v16 }
 0x25d   : > { %v2191_v25 = vadd.f32 %v2190_v22, %v2189_v20  ;;  %v2202_v27 = vadd.f32 %v2201_v23, %v2200_v19  ;;  %v2185_v46 = vrot.slane %v2184_v26, 1 }
 0x25e   : > { %v2208_v28 = vrot.slane %v2207_v24, 2 }
 0x25f   : > { %v2203_v17 = vrot.slane %v2202_v27, 1  ;;  %v2192_v29 = vrot.slane %v2191_v25, 1  ;;  %v2186_v45 = vadd.f32 %v2185_v46, %v2184_v26 }
 0x260   : > { %v2209_v31 = vadd.f32 %v2208_v28, %v2207_v24 }
 0x261   : > { %v2204_v33 = vadd.f32 %v2203_v17, %v2202_v27  ;;  %v2193_v35 = vadd.f32 %v2192_v29, %v2191_v25 }
 0x262   : > { %v2210_v32 = vrot.slane %v2209_v31, 1 }
 0x263   : > { %v2213_v39 = vsel %vm331_vm1, %v2186_v45, %v2204_v33 }
 0x264   : > { %v2211_v36 = vadd.f32 %v2210_v32, %v2209_v31 }
 0x266   : > { %v2214_v38 = vsel %vm331_vm1, %v2193_v35, %v2211_v36 }
 0x267   : > { %2311 = vmatprep.mubr.f32.mxu1 %v2214_v38 }
 0x268   : > { %2312 = vmatmul.mubr.f32.vlgmr.msra.gmra.mxu1 %v2213_v39 }
 0x328   : > { %v2691_v42 = vpop.f32.mrf.mxu1 }
 0x32a   : > { %v2692_v53 = vpop.f32.mrf.mxu1 }
 0x32b   : > { %v2693_v8 = vadd.f32 %v2692_v53, %v2691_v42 }
 0x32d   : > { %2318 = vst.msk [vmem:[%s282_s10] sm:$0x3] %vm2317_vm9, %v2693_v8 }
 0x32e PF: > { %s17_s21 = sadd.s32 1, %s3042_s21  }
 0x32f   : > { %p14_p4 = scmp.ge.s32.totalorder %s17_s21, 4  }
 0x331   :  { %16 = sbr.rel (!%p14_p4) target bundleno = 1 (0x1), region = 85 }

// kernel: up_forward.8
= control target key start
LH: loop header
LB: loop body
LE: loop exit
PB: predicated region body
PF: predicated region fallthrough
CT: control target
= control target key end

     0   :  { %s1833_s18 = smov 0   ;;  %s2318_s0 = inlined_call_operand.vmem [shape: bf16[2,16,256], index: 0, kind: input, shape index: {}]   ;;  %s2319_s1 = inlined_call_operand.vmem [shape: bf16[864,256], index: 1, kind: input, shape index: {}]   ;;  %s2320_s2 = inlined_call_operand.vmem [shape: f32[1,256], index: 2, kind: input, shape index: {}]   ;;  %s2321_s3 = inlined_call_operand.vmem [shape: f32[256,16], index: 3, kind: input, shape index: {}]   ;;  %s2322_s4 = inlined_call_operand.vmem [shape: bf16[2,16,256], index: 4, kind: output, shape index: {0}]   ;;  %s2323_s5 = inlined_call_operand.vmem [shape: f32[2,2,16], index: 5, kind: output, shape index: {1}]  }
   0x1 LB: > { %s1450_s19 = sadd.s32 4294967295, %s1797_s18   ;;  %p1454_p0 = scmp.ge.s32.totalorder %s1797_s18, 1  ;;  %s1797_s18 = sphi %s1833_s18, %s16_s18  }
   0x2   : > { %p190_p1 = scmp.lt.s32.totalorder %s1797_s18, 3 }
   0x4   : > { %p191_p2 = pnand %p1454_p0, %p190_p1 }
   0x5   : > { %p222_p3 = scmp.lt.s32.totalorder (!%p191_p2), %s1450_s19, 1  ;;  %s1799_s13 = smov (!%p191_p2), 16  }
   0x6   : > { %194 = sbr.rel (%p191_p2) target bundleno = 708 (0x2c4), region = 36  ;;  %s1800_s6 = smov (!%p191_p2), 32  }
   0x7   : > { %s1801_s15 = smov (!%p191_p2), 64  }
   0xb   : > { %v1629_v0 = vld [vmem:[%s2319_s1 + $0x74] ss:$8 sps:$4 sm:$0xff]   ;;  %v1631_v1 = vld [vmem:[%s2319_s1 + $0x70] ss:$8 sps:$4 sm:$0xff]   ;;  %s2327_s19 = smov (!%p222_p3, %s1450_s19), 1  ;;  %vm251_vm0 = vcmask 130048  }
   0xc   : > { %1039 = vmatprep.subr.bf16.mxu0 %v1629_v0  ;;  %v1632_v2 = vld [vmem:[%s2319_s1 + $0x64] ss:$8 sps:$4 sm:$0xff]   ;;  %v1634_v3 = vld [vmem:[%s2319_s1 + $0x60] ss:$8 sps:$4 sm:$0xff]   ;;  %s1575_s28 = sshll.u32 %s2327_s19, 4  ;;  %vm284_vm1 = vcmask 1040384  }
   0xd   : > { %1040 = vmatpush1.bf16.msra.mxu0 %v1631_v1  ;;  %v1635_v4 = vld [vmem:[%s2319_s1 + $0x54] ss:$8 sps:$4 sm:$0xff]   ;;  %s226_s8 = scalar_lea.vmem %s2318_s0, %s1575_s28  ;;  %v1637_v6 = vld [vmem:[%s2319_s1 + $0x50] ss:$8 sps:$4 sm:$0xff]   ;;  %v1638_v7 = vld [vmem:[%s2319_s1 + $0x44] ss:$8 sps:$4 sm:$0xff]   ;;  %s231_s24 = scalar_lea.vmem %s2322_s4, %s1575_s28 }
   0xe   : > { %1041 = vmatprep.subr.bf16.mxu0 %v1632_v2  ;;  %v1626_v5 = vld [vmem:[%s226_s8] ss:$8 sps:$4 sm:$0xff]   ;;  %v1628_v8 = vld [vmem:[%s226_s8 + $0x4] ss:$8 sps:$4 sm:$0xff]   ;;  %v1641_v10 = vld [vmem:[%s2319_s1 + $0x34] ss:$8 sps:$4 sm:$0xff]  }
   0xf   : > { %247 = vrot.lane.b32.xlu0 %v1626_v5, %s1799_s13  ;;  %v1640_v9 = vld [vmem:[%s2319_s1 + $0x40] ss:$8 sps:$4 sm:$0xff]   ;;  %v1643_v11 = vld [vmem:[%s2319_s1 + $0x30] ss:$8 sps:$4 sm:$0xff]   ;;  %v1644_v12 = vld [vmem:[%s2319_s1 + $0x24] ss:$8 sps:$4 sm:$0xff]  }
  0x10   : > { %v1646_v13 = vld [vmem:[%s2319_s1 + $0x20] ss:$8 sps:$4 sm:$0xff]   ;;  %v1647_v14 = vld [vmem:[%s2319_s1 + $0x14] ss:$8 sps:$4 sm:$0xff]   ;;  %v1649_v15 = vld [vmem:[%s2319_s1 + $0x10] ss:$8 sps:$4 sm:$0xff]  }
  0x11   : > { %1042 = vmatpush1.bf16.msra.mxu0 %v1634_v3  ;;  %v1650_v16 = vld [vmem:[%s2319_s1 + $0x4] ss:$8 sps:$4 sm:$0xff]   ;;  %v1677_v17 = vld [vmem:[%s2319_s1 + $0x174] ss:$8 sps:$4 sm:$0xff]   ;;  %v1679_v18 = vld [vmem:[%s2319_s1 + $0x170] ss:$8 sps:$4 sm:$0xff]  }
  0x12   : > { %1043 = vmatprep.subr.bf16.mxu0 %v1635_v4  ;;  %1082 = vmatprep.subr.bf16.mxu1 %v1677_v17  ;;  %v1680_v19 = vld [vmem:[%s2319_s1 + $0x164] ss:$8 sps:$4 sm:$0xff]   ;;  %v1652_v20 = vld [vmem:[%s2319_s1] ss:$8 sps:$4 sm:$0xff]   ;;  %v1686_v22 = vld [vmem:[%s2319_s1 + $0x154] ss:$8 sps:$4 sm:$0xff]  }
  0x13   : > { %249 = vrot.lane.b32.xlu0 %v1628_v8, %s1799_s13  ;;  %1083 = vmatpush1.bf16.msra.mxu1 %v1679_v18  ;;  %v1682_v21 = vld [vmem:[%s2319_s1 + $0x160] ss:$8 sps:$4 sm:$0xff]   ;;  %v1653_v23 = vld [vmem:[%s2319_s1 + $0xf4] ss:$8 sps:$4 sm:$0xff]   ;;  %v1655_v24 = vld [vmem:[%s2319_s1 + $0xf0] ss:$8 sps:$4 sm:$0xff]  }
  0x14   : > { %1084 = vmatprep.subr.bf16.mxu1 %v1680_v19  ;;  %v1688_v25 = vld [vmem:[%s2319_s1 + $0x150] ss:$8 sps:$4 sm:$0xff]   ;;  %v1692_v26 = vld [vmem:[%s2319_s1 + $0x144] ss:$8 sps:$4 sm:$0xff]   ;;  %v1658_v28 = vld [vmem:[%s2319_s1 + $0xe0] ss:$8 sps:$4 sm:$0xff]  }
  0x15   : > { %1044 = vmatpush1.bf16.msra.mxu0 %v1637_v6  ;;  %v1656_v27 = vld [vmem:[%s2319_s1 + $0xe4] ss:$8 sps:$4 sm:$0xff]   ;;  %v1694_v29 = vld [vmem:[%s2319_s1 + $0x140] ss:$8 sps:$4 sm:$0xff]   ;;  %v1698_v30 = vld [vmem:[%s2319_s1 + $0x134] ss:$8 sps:$4 sm:$0xff]  }
  0x16   : > { %1045 = vmatprep.subr.bf16.mxu0 %v1638_v7  ;;  %v1659_v31 = vld [vmem:[%s2319_s1 + $0xd4] ss:$8 sps:$4 sm:$0xff]   ;;  %v1661_v32 = vld [vmem:[%s2319_s1 + $0xd0] ss:$8 sps:$4 sm:$0xff]   ;;  %v1704_v34 = vld [vmem:[%s2319_s1 + $0x124] ss:$8 sps:$4 sm:$0xff]  }
  0x17   : > { %1085 = vmatpush1.bf16.msra.mxu1 %v1682_v21  ;;  %v1700_v33 = vld [vmem:[%s2319_s1 + $0x130] ss:$8 sps:$4 sm:$0xff]   ;;  %v1662_v35 = vld [vmem:[%s2319_s1 + $0xc4] ss:$8 sps:$4 sm:$0xff]   ;;  %v1664_v36 = vld [vmem:[%s2319_s1 + $0xc0] ss:$8 sps:$4 sm:$0xff]  }
  0x18   : > { %1086 = vmatprep.subr.bf16.mxu1 %v1686_v22  ;;  %v1706_v37 = vld [vmem:[%s2319_s1 + $0x120] ss:$8 sps:$4 sm:$0xff]   ;;  %v1710_v38 = vld [vmem:[%s2319_s1 + $0x114] ss:$8 sps:$4 sm:$0xff]   ;;  %v1667_v40 = vld [vmem:[%s2319_s1 + $0xb0] ss:$8 sps:$4 sm:$0xff]  }
  0x19   : > { %1046 = vmatpush1.bf16.msra.mxu0 %v1640_v9  ;;  %v1665_v39 = vld [vmem:[%s2319_s1 + $0xb4] ss:$8 sps:$4 sm:$0xff]   ;;  %v1712_v41 = vld [vmem:[%s2319_s1 + $0x110] ss:$8 sps:$4 sm:$0xff]   ;;  %v1716_v42 = vld [vmem:[%s2319_s1 + $0x104] ss:$8 sps:$4 sm:$0xff]  }
  0x1a   : > { %1047 = vmatprep.subr.bf16.mxu0 %v1641_v10  ;;  %v1668_v43 = vld [vmem:[%s2319_s1 + $0xa4] ss:$8 sps:$4 sm:$0xff]   ;;  %v1670_v44 = vld [vmem:[%s2319_s1 + $0xa0] ss:$8 sps:$4 sm:$0xff]   ;;  %v1722_v46 = vld [vmem:[%s2319_s1 + $0x1f4] ss:$8 sps:$4 sm:$0xff]  }
  0x1b   : > { %1087 = vmatpush1.bf16.msra.mxu1 %v1688_v25  ;;  %v1718_v45 = vld [vmem:[%s2319_s1 + $0x100] ss:$8 sps:$4 sm:$0xff]   ;;  %v1671_v47 = vld [vmem:[%s2319_s1 + $0x94] ss:$8 sps:$4 sm:$0xff]   ;;  %v1673_v48 = vld [vmem:[%s2319_s1 + $0x90] ss:$8 sps:$4 sm:$0xff]  }
  0x1c   : > { %1088 = vmatprep.subr.bf16.mxu1 %v1692_v26  ;;  %v1724_v49 = vld [vmem:[%s2319_s1 + $0x1f0] ss:$8 sps:$4 sm:$0xff]   ;;  %v1728_v50 = vld [vmem:[%s2319_s1 + $0x1e4] ss:$8 sps:$4 sm:$0xff]   ;;  %v1676_v52 = vld [vmem:[%s2319_s1 + $0x80] ss:$8 sps:$4 sm:$0xff]  }
  0x1d   : > { %1048 = vmatpush1.bf16.msra.mxu0 %v1643_v11  ;;  %v1674_v51 = vld [vmem:[%s2319_s1 + $0x84] ss:$8 sps:$4 sm:$0xff]   ;;  %v1730_v53 = vld [vmem:[%s2319_s1 + $0x1e0] ss:$8 sps:$4 sm:$0xff]   ;;  %v1734_v54 = vld [vmem:[%s2319_s1 + $0x1d4] ss:$8 sps:$4 sm:$0xff]  }
  0x1e   : > { %1049 = vmatprep.subr.bf16.mxu0 %v1644_v12  ;;  %v1685_v55 = vld [vmem:[%s2319_s1 + $0x274] ss:$8 sps:$4 sm:$0xff]   ;;  %v1736_v56 = vld [vmem:[%s2319_s1 + $0x1d0] ss:$8 sps:$4 sm:$0xff]   ;;  %v1740_v57 = vld [vmem:[%s2319_s1 + $0x1c4] ss:$8 sps:$4 sm:$0xff]  }
  0x1f   : > { %1089 = vmatpush1.bf16.msra.mxu1 %v1694_v29  ;;  %v1742_v58 = vld [vmem:[%s2319_s1 + $0x1c0] ss:$8 sps:$4 sm:$0xff]   ;;  %v1746_v59 = vld [vmem:[%s2319_s1 + $0x1b4] ss:$8 sps:$4 sm:$0xff]   ;;  %v1748_v60 = vld [vmem:[%s2319_s1 + $0x1b0] ss:$8 sps:$4 sm:$0xff]  }
  0x20   : > { %1090 = vmatprep.subr.bf16.mxu1 %v1698_v30  ;;  %v1752_v61 = vld [vmem:[%s2319_s1 + $0x1a4] ss:$8 sps:$4 sm:$0xff]   ;;  %v1754_v62 = vld [vmem:[%s2319_s1 + $0x1a0] ss:$8 sps:$4 sm:$0xff]   ;;  %v1758_v63 = vld [vmem:[%s2319_s1 + $0x194] ss:$8 sps:$4 sm:$0xff]  }
  0x21   : > { %1050 = vmatpush1.bf16.msra.mxu0 %v1646_v13  ;;  %v1760_v0 = vld [vmem:[%s2319_s1 + $0x190] ss:$8 sps:$4 sm:$0xff]   ;;  %vm285_vm2 = vsmask.f32 256  ;;  %v1764_v4 = vld [vmem:[%s2319_s1 + $0x184] ss:$8 sps:$4 sm:$0xff]  }
  0x22   : > { %1051 = vmatprep.subr.bf16.mxu0 %v1647_v14  ;;  %v1766_v5 = vld [vmem:[%s2319_s1 + $0x180] ss:$8 sps:$4 sm:$0xff]   ;;  %vm2045_vm3 = vmand %vm284_vm1, %vm285_vm2  ;;  %v1683_v30 = vld [vmem:[%s2319_s1 + $0x270] ss:$8 sps:$4 sm:$0xff]   ;;  %vm293_vm4 = vsmask.f32 7424 }
  0x23   : > { %1091 = vmatpush1.bf16.msra.mxu1 %v1700_v33  ;;  %v1691_v33 = vld [vmem:[%s2319_s1 + $0x264] ss:$8 sps:$4 sm:$0xff]   ;;  %vm346_vm5 = vcmask 1046528   ;;  %v1719_v6 = vld [vmem:[%s2319_s1 + $0x210] ss:$8 sps:$4 sm:$0xff]   ;;  %vm336_vm6 = vcmask 261120  }
  0x24   : > { %1092 = vmatprep.subr.bf16.mxu1 %v1704_v34  ;;  %vm362_vm7 = vcmask 523264   ;;  %vm1035_vm8 = vcmask 785408   ;;  %s1459_s28 = sshll.u32 %s2327_s19, 1  ;;  %vm1362_vm9 = vcmask 123904  }
  0x25   : > { %1052 = vmatpush1.bf16.msra.mxu0 %v1649_v15  ;;  %s235_s27 = scalar_lea.vmem %s2323_s5, %s1459_s28 }
  0x26   : > { %1053 = vmatprep.subr.bf16.mxu0 %v1650_v16 }
  0x27   : > { %1093 = vmatpush1.bf16.msra.mxu1 %v1706_v37 }
  0x28   : > { %1094 = vmatprep.subr.bf16.mxu1 %v1710_v38 }
  0x29   : > { %1054 = vmatpush1.bf16.msra.mxu0 %v1652_v20 }
  0x2a   : > { %1055 = vmatprep.subr.bf16.mxu0 %v1653_v23  ;;  %v1772_v23 = vld [vmem:[%s2319_s1 + $0x354] ss:$8 sps:$4 sm:$0xff]  }
  0x2b   : > { %1095 = vmatpush1.bf16.msra.mxu1 %v1712_v41 }
  0x2c   : > { %1096 = vmatprep.subr.bf16.mxu1 %v1716_v42 }
  0x2d   : > { %1056 = vmatpush2.bf16.msra.mxu0 %v1655_v24 }
  0x2e   : > { %1057 = vmatprep.subr.bf16.mxu0 %v1656_v27 }
  0x2f   : > { %1097 = vmatpush1.bf16.msra.mxu1 %v1718_v45 }
  0x30   : > { %1098 = vmatprep.subr.bf16.mxu1 %v1722_v46  ;;  %v1697_v46 = vld [vmem:[%s2319_s1 + $0x254] ss:$8 sps:$4 sm:$0xff]  }
  0x31   : > { %1058 = vmatpush2.bf16.msra.mxu0 %v1658_v28 }
  0x32   : > { %1059 = vmatprep.subr.bf16.mxu0 %v1659_v31 }
  0x33   : > { %1099 = vmatpush2.bf16.msra.mxu1 %v1724_v49 }
  0x34   : > { %1100 = vmatprep.subr.bf16.mxu1 %v1728_v50 }
  0x35   : > { %1060 = vmatpush2.bf16.msra.mxu0 %v1661_v32 }
  0x36   : > { %1061 = vmatprep.subr.bf16.mxu0 %v1662_v35 }
  0x37   : > { %1101 = vmatpush2.bf16.msra.mxu1 %v1730_v53  ;;  %v1695_v53 = vld [vmem:[%s2319_s1 + $0x250] ss:$8 sps:$4 sm:$0xff]  }
  0x38   : > { %1102 = vmatprep.subr.bf16.mxu1 %v1734_v54 }
  0x39   : > { %1062 = vmatpush2.bf16.msra.mxu0 %v1664_v36 }
  0x3a   : > { %1063 = vmatprep.subr.bf16.mxu0 %v1665_v39 }
  0x3b   : > { %1103 = vmatpush2.bf16.msra.mxu1 %v1736_v56  ;;  %v1703_v56 = vld [vmem:[%s2319_s1 + $0x244] ss:$8 sps:$4 sm:$0xff]  }
  0x3c   : > { %1104 = vmatprep.subr.bf16.mxu1 %v1740_v57 }
  0x3d   : > { %1064 = vmatpush2.bf16.msra.mxu0 %v1667_v40 }
  0x3e   : > { %1065 = vmatprep.subr.bf16.mxu0 %v1668_v43  ;;  %v1689_v43 = vld [vmem:[%s2319_s1 + $0x260] ss:$8 sps:$4 sm:$0xff]  }
  0x3f   : > { %1105 = vmatpush2.bf16.msra.mxu1 %v1742_v58 }
  0x40   : > { %1106 = vmatprep.subr.bf16.mxu1 %v1746_v59 }
  0x41   : > { %1066 = vmatpush2.bf16.msra.mxu0 %v1670_v44 }
  0x42   : > { %1067 = vmatprep.subr.bf16.mxu0 %v1671_v47 }
  0x43   : > { %1107 = vmatpush2.bf16.msra.mxu1 %v1748_v60 }
  0x44   : > { %1108 = vmatprep.subr.bf16.mxu1 %v1752_v61  ;;  %v1701_v61 = vld [vmem:[%s2319_s1 + $0x240] ss:$8 sps:$4 sm:$0xff]  }
  0x45   : > { %1068 = vmatpush2.bf16.msra.mxu0 %v1673_v48 }
  0x46   : > { %1069 = vmatprep.subr.bf16.mxu0 %v1674_v51 }
  0x47   : > { %1109 = vmatpush2.bf16.msra.mxu1 %v1754_v62 }
  0x48   : > { %1110 = vmatprep.subr.bf16.mxu1 %v1758_v63  ;;  %v1709_v63 = vld [vmem:[%s2319_s1 + $0x234] ss:$8 sps:$4 sm:$0xff]  }
  0x49   : > { %1070 = vmatpush2.bf16.msra.mxu0 %v1676_v52 }
  0x4a   : > { %1125 = vmatprep.subr.bf16.mxu0 %v1685_v55 }
  0x4b   : > { %1111 = vmatpush2.bf16.msra.mxu1 %v1760_v0 }
  0x4c   : > { %1112 = vmatprep.subr.bf16.mxu1 %v1764_v4  ;;  %v1713_v4 = vld [vmem:[%s2319_s1 + $0x220] ss:$8 sps:$4 sm:$0xff]  }
  0x4f   : > { %1113 = vmatpush2.bf16.msra.mxu1 %v1766_v5  ;;  %v1721_v5 = vld [vmem:[%s2319_s1 + $0x214] ss:$8 sps:$4 sm:$0xff]  }
  0x50   : > { %1172 = vmatprep.subr.bf16.mxu1 %v1772_v23  ;;  %v1775_v23 = vld [vmem:[%s2319_s1 + $0x284] ss:$8 sps:$4 sm:$0xff]  }
  0x81   : > { %v248_v1 = vpop.permute.xlu0 %247 }
  0x82   : > { %v256_v2 = vsel %vm251_vm0, 0, %v248_v1 }
  0x83   : > { %v259_v3 = vshrl.u32 %v256_v2, 16  ;;  %v262_v8 = vshll.u32 %v256_v2, 16  ;;  %v1707_v2 = vld [vmem:[%s2319_s1 + $0x230] ss:$8 sps:$4 sm:$0xff]  }
  0x85   : > { %v261_v7 = vrot.slane %v259_v3, 7  ;;  %v250_v9 = vpop.permute.xlu0 %249  ;;  %v1715_v3 = vld [vmem:[%s2319_s1 + $0x224] ss:$8 sps:$4 sm:$0xff]  }
  0x86   : > { %v252_v10 = vsel %vm251_vm0, %v248_v1, %v250_v9  ;;  %v258_v11 = vsel %vm251_vm0, %v250_v9, 0  ;;  %v1733_v9 = vld [vmem:[%s2319_s1 + $0x2f4] ss:$8 sps:$4 sm:$0xff]  }
  0x87   : > { %v264_v12 = vor.u32 %v262_v8, %v261_v7  ;;  %v290_v13 = vsel %vm2045_vm3, %v261_v7, 0  ;;  %v266_v14 = vshrl.u32 %v252_v10, 16  ;;  %v272_v15 = vshrl.u32 %v258_v11, 16  ;;  %v1727_v7 = vld [vmem:[%s2319_s1 + $0x204] ss:$8 sps:$4 sm:$0xff]  }
  0x88   : > { %v269_v17 = vshll.u32 %v252_v10, 16  ;;  %v302_v19 = vshll.u32 %v290_v13, 16  ;;  %v275_v21 = vshll.u32 %v258_v11, 16  ;;  %v348_v57 = vrot.slane %v290_v13, 1  ;;  %v1725_v8 = vld [vmem:[%s2319_s1 + $0x200] ss:$8 sps:$4 sm:$0xff]  }
  0x89   : > { %v268_v16 = vrot.slane %v266_v14, 7  ;;  %v287_v18 = vsel %vm2045_vm3, 0, %v264_v12  ;;  %v274_v20 = vrot.slane %v272_v15, 7  ;;  %v1731_v10 = vld [vmem:[%s2319_s1 + $0x2f0] ss:$8 sps:$4 sm:$0xff]  }
  0x8a   : > { %v297_v22 = vshll.u32 %v287_v18, 16  ;;  %v295_v28 = vshrl.u32 %v287_v18, 16  ;;  %v304_v32 = vrot.slane %v302_v19, 1  ;;  %v347_v52 = vrot.slane %v287_v18, 1  ;;  %v1739_v11 = vld [vmem:[%s2319_s1 + $0x2e4] ss:$8 sps:$4 sm:$0xff]  }
  0x8b   : > { %v271_v24 = vor.u32 %v269_v17, %v268_v16  ;;  %v291_v25 = vsel %vm2045_vm3, %v268_v16, 0  ;;  %v277_v26 = vor.u32 %v275_v21, %v274_v20  ;;  %v292_v27 = vsel %vm2045_vm3, %v274_v20, 0  ;;  %v1737_v12 = vld [vmem:[%s2319_s1 + $0x2e0] ss:$8 sps:$4 sm:$0xff]   ;;  %v1745_v13 = vld [vmem:[%s2319_s1 + $0x2d4] ss:$8 sps:$4 sm:$0xff]  }
  0x8c   : > { %v299_v29 = vrot.slane %v297_v22, 1  ;;  %v314_v35 = vshll.u32 %v291_v25, 16  ;;  %v326_v38 = vshll.u32 %v292_v27, 16  ;;  %v351_v58 = vrot.slane %v291_v25, 1  ;;  %v1743_v14 = vld [vmem:[%s2319_s1 + $0x2d0] ss:$8 sps:$4 sm:$0xff]  }
  0x8d   : > { %v288_v31 = vsel %vm2045_vm3, 0, %v271_v24  ;;  %v2070_v34 = vsel %vm2045_vm3, 0, %v277_v26  ;;  %v349_v59 = vsel %vm346_vm5, %v347_v52, %v348_v57  ;;  %v354_v0 = vrot.slane %v292_v27, 1  ;;  %v1751_v15 = vld [vmem:[%s2319_s1 + $0x2c4] ss:$8 sps:$4 sm:$0xff]   ;;  %v1274_v52 = vld [vmem:[%s2321_s3 + $0x70] sm:$0xff] }
  0x8e   : > { %v309_v36 = vshll.u32 %v288_v31, 16  ;;  %1071 = vmatprep.mubr.bf16.mxu0 %v288_v31  ;;  %v300_v37 = vor.u32 %v299_v29, %v295_v28  ;;  %v321_v39 = vshll.u32 %v2070_v34, 16  ;;  %v307_v40 = vshrl.u32 %v288_v31, 16  ;;  %v1749_v16 = vld [vmem:[%s2319_s1 + $0x2c0] ss:$8 sps:$4 sm:$0xff]   ;;  %v1287_v57 = vld [vmem:[%s2321_s3 + $0xd8] sm:$0xff] }
  0x8f   : > { %1072 = vmatmul.mubr.bf16.vlgmr.msra.gmra.mxu0 %v287_v18  ;;  %v319_v44 = vshrl.u32 %v2070_v34, 16  ;;  %v316_v48 = vrot.slane %v314_v35, 1  ;;  %v328_v50 = vrot.slane %v326_v38, 1  ;;  %v350_v55 = vrot.slane %v288_v31, 1  ;;  %v1757_v17 = vld [vmem:[%s2319_s1 + $0x2b4] ss:$8 sps:$4 sm:$0xff]  }
  0x90   : > { %v311_v41 = vrot.slane %v309_v36, 1  ;;  %v305_v42 = vsel %vm293_vm4, %v300_v37, %v304_v32  ;;  %1126 = vmatpush1.bf16.msra.mxu0 %v1683_v30  ;;  %v323_v45 = vrot.slane %v321_v39, 1  ;;  %v353_v60 = vrot.slane %v2070_v34, 1  ;;  %v1755_v18 = vld [vmem:[%s2319_s1 + $0x2b0] ss:$8 sps:$4 sm:$0xff]  }
  0x91   : > { %330 = vrot.lane.b32.xlu1 %v305_v42, %s1800_s6  ;;  %1127 = vmatprep.subr.bf16.mxu0 %v1691_v33  ;;  %v352_v62 = vsel %vm346_vm5, %v350_v55, %v351_v58  ;;  %v1763_v19 = vld [vmem:[%s2319_s1 + $0x2a4] ss:$8 sps:$4 sm:$0xff]   ;;  %v1761_v20 = vld [vmem:[%s2319_s1 + $0x2a0] ss:$8 sps:$4 sm:$0xff]   ;;  %v1769_v21 = vld [vmem:[%s2319_s1 + $0x294] ss:$8 sps:$4 sm:$0xff]  }
  0x92   : > { %v312_v47 = vor.u32 %v311_v41, %v307_v40  ;;  %v324_v49 = vor.u32 %v323_v45, %v319_v44  ;;  %v355_v1 = vsel %vm346_vm5, %v353_v60, %v354_v0  ;;  %v1767_v22 = vld [vmem:[%s2319_s1 + $0x290] ss:$8 sps:$4 sm:$0xff]   ;;  %v1773_v24 = vld [vmem:[%s2319_s1 + $0x280] ss:$8 sps:$4 sm:$0xff]   ;;  %v1778_v30 = vld [vmem:[%s2319_s1 + $0x344] ss:$8 sps:$4 sm:$0xff]  }
  0x93   : > { %v1770_v27 = vld [vmem:[%s2319_s1 + $0x350] ss:$8 sps:$4 sm:$0xff]   ;;  %v1776_v35 = vld [vmem:[%s2319_s1 + $0x340] ss:$8 sps:$4 sm:$0xff]   ;;  %v1802_v36 = vmov 0  }
  0x94   : > { %v317_v51 = vsel %vm293_vm4, %v312_v47, %v316_v48  ;;  %1128 = vmatpush1.bf16.msra.mxu0 %v1689_v43  ;;  %v329_v54 = vsel %vm293_vm4, %v324_v49, %v328_v50  ;;  %v1781_v39 = vld [vmem:[%s2319_s1 + $0x334] ss:$8 sps:$4 sm:$0xff]   ;;  %v1779_v40 = vld [vmem:[%s2319_s1 + $0x330] ss:$8 sps:$4 sm:$0xff]   ;;  %v1784_v41 = vld [vmem:[%s2319_s1 + $0x324] ss:$8 sps:$4 sm:$0xff]  }
  0x95   : > { %332 = vrot.lane.b32.xlu1 %v317_v51, %s1800_s6  ;;  %1129 = vmatprep.subr.bf16.mxu0 %v1697_v46  ;;  %v1782_v42 = vld [vmem:[%s2319_s1 + $0x320] ss:$8 sps:$4 sm:$0xff]   ;;  %v1787_v43 = vld [vmem:[%s2319_s1 + $0x314] ss:$8 sps:$4 sm:$0xff]   ;;  %v1785_v44 = vld [vmem:[%s2319_s1 + $0x310] ss:$8 sps:$4 sm:$0xff]  }
  0x96   : > { %334 = vrot.lane.b32.xlu0 %v329_v54, %s1800_s6  ;;  %v1790_v45 = vld [vmem:[%s2319_s1 + $0x304] ss:$8 sps:$4 sm:$0xff]   ;;  %v1788_v46 = vld [vmem:[%s2319_s1 + $0x300] ss:$8 sps:$4 sm:$0xff]   ;;  %v1291_v49 = vld [vmem:[%s2321_s3 + $0xf8] sm:$0xff] }
  0x97   : > { %v1275_v50 = vld [vmem:[%s2321_s3 + $0x78] sm:$0xff]  ;;  %v1290_v51 = vld [vmem:[%s2321_s3 + $0xf0] sm:$0xff]  ;;  %v1273_v54 = vld [vmem:[%s2321_s3 + $0x68] sm:$0xff] }
  0x98   : > { %1130 = vmatpush1.bf16.msra.mxu0 %v1695_v53  ;;  %v1289_v53 = vld [vmem:[%s2321_s3 + $0xe8] sm:$0xff]  ;;  %v1288_v55 = vld [vmem:[%s2321_s3 + $0xe0] sm:$0xff]  ;;  %v1271_v58 = vld [vmem:[%s2321_s3 + $0x58] sm:$0xff] }
  0x99   : > { %356 = vrot.lane.b32.xlu1 %v349_v59, %s1801_s15  ;;  %1131 = vmatprep.subr.bf16.mxu0 %v1703_v56  ;;  %v1272_v56 = vld [vmem:[%s2321_s3 + $0x60] sm:$0xff]  ;;  %v1286_v59 = vld [vmem:[%s2321_s3 + $0xd0] sm:$0xff] }
  0x9a   : > { %358 = vrot.lane.b32.xlu0 %v352_v62, %s1801_s15  ;;  %v1270_v60 = vld [vmem:[%s2321_s3 + $0x50] sm:$0xff]  ;;  %v1269_v62 = vld [vmem:[%s2321_s3 + $0x48] sm:$0xff]  ;;  %v1268_v0 = vld [vmem:[%s2321_s3 + $0x40] sm:$0xff] }
  0x9c   : > { %1132 = vmatpush1.bf16.msra.mxu0 %v1701_v61  ;;  %v1285_v61 = vld [vmem:[%s2321_s3 + $0xc8] sm:$0xff] }
  0x9d   : > { %360 = vrot.lane.b32.xlu1 %v355_v1, %s1801_s15  ;;  %1133 = vmatprep.subr.bf16.mxu0 %v1709_v63  ;;  %v1284_v63 = vld [vmem:[%s2321_s3 + $0xc0] sm:$0xff]  ;;  %v1283_v1 = vld [vmem:[%s2321_s3 + $0xb8] sm:$0xff] }
  0xa0   : > { %1134 = vmatpush1.bf16.msra.mxu0 %v1707_v2  ;;  %v1267_v2 = vld [vmem:[%s2321_s3 + $0x38] sm:$0xff] }
  0xa1   : > { %1135 = vmatprep.subr.bf16.mxu0 %v1715_v3  ;;  %v1282_v3 = vld [vmem:[%s2321_s3 + $0xb0] sm:$0xff] }
  0xa4   : > { %1136 = vmatpush1.bf16.msra.mxu0 %v1713_v4  ;;  %v1266_v4 = vld [vmem:[%s2321_s3 + $0x30] sm:$0xff] }
  0xa5   : > { %1137 = vmatprep.subr.bf16.mxu0 %v1721_v5  ;;  %v1281_v5 = vld [vmem:[%s2321_s3 + $0xa8] sm:$0xff] }
  0xa8   : > { %1138 = vmatpush1.bf16.msra.mxu0 %v1719_v6  ;;  %v1265_v6 = vld [vmem:[%s2321_s3 + $0x28] sm:$0xff] }
  0xa9   : > { %1139 = vmatprep.subr.bf16.mxu0 %v1727_v7  ;;  %v1280_v7 = vld [vmem:[%s2321_s3 + $0xa0] sm:$0xff] }
  0xac   : > { %1140 = vmatpush1.bf16.msra.mxu0 %v1725_v8  ;;  %v1264_v8 = vld [vmem:[%s2321_s3 + $0x20] sm:$0xff] }
  0xad   : > { %1141 = vmatprep.subr.bf16.mxu0 %v1733_v9  ;;  %v1279_v9 = vld [vmem:[%s2321_s3 + $0x98] sm:$0xff] }
  0xb0   : > { %1142 = vmatpush2.bf16.msra.mxu0 %v1731_v10  ;;  %v1263_v10 = vld [vmem:[%s2321_s3 + $0x18] sm:$0xff] }
  0xb1   : > { %1143 = vmatprep.subr.bf16.mxu0 %v1739_v11  ;;  %v1278_v11 = vld [vmem:[%s2321_s3 + $0x90] sm:$0xff] }
  0xb4   : > { %1144 = vmatpush2.bf16.msra.mxu0 %v1737_v12  ;;  %v1262_v12 = vld [vmem:[%s2321_s3 + $0x10] sm:$0xff] }
  0xb5   : > { %1145 = vmatprep.subr.bf16.mxu0 %v1745_v13  ;;  %v1277_v13 = vld [vmem:[%s2321_s3 + $0x88] sm:$0xff] }
  0xb8   : > { %1146 = vmatpush2.bf16.msra.mxu0 %v1743_v14  ;;  %v1261_v14 = vld [vmem:[%s2321_s3 + $0x8] sm:$0xff] }
  0xb9   : > { %1147 = vmatprep.subr.bf16.mxu0 %v1751_v15  ;;  %v1276_v15 = vld [vmem:[%s2321_s3 + $0x80] sm:$0xff] }
  0xbc   : > { %1148 = vmatpush2.bf16.msra.mxu0 %v1749_v16  ;;  %v1260_v16 = vld [vmem:[%s2321_s3] sm:$0xff] }
  0xbd   : > { %1149 = vmatprep.subr.bf16.mxu0 %v1757_v17 }
  0xc0   : > { %1150 = vmatpush2.bf16.msra.mxu0 %v1755_v18 }
  0xc1   : > { %1151 = vmatprep.subr.bf16.mxu0 %v1763_v19  ;;  %v485_v19 = vlaneseq }
  0xc4   : > { %1152 = vmatpush2.bf16.msra.mxu0 %v1761_v20 }
  0xc5   : > { %1153 = vmatprep.subr.bf16.mxu0 %v1769_v21  ;;  %v486_v21 = vshrl.u32 %v485_v19, 7 }
  0xc8   : > { %1154 = vmatpush2.bf16.msra.mxu0 %v1767_v22 }
  0xc9   : > { %1155 = vmatprep.subr.bf16.mxu0 %v1775_v23 }
  0xcc   : > { %1156 = vmatpush2.bf16.msra.mxu0 %v1773_v24  ;;  %v487_v24 = vsub.s32 0, %v486_v21 }
 0x103   : > { %v331_v25 = vpop.permute.xlu1 %330 }
 0x104   : > { %v368_v31 = vsel %vm336_vm6, %v2070_v34, %v331_v25 }
 0x107   : > { %v333_v26 = vpop.permute.xlu1 %332 }
 0x108   : > { %v335_v28 = vpop.permute.xlu0 %334  ;;  %v337_v29 = vsel %vm336_vm6, %v331_v25, %v333_v26  ;;  %v491_v25 = vsub.s32 1, %v486_v21 }
 0x109   : > { %1114 = vmatprep.mubr.bf16.mxu1 %v337_v29  ;;  %v338_v32 = vsel %vm336_vm6, %v333_v26, %v335_v28  ;;  %v483_v26 = vld [vmem:[%s2320_s2] sm:$0x3] }
 0x10a   : > { %1115 = vmatmul.mubr.bf16.vlgmr.msra.gmra.mxu1 %v368_v31  ;;  %v488_v29 = vrot.slane %v483_v26, %v487_v24 }
 0x10b   : > { %1173 = vmatpush1.bf16.msra.mxu1 %v1770_v27  ;;  %v357_v33 = vpop.permute.xlu1 %356  ;;  %1200 = vmatprep.mubr.bf16.mxu1 %v1802_v36 }
 0x10c   : > { %v359_v37 = vpop.permute.xlu0 %358  ;;  %v373_v38 = vsel %vm362_vm7, %v338_v32, %v357_v33  ;;  %1174 = vmatprep.subr.bf16.mxu1 %v1778_v30  ;;  %v492_v30 = vrot.slane %v483_v26, %v491_v25 }
 0x10d   : > { %v363_v34 = vsel %vm362_vm7, %v357_v33, %v359_v37 }
 0x10e   : > { %1157 = vmatprep.mubr.bf16.mxu0 %v363_v34 }
 0x10f   : > { %1158 = vmatmul.mubr.bf16.vlgmr.msra.gmra.mxu0 %v373_v38  ;;  %1175 = vmatpush1.bf16.msra.mxu1 %v1776_v35  ;;  %v361_v47 = vpop.permute.xlu1 %360 }
 0x110   : > { %1176 = vmatprep.subr.bf16.mxu1 %v1781_v39  ;;  %v364_v48 = vsel %vm362_vm7, %v359_v37, %v361_v47 }
 0x113   : > { %1177 = vmatpush1.bf16.msra.mxu1 %v1779_v40 }
 0x114   : > { %1178 = vmatprep.subr.bf16.mxu1 %v1784_v41 }
 0x117   : > { %1179 = vmatpush1.bf16.msra.mxu1 %v1782_v42 }
 0x118   : > { %1180 = vmatprep.subr.bf16.mxu1 %v1787_v43 }
 0x11b   : > { %1181 = vmatpush1.bf16.msra.mxu1 %v1785_v44 }
 0x11c   : > { %1182 = vmatprep.subr.bf16.mxu1 %v1790_v45 }
 0x11f   : > { %1183 = vmatpush1.bf16.msra.mxu1 %v1788_v46 }
 0x120   : > { %1579 = vmatprep.subr.mxu1 %v1291_v49 }
 0x122   : > { %1570 = vmatmul.mubr.msk.bf16.vlgmr.msra.gmra.mxu1 %vm1035_vm8, %v364_v48 }
 0x123   : > { %1580 = vmatpush3.msra.mxu1 %v1275_v50 }
 0x124   : > { %1581 = vmatprep.subr.mxu1 %v1290_v51 }
 0x125   : > { %1582 = vmatpush3.msra.mxu1 %v1274_v52 }
 0x126   : > { %1583 = vmatprep.subr.mxu1 %v1289_v53 }
 0x127   : > { %1584 = vmatpush3.msra.mxu1 %v1273_v54 }
 0x128   : > { %1585 = vmatprep.subr.mxu1 %v1288_v55 }
 0x129   : > { %1586 = vmatpush3.msra.mxu1 %v1272_v56 }
 0x12a   : > { %1587 = vmatprep.subr.mxu1 %v1287_v57 }
 0x12b   : > { %1588 = vmatpush3.msra.mxu1 %v1271_v58 }
 0x12c   : > { %1589 = vmatprep.subr.mxu1 %v1286_v59 }
 0x12d   : > { %1590 = vmatpush3.msra.mxu1 %v1270_v60 }
 0x12e   : > { %1591 = vmatprep.subr.mxu1 %v1285_v61 }
 0x12f   : > { %1592 = vmatpush3.msra.mxu1 %v1269_v62 }
 0x130   : > { %1593 = vmatprep.subr.mxu1 %v1284_v63 }
 0x131   : > { %1594 = vmatpush3.msra.mxu1 %v1268_v0 }
 0x132   : > { %1595 = vmatprep.subr.mxu1 %v1283_v1 }
 0x133   : > { %1596 = vmatpush3.msra.mxu1 %v1267_v2 }
 0x134   : > { %1597 = vmatprep.subr.mxu1 %v1282_v3 }
 0x135   : > { %1598 = vmatpush3.msra.mxu1 %v1266_v4 }
 0x136   : > { %1599 = vmatprep.subr.mxu1 %v1281_v5 }
 0x137   : > { %1600 = vmatpush3.msra.mxu1 %v1265_v6 }
 0x138   : > { %1601 = vmatprep.subr.mxu1 %v1280_v7 }
 0x139   : > { %1602 = vmatpush3.msra.mxu1 %v1264_v8 }
 0x13a   : > { %1603 = vmatprep.subr.mxu1 %v1279_v9 }
 0x13b   : > { %1604 = vmatpush3.msra.mxu1 %v1263_v10 }
 0x13c   : > { %1605 = vmatprep.subr.mxu1 %v1278_v11 }
 0x13d   : > { %1606 = vmatpush3.msra.mxu1 %v1262_v12 }
 0x13e   : > { %1607 = vmatprep.subr.mxu1 %v1277_v13 }
 0x13f   : > { %1608 = vmatpush3.msra.mxu1 %v1261_v14 }
 0x140   : > { %1609 = vmatprep.subr.mxu1 %v1276_v15 }
 0x141   : > { %1610 = vmatpush3.msra.mxu1 %v1260_v16 }
 0x14f   : > { %v1073_v17 = vpop.f32.mrf.mxu0 }
 0x150   : > { %v1074_v33 = vadd.f32 %v1073_v17, %v488_v29 }
 0x151   : > { %v1075_v18 = vpop.f32.mrf.mxu0 }
 0x152   : > { %v1076_v35 = vadd.f32 %v1075_v18, %v492_v30 }
 0x153   : > { %v1077_v20 = vpop.f32.mrf.mxu0 }
 0x154   : > { %v1078_v38 = vadd.f32 %v1077_v20, %v488_v29 }
 0x155   : > { %v1079_v23 = vpop.f32.mrf.mxu0 }
 0x156   : > { %v1080_v41 = vadd.f32 %v1079_v23, %v492_v30 }
 0x1ca   : > { %v1116_v22 = vpop.f32.mrf.mxu1 }
 0x1cb   : > { %v1117_v39 = vadd.f32 %v1116_v22, %v1074_v33 }
 0x1cc   : > { %v1118_v27 = vpop.f32.mrf.mxu1 }
 0x1cd   : > { %v1119_v34 = vadd.f32 %v1118_v27, %v1076_v35 }
 0x1ce   : > { %v1120_v31 = vpop.f32.mrf.mxu1 }
 0x1cf   : > { %v1159_v28 = vpop.f32.mrf.mxu0  ;;  %v1121_v42 = vadd.f32 %v1120_v31, %v1078_v38 }
 0x1d0   : > { %v1122_v36 = vpop.f32.mrf.mxu1  ;;  %v1160_v43 = vadd.f32 %v1159_v28, %v1117_v39 }
 0x1d1   : > { %v1161_v32 = vpop.f32.mrf.mxu0  ;;  %v1123_v47 = vadd.f32 %v1122_v36, %v1080_v41 }
 0x1d2   : > { %v1162_v44 = vadd.f32 %v1161_v32, %v1119_v34 }
 0x1d3   : > { %v1163_v37 = vpop.f32.mrf.mxu0 }
 0x1d4   : > { %v1164_v48 = vadd.f32 %v1163_v37, %v1121_v42 }
 0x1d5   : > { %v1165_v45 = vpop.f32.mrf.mxu0 }
 0x1d6   : > { %v1166_v52 = vadd.f32 %v1165_v45, %v1123_v47 }
 0x1e2   : > { %v1202_v40 = vpop.f32.mrf.mxu1 }
 0x1e3   : > { %v1203_v49 = vadd.f32 %v1202_v40, %v1160_v43 }
 0x1e4   : > { %v1204_v46 = vpop.f32.mrf.mxu1 }
 0x1e5   : > { %v1205_v50 = vadd.f32 %v1204_v46, %v1162_v44  ;;  %v1239_v56 = vmul.f32 %v1203_v49, %v1203_v49 }
 0x1e6   : > { %v1206_v51 = vpop.f32.mrf.mxu1 }
 0x1e7   : > { %v1577_v53 = vpack.c.bf16 %v1205_v50, %v1203_v49  ;;  %v1207_v54 = vadd.f32 %v1206_v51, %v1164_v48  ;;  %v1240_v0 = vmul.f32 %v1205_v50, %v1205_v50 }
 0x1e8   : > { %v1208_v55 = vpop.f32.mrf.mxu1 }
 0x1e9   : > { %1223 = vst [vmem:[%s231_s24] sm:$0xff] %v1577_v53  ;;  %v1225_v57 = vadd.f32 %v1207_v54, %v1203_v49  ;;  %v1241_v58 = vmul.f32 %v1207_v54, %v1207_v54  ;;  %v1209_v59 = vadd.f32 %v1208_v55, %v1166_v52 }
 0x1eb   : > { %v1226_v60 = vrot.slane %v1225_v57, 4  ;;  %v1243_v61 = vadd.f32 %v1241_v58, %v1239_v56  ;;  %v1578_v62 = vpack.c.bf16 %v1209_v59, %v1207_v54  ;;  %v1232_v63 = vadd.f32 %v1209_v59, %v1205_v50 }
 0x1ec   : > { %v1242_v1 = vmul.f32 %v1209_v59, %v1209_v59 }
 0x1ed   : > { %v1227_v2 = vadd.f32 %v1226_v60, %v1225_v57  ;;  %v1244_v3 = vrot.slane %v1243_v61, 4  ;;  %1224 = vst [vmem:[%s231_s24 + $0x8] sm:$0xff] %v1578_v62  ;;  %v1233_v4 = vrot.slane %v1232_v63, 4 }
 0x1ee   : > { %v1250_v5 = vadd.f32 %v1242_v1, %v1240_v0 }
 0x1ef   : > { %v1228_v6 = vrot.slane %v1227_v2, 2  ;;  %v1245_v7 = vadd.f32 %v1244_v3, %v1243_v61  ;;  %v1234_v8 = vadd.f32 %v1233_v4, %v1232_v63 }
 0x1f0   : > { %v1251_v9 = vrot.slane %v1250_v5, 4 }
 0x1f1   : > { %v1246_v10 = vrot.slane %v1245_v7, 2  ;;  %v1235_v11 = vrot.slane %v1234_v8, 2  ;;  %v1229_v13 = vadd.f32 %v1228_v6, %v1227_v2 }
 0x1f2   : > { %v1252_v12 = vadd.f32 %v1251_v9, %v1250_v5 }
 0x1f3   : > { %v1236_v14 = vadd.f32 %v1235_v11, %v1234_v8  ;;  %v1247_v15 = vadd.f32 %v1246_v10, %v1245_v7  ;;  %v1230_v20 = vrot.slane %v1229_v13, 1 }
 0x1f4   : > { %v1253_v16 = vrot.slane %v1252_v12, 2 }
 0x1f5   : > { %v1248_v17 = vrot.slane %v1247_v15, 1  ;;  %v1237_v18 = vrot.slane %v1236_v14, 1  ;;  %v1231_v25 = vadd.f32 %v1230_v20, %v1229_v13 }
 0x1f6   : > { %v1254_v19 = vadd.f32 %v1253_v16, %v1252_v12 }
 0x1f7   : > { %v1249_v22 = vadd.f32 %v1248_v17, %v1247_v15  ;;  %v1238_v23 = vadd.f32 %v1237_v18, %v1236_v14 }
 0x1f8   : > { %v1255_v21 = vrot.slane %v1254_v19, 1 }
 0x1f9   : > { %v1258_v27 = vsel %vm284_vm1, %v1231_v25, %v1249_v22 }
 0x1fa   : > { %v1256_v24 = vadd.f32 %v1255_v21, %v1254_v19 }
 0x1fc   : > { %v1259_v26 = vsel %vm284_vm1, %v1238_v23, %v1256_v24 }
 0x1fd   : > { %1356 = vmatprep.mubr.f32.mxu1 %v1259_v26 }
 0x1fe   : > { %1357 = vmatmul.mubr.f32.vlgmr.msra.gmra.mxu1 %v1258_v27 }
 0x2be   : > { %v1611_v28 = vpop.f32.mrf.mxu1 }
 0x2c0   : > { %v1612_v29 = vpop.f32.mrf.mxu1 }
 0x2c1   : > { %v1613_v30 = vadd.f32 %v1612_v29, %v1611_v28 }
 0x2c3   : > { %1363 = vst.msk [vmem:[%s235_s27] sm:$0x3] %vm1362_vm9, %v1613_v30 }
 0x2c4 PF: > { %s16_s18 = sadd.s32 1, %s1797_s18  }
 0x2c5   : > { %p13_p4 = scmp.ge.s32.totalorder %s16_s18, 4  }
 0x2c7   :  { %15 = sbr.rel (!%p13_p4) target bundleno = 1 (0x1), region = 78 }

// kernel: up_forward.9
= control target key start
LH: loop header
LB: loop body
LE: loop exit
PB: predicated region body
PF: predicated region fallthrough
CT: control target
= control target key end

     0   :  { %s556_s18 = smov 0   ;;  %s606_s0 = inlined_call_operand.vmem [shape: bf16[32,256], index: 0, kind: input, shape index: {}]   ;;  %s607_s1 = inlined_call_operand.vmem [shape: bf16[32,256], index: 1, kind: input, shape index: {}]   ;;  %s608_s2 = inlined_call_operand.vmem [shape: f32[2,2,16], index: 2, kind: input, shape index: {}]   ;;  %s609_s3 = inlined_call_operand.vmem [shape: f32[2,16], index: 3, kind: input, shape index: {}]   ;;  %s610_s4 = inlined_call_operand.vmem [shape: f32[16,256], index: 4, kind: input, shape index: {}]   ;;  %s611_s5 = inlined_call_operand.vmem [shape: f32[32,256], index: 5, kind: output, shape index: {}]  }
   0x1 LB: > { %s486_s19 = sadd.s32 4294967295, %s523_s18   ;;  %p490_p0 = scmp.ge.s32.totalorder %s523_s18, 1  ;;  %s523_s18 = sphi %s556_s18, %s15_s18  }
   0x2   : > { %p201_p1 = scmp.lt.s32.totalorder %s523_s18, 3 }
   0x4   : > { %p202_p2 = pnand %p490_p0, %p201_p1 }
   0x5   : > { %s491_s11 = sshll.u32 (!%p202_p2), %s486_s19, 1 }
   0x6   : > { %205 = sbr.rel (%p202_p2) target bundleno = 260 (0x104), region = 40  ;;  %p238_p3 = scmp.lt.s32.totalorder (!%p202_p2), %s491_s11, 3 }
   0xb   : > { %v265_v0 = vld [vmem:[%s610_s4 + $0x18] sm:$0xff]  ;;  %v264_v1 = vld [vmem:[%s610_s4 + $0x10] sm:$0xff]  ;;  %v263_v2 = vld [vmem:[%s610_s4 + $0x8] sm:$0xff]  ;;  %vm266_vm0 = vcmask 123904   ;;  %v525_v4 = vmov 0.0   ;;  %vm291_vm1 = vcmask 1040384   ;;  %v374_v26 = vlaneseq }
   0xc   : > { %325 = vmatprep.subr.mxu0 %v265_v0  ;;  %v262_v3 = vld [vmem:[%s610_s4] sm:$0xff]  ;;  %361 = vmatprep.mubr.f32.mxu0 %v525_v4  ;;  %vm293_vm2 = vcmask 130048   ;;  %s613_s11 = smov (!%p238_p3, %s491_s11), 3 }
   0xd   : > { %v258_v5 = vld [vmem:[%s608_s2] sm:$0x3]  ;;  %v259_v6 = vld [vmem:[%s608_s2 + $0x2] sm:$0x3]  ;;  %326 = vmatpush1.msra.mxu0 %v264_v1  ;;  %s503_s12 = sshll.u32 %s613_s11, 3  ;;  %v375_v27 = vshrl.u32 %v374_v26, 7 }
   0xe   : > { %v267_v7 = vsel %vm266_vm0, %v258_v5, 0.0  ;;  %v268_v8 = vsel %vm266_vm0, %v259_v6, 0.0  ;;  %327 = vmatprep.subr.mxu0 %v263_v2  ;;  %v260_v16 = vld [vmem:[%s609_s3] sm:$0x1]  ;;  %v261_v21 = vld [vmem:[%s609_s3 + $0x1] sm:$0x1]  ;;  %s242_s15 = scalar_lea.vmem %s606_s0, %s503_s12  ;;  %s249_s20 = scalar_lea.vmem %s607_s1, %s503_s12 }
   0xf   : > { %v269_v9 = vadd.f32 %v268_v8, %v267_v7  ;;  %328 = vmatpush1.msra.mxu0 %v262_v3  ;;  %v280_v17 = vrot.slane %v260_v16, 7  ;;  %v368_v28 = vld [vmem:[%s242_s15] sm:$0xff]  ;;  %v369_v29 = vld [vmem:[%s242_s15 + $0x8] sm:$0xff]  ;;  %v376_v30 = vsub.s32 0, %v375_v27  ;;  %v388_v33 = vsub.s32 1, %v375_v27  ;;  %s505_s19 = sshll.u32 %s613_s11, 4 }
  0x10   : > { %v370_v31 = vunpack.c.l.bf16 %v368_v28  ;;  %v372_v32 = vunpack.c.l.bf16 %v369_v29  ;;  %v398_v34 = vld [vmem:[%s249_s20] sm:$0xff]  ;;  %v399_v35 = vld [vmem:[%s249_s20 + $0x8] sm:$0xff]  ;;  %v371_v38 = vunpack.c.h.bf16 %v368_v28  ;;  %v373_v39 = vunpack.c.h.bf16 %v369_v29  ;;  %s256_s23 = scalar_lea.vmem %s611_s5, %s505_s19 }
  0x11   : > { %v270_v10 = vmul.f32 0.001953125, %v269_v9  ;;  %v400_v40 = vunpack.c.l.bf16 %v398_v34  ;;  %v402_v41 = vunpack.c.l.bf16 %v399_v35  ;;  %v401_v48 = vunpack.c.h.bf16 %v398_v34 }
  0x12   : > { %v403_v49 = vunpack.c.h.bf16 %v399_v35 }
  0x13   : > { %v271_v11 = vmul.f32 %v270_v10, %v270_v10 }
  0x15   : > { %v273_v12 = vrot.slane %v271_v11, 7 }
  0x17   : > { %v275_v13 = vsub.f32 %v270_v10, %v273_v12 }
  0x19   : > { %v276_v14 = vmax.f32 %v275_v13, 0.0 }
  0x1b   : > { %v277_v15 = vadd.f32 1e-05, %v276_v14 }
  0x1d   : > { %515 = vrsqrt.f32 %v277_v15 }
  0x2a   : > { %v516_v18 = vpop.eup %515 }
  0x2b   : > { %v282_v19 = vmul.f32 %v516_v18, %v280_v17 }
  0x2d   : > { %v284_v20 = vrot.slane %v282_v19, 1 }
  0x2f   : > { %v286_v22 = vmul.f32 %v284_v20, %v270_v10 }
  0x31   : > { %v287_v23 = vsub.f32 %v261_v21, %v286_v22 }
  0x33   : > { %v289_v24 = vrot.slane %v287_v23, 7 }
  0x35   : > { %v292_v25 = vsel %vm291_vm1, %v284_v20, %v289_v24 }
  0x36   : > { %500 = vmatmul.mubr.msk.f32.vlgmr.msra.gmra.mxu0 %vm293_vm2, %v292_v25 }
  0xf6   : > { %v363_v36 = vpop.f32.mrf.mxu0 }
  0xf7   : > { %v377_v37 = vrot.slane %v363_v36, %v376_v30  ;;  %v389_v45 = vrot.slane %v363_v36, %v388_v33 }
  0xf8   : > { %v365_v42 = vpop.f32.mrf.mxu0 }
  0xf9   : > { %v382_v43 = vmul.f32 %v377_v37, %v370_v31  ;;  %v384_v44 = vmul.f32 %v377_v37, %v372_v32  ;;  %v381_v46 = vrot.slane %v365_v42, %v376_v30  ;;  %v393_v47 = vrot.slane %v365_v42, %v388_v33 }
  0xfb   : > { %v394_v50 = vadd.f32 %v389_v45, %v382_v43  ;;  %v396_v51 = vadd.f32 %v389_v45, %v384_v44  ;;  %v383_v52 = vmul.f32 %v381_v46, %v371_v38  ;;  %v385_v53 = vmul.f32 %v381_v46, %v373_v39 }
  0xfd   : > { %v404_v54 = vadd.f32 %v400_v40, %v394_v50  ;;  %v406_v55 = vadd.f32 %v402_v41, %v396_v51  ;;  %v395_v56 = vadd.f32 %v393_v47, %v383_v52  ;;  %v397_v57 = vadd.f32 %v393_v47, %v385_v53 }
  0xff   : > { %v408_v58 = vmax.f32 %v404_v54, 0.0  ;;  %v410_v59 = vmax.f32 %v406_v55, 0.0  ;;  %v405_v60 = vadd.f32 %v401_v48, %v395_v56  ;;  %v407_v61 = vadd.f32 %v403_v49, %v397_v57 }
 0x101   : > { %412 = vst [vmem:[%s256_s23] sm:$0xff] %v408_v58  ;;  %v409_v62 = vmax.f32 %v405_v60, 0.0  ;;  %v411_v63 = vmax.f32 %v407_v61, 0.0  ;;  %414 = vst [vmem:[%s256_s23 + $0x10] sm:$0xff] %v410_v59 }
 0x103   : > { %413 = vst [vmem:[%s256_s23 + $0x8] sm:$0xff] %v409_v62  ;;  %415 = vst [vmem:[%s256_s23 + $0x18] sm:$0xff] %v411_v63 }
 0x104 PF: > { %s15_s18 = sadd.s32 1, %s523_s18  }
 0x105   : > { %p12_p4 = scmp.ge.s32.totalorder %s15_s18, 4  }
 0x107   :  { %14 = sbr.rel (!%p12_p4) target bundleno = 1 (0x1), region = 73 }

</bundles_post_ra>
